<compile_context>
chip_gen: v7x
topology: tpu7x:2x2x1
jax: 0.10.0
libtpu: 0.0.40
codegen_flags: <defaults>
</compile_context>

<pallas_src>
import jax
import jax.numpy as jnp
import numpy as np
from jax import lax
from jax.experimental import pallas as pl
from jax.experimental.pallas import tpu as pltpu


def _fused_convblock_kernel(x_top_ref, x_mid_ref, x_bot_ref,
                            w1_ref, b1_ref, w2_ref, b2_ref,
                            o_ref, xpad_ref, hpad_ref):
    """One (batch, row-tile) step of (conv3x3 + ReLU) x 2, fully on-chip.

    Ref shapes (per grid step):
      x_top_ref : (1, 2,  W, Cin)   two input rows just above the tile
      x_mid_ref : (1, TH, W, Cin)   the tile's own TH input rows
      x_bot_ref : (1, 2,  W, Cin)   two input rows just below the tile
      w1_ref    : (9*Cin, C1) bf16      b1_ref : (1, C1) f32
      w2_ref    : (C2, 9*C1) bf16       b2_ref : (C2, 1) f32
      o_ref     : (1, 1, C2, TH*W)
      xpad_ref  : (TH+4, W+2, Cin) bf16 VMEM scratch (padded input window)
      hpad_ref  : (TH+2, W+2, C1)  bf16 VMEM scratch (padded conv1 output)
    """
    _, TH, W, Cin = x_mid_ref.shape
    C1 = w1_ref.shape[1]
    C2 = w2_ref.shape[0]
    h = pl.program_id(1)
    n_h = pl.num_programs(1)
    cdt = xpad_ref.dtype           # bf16 MXU operand dtype (f32 accumulation)

    # ------------------------------------------------------------------
    # Stage the zero-padded (TH+4, W+2, Cin) input window in VMEM scratch via
    # sub-slice stores (no concatenate copies, no float-multiply masking).
    # The 1-column left/right padding is re-zeroed every step (tiny store) so
    # correctness never depends on scratch state from another grid step /
    # TensorCore (v7x shards "parallel" axes across 2 TCs).
    xpad_ref[:, 0:1, :] = jnp.zeros((TH + 4, 1, Cin), cdt)
    xpad_ref[:, W + 1:W + 2, :] = jnp.zeros((TH + 4, 1, Cin), cdt)
    xpad_ref[2:2 + TH, 1:1 + W, :] = x_mid_ref[0].astype(cdt)

    @pl.when(h > 0)
    def _():  # real halo rows above the tile
        xpad_ref[0:2, 1:1 + W, :] = x_top_ref[0].astype(cdt)

    @pl.when(h == 0)
    def _():  # image top: 'same' padding rows are exact zeros
        xpad_ref[0:2, 1:1 + W, :] = jnp.zeros((2, W, Cin), cdt)

    @pl.when(h < n_h - 1)
    def _():  # real halo rows below the tile
        xpad_ref[TH + 2:TH + 4, 1:1 + W, :] = x_bot_ref[0].astype(cdt)

    @pl.when(h == n_h - 1)
    def _():  # image bottom
        xpad_ref[TH + 2:TH + 4, 1:1 + W, :] = jnp.zeros((2, W, Cin), cdt)

    # ------------------------------------------------------------------
    # conv1 + ReLU as ONE im2col matmul (K = 9*Cin), computed for TH+2 rows
    # (the extra row above/below is the intermediate halo conv2 needs).
    # TODO(synk): at real channel counts (Cin >= ~128) replace the 9-tap
    # im2col concat with 9 accumulating MXU matmuls over per-tap slices of
    # xpad_ref (cuts the 9x activation replication); with Cin=4 the im2col
    # keeps K=36 instead of 4 and is the better MXU feed.
    m1 = (TH + 2) * W
    taps1 = [xpad_ref[dy:dy + TH + 2, dx:dx + W, :]
             for dy in range(3) for dx in range(3)]
    a1 = jnp.concatenate(taps1, axis=-1).reshape(m1, 9 * Cin)        # bf16
    acc1 = jnp.dot(a1, w1_ref[...], preferred_element_type=jnp.float32)
    h1 = jnp.maximum(acc1 + b1_ref[...], 0.0)                        # f32

    # Stage conv1's output (with 1-column zero padding) in VMEM scratch.
    hpad_ref[:, 0:1, :] = jnp.zeros((TH + 2, 1, C1), cdt)
    hpad_ref[:, W + 1:W + 2, :] = jnp.zeros((TH + 2, 1, C1), cdt)
    hpad_ref[:, 1:1 + W, :] = h1.reshape(TH + 2, W, C1).astype(cdt)

    # Intermediate rows that are conv2's zero padding (image rows -1 and H)
    # must be exact zeros, not relu(b1 + ...): overwrite only at the image
    # boundary (interior tiles pay nothing — no full-size iota mask).
    @pl.when(h == 0)
    def _():
        hpad_ref[0:1, 1:1 + W, :] = jnp.zeros((1, W, C1), cdt)

    @pl.when(h == n_h - 1)
    def _():
        hpad_ref[TH + 1:TH + 2, 1:1 + W, :] = jnp.zeros((1, W, C1), cdt)

    # ------------------------------------------------------------------
    # conv2 + ReLU, computed transposed so the result is (C2, TH*W):
    # lane-dense accumulator / epilogue / unmasked stores for C2 < 128.
    # TODO(synk): for C2 >= 128 switch to the plain a2 @ w2 orientation (the
    # contract-last-dims form below could hide an a2 transpose at large sizes).
    taps2 = [hpad_ref[dy:dy + TH, dx:dx + W, :]
             for dy in range(3) for dx in range(3)]
    a2 = jnp.concatenate(taps2, axis=-1).reshape(TH * W, 9 * C1)     # bf16
    acc2 = lax.dot_general(w2_ref[...], a2,
                           (((1,), (1,)), ((), ())),
                           preferred_element_type=jnp.float32)       # (C2, TH*W)
    out = jnp.maximum(acc2 + b2_ref[...], 0.0)
    o_ref[0, 0] = out.astype(o_ref.dtype)


# Per-step VMEM budget for picking the row tile; safe on v7x (64 MiB per TC).
_VMEM_STEP_BUDGET = 40 * 1024 * 1024
# TODO(synk): on v5e/v6e (128 MiB physical VMEM) both numbers below can be
# raised (~96 MiB) to allow larger TH and push toward the HBM roofline.
_VMEM_LIMIT_BYTES = 48 * 1024 * 1024


def _estimate_step_vmem_bytes(TH, W, Cin, C1, C2):
    """Rough per-grid-step VMEM footprint in bytes for a candidate row tile."""
    f32, bf16 = 4, 2
    # double-buffered input blocks (top + mid + bottom specs, f32)
    xin = 2 * (2 * 2 * W * Cin + TH * W * Cin) * f32
    # double-buffered weights / biases (bf16 weights, f32 biases)
    wts = 2 * ((9 * Cin * C1 + 9 * C1 * C2) * bf16 + (C1 + C2) * f32)
    # double-buffered output block (f32)
    out = 2 * C2 * TH * W * f32
    # scratch: padded input / intermediate windows (bf16)
    scr = ((TH + 4) * (W + 2) * Cin + (TH + 2) * (W + 2) * C1) * bf16
    # transient im2col operands + f32 accumulators / epilogues
    tmp = ((TH + 2) * W * 9 * Cin + TH * W * 9 * C1) * bf16 \
        + ((TH + 2) * W * C1 + TH * W * C2) * f32
    return xin + wts + out + scr + tmp


def _pick_row_tile(H, N, W, Cin, C1, C2, vmem_budget):
    """Largest even row tile dividing H whose per-step footprint fits the
    budget; prefers >= 2 row tiles (exercises interior + boundary halo paths,
    enables pipelining) and an even total grid (balances v7x's 2 TCs)."""
    cands = [t for t in range(H, 1, -1) if H % t == 0 and t % 2 == 0]
    fits = [t for t in cands
            if _estimate_step_vmem_bytes(t, W, Cin, C1, C2) <= vmem_budget]
    if not fits:
        raise ValueError("no row tile fits the per-step VMEM budget")
    for t in fits:
        if H // t >= 2 and (N * (H // t)) % 2 == 0:
            return t
    for t in fits:
        if H // t >= 2:
            return t
    return fits[0]


def conv_block_fused(x_nhwc, w1, b1, w2, b2):
    """Fused ConvBlock. x_nhwc: (N,H,W,Cin); w: (3,3,Cin,Cout); returns NCHW."""
    N, H, W, Cin = x_nhwc.shape
    C1 = w1.shape[-1]
    C2 = w2.shape[-1]
    if H % 2 != 0:
        raise ValueError("conv_block_fused assumes an even image height")
    TH = _pick_row_tile(H, N, W, Cin, C1, C2, _VMEM_STEP_BUDGET)
    n_h = H // TH
    hh = TH // 2        # the 2-row halo blocks tile H into H//2 blocks

    # Weight / bias layouts for the in-kernel im2col matmuls.
    w1m = w1.reshape(9 * Cin, C1).astype(jnp.bfloat16)       # (9*Cin, C1)
    b1m = b1.reshape(1, C1).astype(jnp.float32)
    w2m = w2.reshape(9 * C1, C2).T.astype(jnp.bfloat16)      # (C2, 9*C1)
    b2m = b2.reshape(C2, 1).astype(jnp.float32)

    out = pl.pallas_call(
        _fused_convblock_kernel,
        out_shape=jax.ShapeDtypeStruct((N, n_h, C2, TH * W), x_nhwc.dtype),
        grid_spec=pltpu.PrefetchScalarGridSpec(
            num_scalar_prefetch=0,
            grid=(N, n_h),
            in_specs=[
                # 2-row halo above the tile (clamped at the image top; the
                # kernel zeroes it when h == 0).
                pl.BlockSpec((1, 2, W, Cin),
                             lambda n, h: (n, jnp.maximum(h * hh - 1, 0), 0, 0)),
                # The tile's own TH rows.
                pl.BlockSpec((1, TH, W, Cin), lambda n, h: (n, h, 0, 0)),
                # 2-row halo below the tile (clamped at the image bottom).
                pl.BlockSpec((1, 2, W, Cin),
                             lambda n, h: (n, jnp.minimum((h + 1) * hh,
                                                          H // 2 - 1), 0, 0)),
                # TODO(synk): at large channel counts mark these constant
                # weight/bias specs pipeline_mode=pl.Buffered(1) so they are
                # not double-buffered inside v7x's 64 MiB VMEM.
                pl.BlockSpec((9 * Cin, C1), lambda n, h: (0, 0)),
                pl.BlockSpec((1, C1), lambda n, h: (0, 0)),
                pl.BlockSpec((C2, 9 * C1), lambda n, h: (0, 0)),
                pl.BlockSpec((C2, 1), lambda n, h: (0, 0)),
            ],
            out_specs=pl.BlockSpec((1, 1, C2, TH * W),
                                   lambda n, h: (n, h, 0, 0)),
            scratch_shapes=[
                pltpu.VMEM((TH + 4, W + 2, Cin), jnp.bfloat16),   # padded input
                pltpu.VMEM((TH + 2, W + 2, C1), jnp.bfloat16),    # padded conv1 out
            ],
        ),
        compiler_params=pltpu.CompilerParams(
            dimension_semantics=("parallel", "parallel"),
            vmem_limit_bytes=_VMEM_LIMIT_BYTES,
        ),
    )(x_nhwc, x_nhwc, x_nhwc, w1m, b1m, w2m, b2m)

    # (N, n_h, C2, TH*W) -> NCHW: cheap metadata reshapes + one small transpose.
    # TODO(synk): when W % 128 == 0, emit (1, C2, TH, W) NCHW blocks directly
    # from the kernel and drop this transpose (keeps lane-dense stores).
    out = out.reshape(N, n_h, C2, TH, W)
    return jnp.transpose(out, (0, 2, 1, 3, 4)).reshape(N, C2, H, W)


@jax.jit
def conv_block_forward(x_nchw, w1, b1, w2, b2):
    # NCHW -> NHWC (channels on the TPU lane axis) for the kernel.
    # TODO(synk): if the surrounding model is channels-last end-to-end, this
    # transpose can be removed and the kernel fed NHWC directly.
    x = jnp.transpose(x_nchw, (0, 2, 3, 1))
    return conv_block_fused(x, w1, b1, w2, b2)


def init_conv_params(key, in_ch, out_ch):
    """Deterministic init mimicking nn.Conv2d defaults (kaiming-uniform bound)."""
    kw, kb = jax.random.split(key)
    fan_in = in_ch * 3 * 3
    bound = 1.0 / np.sqrt(fan_in)
    # PyTorch layout (out_ch, in_ch, 3, 3) -> HWIO layout (3, 3, in_ch, out_ch)
    w_pt = jax.random.uniform(kw, (out_ch, in_ch, 3, 3), jnp.float32, -bound, bound)
    w = jnp.transpose(w_pt, (2, 3, 1, 0))
    b = jax.random.uniform(kb, (out_ch,), jnp.float32, -bound, bound)
    return w, b


def conv_block_reference(x_nchw, w1, b1, w2, b2, compute_dtype=jnp.float32):
    """Pure-JAX reference (NCHW, PyTorch semantics). compute_dtype lets us also
    build a precision-matched (bf16 operands, f32 accumulation) reference."""
    def conv(x, w, b):
        out = lax.conv_general_dilated(
            x.astype(compute_dtype), w.astype(compute_dtype),
            window_strides=(1, 1), padding="SAME",
            dimension_numbers=("NCHW", "HWIO", "NCHW"),
            preferred_element_type=jnp.float32)
        return jnp.maximum(out + b.reshape(1, -1, 1, 1), 0.0)
    return conv(conv(x_nchw, w1, b1), w2, b2)


if __name__ == "__main__":
    in_ch, out_ch = 4, 8
    N, H, W = 2, 16, 16

    key = jax.random.PRNGKey(0)
    kx, k1, k2 = jax.random.split(key, 3)
    x = jax.random.normal(kx, (N, in_ch, H, W), jnp.float32)
    w1, b1 = init_conv_params(k1, in_ch, out_ch)
    w2, b2 = init_conv_params(k2, out_ch, out_ch)

    out = conv_block_forward(x, w1, b1, w2, b2)
    out = jax.block_until_ready(out)

    # Precision-matched reference (bf16 matmul operands, f32 accumulation).
    ref_bf16 = conv_block_reference(x, w1, b1, w2, b2, compute_dtype=jnp.bfloat16)
    np.testing.assert_allclose(np.asarray(out), np.asarray(ref_bf16),
                               rtol=1e-4, atol=1e-4)
    # Sanity check against the exact-f32 reference (bf16 rounding tolerance).
    ref_f32 = conv_block_reference(x, w1, b1, w2, b2, compute_dtype=jnp.float32)
    np.testing.assert_allclose(np.asarray(out), np.asarray(ref_f32),
                               rtol=2e-2, atol=2e-2)

    print("KERNEL_OK")
</pallas_src>

<mosaic_0001>
module attributes {stable_mosaic.version = 11 : i64} {
  func.func @_fused_convblock_kernel(%arg0: i32, %arg1: i32, %arg2: memref<1x2x16x4xf32, #tpu.memory_space<vmem>>, %arg3: memref<1x8x16x4xf32, #tpu.memory_space<vmem>>, %arg4: memref<1x2x16x4xf32, #tpu.memory_space<vmem>>, %arg5: memref<36x8xbf16, #tpu.memory_space<vmem>>, %arg6: memref<1x8xf32, #tpu.memory_space<vmem>>, %arg7: memref<8x72xbf16, #tpu.memory_space<vmem>>, %arg8: memref<8x1xf32, #tpu.memory_space<vmem>>, %arg9: memref<1x1x8x128xf32, #tpu.memory_space<vmem>>, %arg10: memref<12x18x4xbf16, #tpu.memory_space<vmem>>, %arg11: memref<10x18x8xbf16, #tpu.memory_space<vmem>>) attributes {dimension_semantics = [#tpu.dimension_semantics<parallel>, #tpu.dimension_semantics<parallel>], iteration_bounds = array<i64: 2, 2>, scalar_prefetch = 0 : i64, scratch_operands = 2 : i64, tpu.core_type = #tpu.core_type<tc>, window_params = [{transform_indices = @transform_0, window_bounds = array<i64: 1, 2, 16, 4>}, {transform_indices = @transform_1, window_bounds = array<i64: 1, 8, 16, 4>}, {transform_indices = @transform_2, window_bounds = array<i64: 1, 2, 16, 4>}, {pipeline_mode = #tpu.pipeline_mode<synchronous>, transform_indices = @transform_3, window_bounds = array<i64: 36, 8>}, {pipeline_mode = #tpu.pipeline_mode<synchronous>, transform_indices = @transform_4, window_bounds = array<i64: 1, 8>}, {pipeline_mode = #tpu.pipeline_mode<synchronous>, transform_indices = @transform_5, window_bounds = array<i64: 8, 72>}, {pipeline_mode = #tpu.pipeline_mode<synchronous>, transform_indices = @transform_6, window_bounds = array<i64: 8, 1>}, {transform_indices = @transform_7, window_bounds = array<i64: 1, 1, 8, 128>}]} {
    %cst = arith.constant 0.000000e+00 : bf16
    %0 = vector.broadcast %cst : bf16 to vector<12x1x4xbf16>
    %c0 = arith.constant 0 : index
    %c0_0 = arith.constant 0 : index
    %c0_1 = arith.constant 0 : index
    %1 = vector.load %arg10[%c0, %c0_0, %c0_1] : memref<12x18x4xbf16, #tpu.memory_space<vmem>>, vector<12x1x4xbf16>
    tpu.vector_store %arg10[%c0, %c0_0, %c0_1], %0 {strides = array<i32>} : memref<12x18x4xbf16, #tpu.memory_space<vmem>>, vector<12x1x4xbf16>,
    %cst_2 = arith.constant 0.000000e+00 : bf16
    %2 = vector.broadcast %cst_2 : bf16 to vector<12x1x4xbf16>
    %c0_3 = arith.constant 0 : index
    %c17 = arith.constant 17 : index
    %c0_4 = arith.constant 0 : index
    %3 = vector.load %arg10[%c0_3, %c17, %c0_4] : memref<12x18x4xbf16, #tpu.memory_space<vmem>>, vector<12x1x4xbf16>
    tpu.vector_store %arg10[%c0_3, %c17, %c0_4], %2 {strides = array<i32>} : memref<12x18x4xbf16, #tpu.memory_space<vmem>>, vector<12x1x4xbf16>,
    %c0_5 = arith.constant 0 : index
    %c0_6 = arith.constant 0 : index
    %c0_7 = arith.constant 0 : index
    %c0_8 = arith.constant 0 : index
    %4 = vector.load %arg3[%c0_5, %c0_6, %c0_7, %c0_8] : memref<1x8x16x4xf32, #tpu.memory_space<vmem>>, vector<1x8x16x4xf32>
    %5 = vector.shape_cast %4 : vector<1x8x16x4xf32> to vector<8x16x4xf32>
    %6 = arith.truncf %5 : vector<8x16x4xf32> to vector<8x16x4xbf16>
    %c2 = arith.constant 2 : index
    %c1 = arith.constant 1 : index
    %c0_9 = arith.constant 0 : index
    %7 = vector.load %arg10[%c2, %c1, %c0_9] : memref<12x18x4xbf16, #tpu.memory_space<vmem>>, vector<8x16x4xbf16>
    tpu.vector_store %arg10[%c2, %c1, %c0_9], %6 {strides = array<i32>} : memref<12x18x4xbf16, #tpu.memory_space<vmem>>, vector<8x16x4xbf16>,
    %c0_i32 = arith.constant 0 : i32
    %8 = arith.cmpi sgt, %arg1, %c0_i32 : i32
    %9 = arith.extui %8 : i1 to i32
    %c0_i32_10 = arith.constant 0 : i32
    %10 = arith.cmpi ne, %9, %c0_i32_10 : i32
    scf.if %10 {
      %c0_101 = arith.constant 0 : index
      %c0_102 = arith.constant 0 : index
      %c0_103 = arith.constant 0 : index
      %c0_104 = arith.constant 0 : index
      %72 = vector.load %arg2[%c0_101, %c0_102, %c0_103, %c0_104] : memref<1x2x16x4xf32, #tpu.memory_space<vmem>>, vector<1x2x16x4xf32>
      %73 = vector.shape_cast %72 : vector<1x2x16x4xf32> to vector<2x16x4xf32>
      %74 = arith.truncf %73 : vector<2x16x4xf32> to vector<2x16x4xbf16>
      %c0_105 = arith.constant 0 : index
      %c1_106 = arith.constant 1 : index
      %c0_107 = arith.constant 0 : index
      %75 = vector.load %arg10[%c0_105, %c1_106, %c0_107] : memref<12x18x4xbf16, #tpu.memory_space<vmem>>, vector<2x16x4xbf16>
      tpu.vector_store %arg10[%c0_105, %c1_106, %c0_107], %74 {strides = array<i32>} : memref<12x18x4xbf16, #tpu.memory_space<vmem>>, vector<2x16x4xbf16>,
    } else {
    }
    %c0_i32_11 = arith.constant 0 : i32
    %11 = arith.cmpi eq, %arg1, %c0_i32_11 : i32
    %12 = arith.extui %11 : i1 to i32
    %c0_i32_12 = arith.constant 0 : i32
    %13 = arith.cmpi ne, %12, %c0_i32_12 : i32
    scf.if %13 {
      %cst_101 = arith.constant 0.000000e+00 : bf16
      %72 = vector.broadcast %cst_101 : bf16 to vector<2x16x4xbf16>
      %c0_102 = arith.constant 0 : index
      %c1_103 = arith.constant 1 : index
      %c0_104 = arith.constant 0 : index
      %73 = vector.load %arg10[%c0_102, %c1_103, %c0_104] : memref<12x18x4xbf16, #tpu.memory_space<vmem>>, vector<2x16x4xbf16>
      tpu.vector_store %arg10[%c0_102, %c1_103, %c0_104], %72 {strides = array<i32>} : memref<12x18x4xbf16, #tpu.memory_space<vmem>>, vector<2x16x4xbf16>,
    } else {
    }
    %c1_i32 = arith.constant 1 : i32
    %14 = arith.cmpi slt, %arg1, %c1_i32 : i32
    %15 = arith.extui %14 : i1 to i32
    %c0_i32_13 = arith.constant 0 : i32
    %16 = arith.cmpi ne, %15, %c0_i32_13 : i32
    scf.if %16 {
      %c0_101 = arith.constant 0 : index
      %c0_102 = arith.constant 0 : index
      %c0_103 = arith.constant 0 : index
      %c0_104 = arith.constant 0 : index
      %72 = vector.load %arg4[%c0_101, %c0_102, %c0_103, %c0_104] : memref<1x2x16x4xf32, #tpu.memory_space<vmem>>, vector<1x2x16x4xf32>
      %73 = vector.shape_cast %72 : vector<1x2x16x4xf32> to vector<2x16x4xf32>
      %74 = arith.truncf %73 : vector<2x16x4xf32> to vector<2x16x4xbf16>
      %c10 = arith.constant 10 : index
      %c1_105 = arith.constant 1 : index
      %c0_106 = arith.constant 0 : index
      %75 = vector.load %arg10[%c10, %c1_105, %c0_106] : memref<12x18x4xbf16, #tpu.memory_space<vmem>>, vector<2x16x4xbf16>
      tpu.vector_store %arg10[%c10, %c1_105, %c0_106], %74 {strides = array<i32>} : memref<12x18x4xbf16, #tpu.memory_space<vmem>>, vector<2x16x4xbf16>,
    } else {
    }
    %c1_i32_14 = arith.constant 1 : i32
    %17 = arith.cmpi eq, %arg1, %c1_i32_14 : i32
    %18 = arith.extui %17 : i1 to i32
    %c0_i32_15 = arith.constant 0 : i32
    %19 = arith.cmpi ne, %18, %c0_i32_15 : i32
    scf.if %19 {
      %cst_101 = arith.constant 0.000000e+00 : bf16
      %72 = vector.broadcast %cst_101 : bf16 to vector<2x16x4xbf16>
      %c10 = arith.constant 10 : index
      %c1_102 = arith.constant 1 : index
      %c0_103 = arith.constant 0 : index
      %73 = vector.load %arg10[%c10, %c1_102, %c0_103] : memref<12x18x4xbf16, #tpu.memory_space<vmem>>, vector<2x16x4xbf16>
      tpu.vector_store %arg10[%c10, %c1_102, %c0_103], %72 {strides = array<i32>} : memref<12x18x4xbf16, #tpu.memory_space<vmem>>, vector<2x16x4xbf16>,
    } else {
    }
    %c0_16 = arith.constant 0 : index
    %c0_17 = arith.constant 0 : index
    %c0_18 = arith.constant 0 : index
    %20 = vector.load %arg10[%c0_16, %c0_17, %c0_18] : memref<12x18x4xbf16, #tpu.memory_space<vmem>>, vector<10x16x4xbf16>
    %c0_19 = arith.constant 0 : index
    %c1_20 = arith.constant 1 : index
    %c0_21 = arith.constant 0 : index
    %21 = vector.load %arg10[%c0_19, %c1_20, %c0_21] : memref<12x18x4xbf16, #tpu.memory_space<vmem>>, vector<10x16x4xbf16>
    %c0_22 = arith.constant 0 : index
    %c2_23 = arith.constant 2 : index
    %c0_24 = arith.constant 0 : index
    %22 = vector.load %arg10[%c0_22, %c2_23, %c0_24] : memref<12x18x4xbf16, #tpu.memory_space<vmem>>, vector<10x16x4xbf16>
    %c1_25 = arith.constant 1 : index
    %c0_26 = arith.constant 0 : index
    %c0_27 = arith.constant 0 : index
    %23 = vector.load %arg10[%c1_25, %c0_26, %c0_27] : memref<12x18x4xbf16, #tpu.memory_space<vmem>>, vector<10x16x4xbf16>
    %c1_28 = arith.constant 1 : index
    %c1_29 = arith.constant 1 : index
    %c0_30 = arith.constant 0 : index
    %24 = vector.load %arg10[%c1_28, %c1_29, %c0_30] : memref<12x18x4xbf16, #tpu.memory_space<vmem>>, vector<10x16x4xbf16>
    %c1_31 = arith.constant 1 : index
    %c2_32 = arith.constant 2 : index
    %c0_33 = arith.constant 0 : index
    %25 = vector.load %arg10[%c1_31, %c2_32, %c0_33] : memref<12x18x4xbf16, #tpu.memory_space<vmem>>, vector<10x16x4xbf16>
    %c2_34 = arith.constant 2 : index
    %c0_35 = arith.constant 0 : index
    %c0_36 = arith.constant 0 : index
    %26 = vector.load %arg10[%c2_34, %c0_35, %c0_36] : memref<12x18x4xbf16, #tpu.memory_space<vmem>>, vector<10x16x4xbf16>
    %c2_37 = arith.constant 2 : index
    %c1_38 = arith.constant 1 : index
    %c0_39 = arith.constant 0 : index
    %27 = vector.load %arg10[%c2_37, %c1_38, %c0_39] : memref<12x18x4xbf16, #tpu.memory_space<vmem>>, vector<10x16x4xbf16>
    %c2_40 = arith.constant 2 : index
    %c2_41 = arith.constant 2 : index
    %c0_42 = arith.constant 0 : index
    %28 = vector.load %arg10[%c2_40, %c2_41, %c0_42] : memref<12x18x4xbf16, #tpu.memory_space<vmem>>, vector<10x16x4xbf16>
    %29 = tpu.concatenate %20, %21, %22, %23, %24, %25, %26, %27, %28 in 2 : vector<10x16x4xbf16>, vector<10x16x4xbf16>, vector<10x16x4xbf16>, vector<10x16x4xbf16>, vector<10x16x4xbf16>, vector<10x16x4xbf16>, vector<10x16x4xbf16>, vector<10x16x4xbf16>, vector<10x16x4xbf16> -> vector<10x16x36xbf16>
    %30 = vector.shape_cast %29 : vector<10x16x36xbf16> to vector<160x36xbf16>
    %c0_43 = arith.constant 0 : index
    %c0_44 = arith.constant 0 : index
    %31 = vector.load %arg5[%c0_43, %c0_44] : memref<36x8xbf16, #tpu.memory_space<vmem>>, vector<36x8xbf16>
    %cst_45 = arith.constant dense<0.000000e+00> : vector<160x8xf32>
    %32 = tpu.matmul %30, %31, %cst_45 {dimension_numbers = #tpu.dot_dimension_numbers<[1], [0], [0], [1], [0, 0, 1, 1], [], []>} : vector<160x36xbf16>, vector<36x8xbf16>, vector<160x8xf32> -> vector<160x8xf32>
    %c0_46 = arith.constant 0 : index
    %c0_47 = arith.constant 0 : index
    %33 = vector.load %arg6[%c0_46, %c0_47] : memref<1x8xf32, #tpu.memory_space<vmem>>, vector<1x8xf32>
    %34 = vector.broadcast %33 : vector<1x8xf32> to vector<160x8xf32>
    %35 = arith.addf %32, %34 : vector<160x8xf32>
    %cst_48 = arith.constant 0.000000e+00 : f32
    %36 = vector.broadcast %cst_48 : f32 to vector<160x8xf32>
    %37 = arith.maximumf %35, %36 : vector<160x8xf32>
    %cst_49 = arith.constant 0.000000e+00 : bf16
    %38 = vector.broadcast %cst_49 : bf16 to vector<10x1x8xbf16>
    %c0_50 = arith.constant 0 : index
    %c0_51 = arith.constant 0 : index
    %c0_52 = arith.constant 0 : index
    %39 = vector.load %arg11[%c0_50, %c0_51, %c0_52] : memref<10x18x8xbf16, #tpu.memory_space<vmem>>, vector<10x1x8xbf16>
    tpu.vector_store %arg11[%c0_50, %c0_51, %c0_52], %38 {strides = array<i32>} : memref<10x18x8xbf16, #tpu.memory_space<vmem>>, vector<10x1x8xbf16>,
    %cst_53 = arith.constant 0.000000e+00 : bf16
    %40 = vector.broadcast %cst_53 : bf16 to vector<10x1x8xbf16>
    %c0_54 = arith.constant 0 : index
    %c17_55 = arith.constant 17 : index
    %c0_56 = arith.constant 0 : index
    %41 = vector.load %arg11[%c0_54, %c17_55, %c0_56] : memref<10x18x8xbf16, #tpu.memory_space<vmem>>, vector<10x1x8xbf16>
    tpu.vector_store %arg11[%c0_54, %c17_55, %c0_56], %40 {strides = array<i32>} : memref<10x18x8xbf16, #tpu.memory_space<vmem>>, vector<10x1x8xbf16>,
    %42 = vector.shape_cast %37 : vector<160x8xf32> to vector<10x16x8xf32>
    %43 = arith.truncf %42 : vector<10x16x8xf32> to vector<10x16x8xbf16>
    %c0_57 = arith.constant 0 : index
    %c1_58 = arith.constant 1 : index
    %c0_59 = arith.constant 0 : index
    %44 = vector.load %arg11[%c0_57, %c1_58, %c0_59] : memref<10x18x8xbf16, #tpu.memory_space<vmem>>, vector<10x16x8xbf16>
    tpu.vector_store %arg11[%c0_57, %c1_58, %c0_59], %43 {strides = array<i32>} : memref<10x18x8xbf16, #tpu.memory_space<vmem>>, vector<10x16x8xbf16>,
    %c0_i32_60 = arith.constant 0 : i32
    %45 = arith.cmpi eq, %arg1, %c0_i32_60 : i32
    %46 = arith.extui %45 : i1 to i32
    %c0_i32_61 = arith.constant 0 : i32
    %47 = arith.cmpi ne, %46, %c0_i32_61 : i32
    scf.if %47 {
      %cst_101 = arith.constant 0.000000e+00 : bf16
      %72 = vector.broadcast %cst_101 : bf16 to vector<1x16x8xbf16>
      %c0_102 = arith.constant 0 : index
      %c1_103 = arith.constant 1 : index
      %c0_104 = arith.constant 0 : index
      %73 = vector.load %arg11[%c0_102, %c1_103, %c0_104] : memref<10x18x8xbf16, #tpu.memory_space<vmem>>, vector<1x16x8xbf16>
      tpu.vector_store %arg11[%c0_102, %c1_103, %c0_104], %72 {strides = array<i32>} : memref<10x18x8xbf16, #tpu.memory_space<vmem>>, vector<1x16x8xbf16>,
    } else {
    }
    %c1_i32_62 = arith.constant 1 : i32
    %48 = arith.cmpi eq, %arg1, %c1_i32_62 : i32
    %49 = arith.extui %48 : i1 to i32
    %c0_i32_63 = arith.constant 0 : i32
    %50 = arith.cmpi ne, %49, %c0_i32_63 : i32
    scf.if %50 {
      %cst_101 = arith.constant 0.000000e+00 : bf16
      %72 = vector.broadcast %cst_101 : bf16 to vector<1x16x8xbf16>
      %c9 = arith.constant 9 : index
      %c1_102 = arith.constant 1 : index
      %c0_103 = arith.constant 0 : index
      %73 = vector.load %arg11[%c9, %c1_102, %c0_103] : memref<10x18x8xbf16, #tpu.memory_space<vmem>>, vector<1x16x8xbf16>
      tpu.vector_store %arg11[%c9, %c1_102, %c0_103], %72 {strides = array<i32>} : memref<10x18x8xbf16, #tpu.memory_space<vmem>>, vector<1x16x8xbf16>,
    } else {
    }
    %c0_64 = arith.constant 0 : index
    %c0_65 = arith.constant 0 : index
    %c0_66 = arith.constant 0 : index
    %51 = vector.load %arg11[%c0_64, %c0_65, %c0_66] : memref<10x18x8xbf16, #tpu.memory_space<vmem>>, vector<8x16x8xbf16>
    %c0_67 = arith.constant 0 : index
    %c1_68 = arith.constant 1 : index
    %c0_69 = arith.constant 0 : index
    %52 = vector.load %arg11[%c0_67, %c1_68, %c0_69] : memref<10x18x8xbf16, #tpu.memory_space<vmem>>, vector<8x16x8xbf16>
    %c0_70 = arith.constant 0 : index
    %c2_71 = arith.constant 2 : index
    %c0_72 = arith.constant 0 : index
    %53 = vector.load %arg11[%c0_70, %c2_71, %c0_72] : memref<10x18x8xbf16, #tpu.memory_space<vmem>>, vector<8x16x8xbf16>
    %c1_73 = arith.constant 1 : index
    %c0_74 = arith.constant 0 : index
    %c0_75 = arith.constant 0 : index
    %54 = vector.load %arg11[%c1_73, %c0_74, %c0_75] : memref<10x18x8xbf16, #tpu.memory_space<vmem>>, vector<8x16x8xbf16>
    %c1_76 = arith.constant 1 : index
    %c1_77 = arith.constant 1 : index
    %c0_78 = arith.constant 0 : index
    %55 = vector.load %arg11[%c1_76, %c1_77, %c0_78] : memref<10x18x8xbf16, #tpu.memory_space<vmem>>, vector<8x16x8xbf16>
    %c1_79 = arith.constant 1 : index
    %c2_80 = arith.constant 2 : index
    %c0_81 = arith.constant 0 : index
    %56 = vector.load %arg11[%c1_79, %c2_80, %c0_81] : memref<10x18x8xbf16, #tpu.memory_space<vmem>>, vector<8x16x8xbf16>
    %c2_82 = arith.constant 2 : index
    %c0_83 = arith.constant 0 : index
    %c0_84 = arith.constant 0 : index
    %57 = vector.load %arg11[%c2_82, %c0_83, %c0_84] : memref<10x18x8xbf16, #tpu.memory_space<vmem>>, vector<8x16x8xbf16>
    %c2_85 = arith.constant 2 : index
    %c1_86 = arith.constant 1 : index
    %c0_87 = arith.constant 0 : index
    %58 = vector.load %arg11[%c2_85, %c1_86, %c0_87] : memref<10x18x8xbf16, #tpu.memory_space<vmem>>, vector<8x16x8xbf16>
    %c2_88 = arith.constant 2 : index
    %c2_89 = arith.constant 2 : index
    %c0_90 = arith.constant 0 : index
    %59 = vector.load %arg11[%c2_88, %c2_89, %c0_90] : memref<10x18x8xbf16, #tpu.memory_space<vmem>>, vector<8x16x8xbf16>
    %60 = tpu.concatenate %51, %52, %53, %54, %55, %56, %57, %58, %59 in 2 : vector<8x16x8xbf16>, vector<8x16x8xbf16>, vector<8x16x8xbf16>, vector<8x16x8xbf16>, vector<8x16x8xbf16>, vector<8x16x8xbf16>, vector<8x16x8xbf16>, vector<8x16x8xbf16>, vector<8x16x8xbf16> -> vector<8x16x72xbf16>
    %61 = vector.shape_cast %60 : vector<8x16x72xbf16> to vector<128x72xbf16>
    %c0_91 = arith.constant 0 : index
    %c0_92 = arith.constant 0 : index
    %62 = vector.load %arg7[%c0_91, %c0_92] : memref<8x72xbf16, #tpu.memory_space<vmem>>, vector<8x72xbf16>
    %cst_93 = arith.constant dense<0.000000e+00> : vector<8x128xf32>
    %63 = tpu.matmul %62, %61, %cst_93 {dimension_numbers = #tpu.dot_dimension_numbers<[1], [1], [0], [0], [0, 0, 1, 0], [], []>} : vector<8x72xbf16>, vector<128x72xbf16>, vector<8x128xf32> -> vector<8x128xf32>
    %c0_94 = arith.constant 0 : index
    %c0_95 = arith.constant 0 : index
    %64 = vector.load %arg8[%c0_94, %c0_95] : memref<8x1xf32, #tpu.memory_space<vmem>>, vector<8x1xf32>
    %65 = vector.broadcast %64 : vector<8x1xf32> to vector<8x128xf32>
    %66 = arith.addf %63, %65 : vector<8x128xf32>
    %cst_96 = arith.constant 0.000000e+00 : f32
    %67 = vector.broadcast %cst_96 : f32 to vector<8x128xf32>
    %68 = arith.maximumf %66, %67 : vector<8x128xf32>
    %c0_97 = arith.constant 0 : index
    %c0_98 = arith.constant 0 : index
    %c0_99 = arith.constant 0 : index
    %c0_100 = arith.constant 0 : index
    %69 = vector.load %arg9[%c0_97, %c0_98, %c0_99, %c0_100] : memref<1x1x8x128xf32, #tpu.memory_space<vmem>>, vector<1x1x8x128xf32>
    %70 = vector.shape_cast %69 : vector<1x1x8x128xf32> to vector<8x128xf32>
    %71 = vector.shape_cast %68 : vector<8x128xf32> to vector<1x1x8x128xf32>
    tpu.vector_store %arg9[%c0_97, %c0_98, %c0_99, %c0_100], %71 {strides = array<i32>} : memref<1x1x8x128xf32, #tpu.memory_space<vmem>>, vector<1x1x8x128xf32>,
    return
  }
  func.func @transform_0(%arg0: i32, %arg1: i32) -> (i32, i32, i32, i32) {
    %c4_i32 = arith.constant 4 : i32
    %0 = arith.muli %arg1, %c4_i32 : i32
    %c1_i32 = arith.constant 1 : i32
    %1 = arith.subi %0, %c1_i32 : i32
    %c0_i32 = arith.constant 0 : i32
    %2 = arith.maxsi %1, %c0_i32 : i32
    %c0_i32_0 = arith.constant 0 : i32
    %c0_i32_1 = arith.constant 0 : i32
    %c0_i32_2 = arith.constant 0 : i32
    return %arg0, %2, %c0_i32_0, %c0_i32_1 : i32, i32, i32, i32
  }
  func.func @transform_1(%arg0: i32, %arg1: i32) -> (i32, i32, i32, i32) {
    %c0_i32 = arith.constant 0 : i32
    %c0_i32_0 = arith.constant 0 : i32
    %c0_i32_1 = arith.constant 0 : i32
    return %arg0, %arg1, %c0_i32, %c0_i32_0 : i32, i32, i32, i32
  }
  func.func @transform_2(%arg0: i32, %arg1: i32) -> (i32, i32, i32, i32) {
    %c1_i32 = arith.constant 1 : i32
    %0 = arith.addi %arg1, %c1_i32 : i32
    %c4_i32 = arith.constant 4 : i32
    %1 = arith.muli %0, %c4_i32 : i32
    %c7_i32 = arith.constant 7 : i32
    %2 = arith.minsi %1, %c7_i32 : i32
    %c0_i32 = arith.constant 0 : i32
    %c0_i32_0 = arith.constant 0 : i32
    %c0_i32_1 = arith.constant 0 : i32
    return %arg0, %2, %c0_i32, %c0_i32_0 : i32, i32, i32, i32
  }
  func.func @transform_3(%arg0: i32, %arg1: i32) -> (i32, i32) {
    %c0_i32 = arith.constant 0 : i32
    %c0_i32_0 = arith.constant 0 : i32
    %c0_i32_1 = arith.constant 0 : i32
    return %c0_i32, %c0_i32_0 : i32, i32
  }
  func.func @transform_4(%arg0: i32, %arg1: i32) -> (i32, i32) {
    %c0_i32 = arith.constant 0 : i32
    %c0_i32_0 = arith.constant 0 : i32
    %c0_i32_1 = arith.constant 0 : i32
    return %c0_i32, %c0_i32_0 : i32, i32
  }
  func.func @transform_5(%arg0: i32, %arg1: i32) -> (i32, i32) {
    %c0_i32 = arith.constant 0 : i32
    %c0_i32_0 = arith.constant 0 : i32
    %c0_i32_1 = arith.constant 0 : i32
    return %c0_i32, %c0_i32_0 : i32, i32
  }
  func.func @transform_6(%arg0: i32, %arg1: i32) -> (i32, i32) {
    %c0_i32 = arith.constant 0 : i32
    %c0_i32_0 = arith.constant 0 : i32
    %c0_i32_1 = arith.constant 0 : i32
    return %c0_i32, %c0_i32_0 : i32, i32
  }
  func.func @transform_7(%arg0: i32, %arg1: i32) -> (i32, i32, i32, i32) {
    %c0_i32 = arith.constant 0 : i32
    %c0_i32_0 = arith.constant 0 : i32
    %c0_i32_1 = arith.constant 0 : i32
    return %arg0, %arg1, %c0_i32, %c0_i32_0 : i32, i32, i32, i32
  }
}

</mosaic_0001>

<bundles_post_ra>
// kernel: conv_block_forward.1
= control target key start
LH: loop header
LB: loop body
LE: loop exit
PB: predicated region body
PF: predicated region fallthrough
CT: control target
= control target key end

     0   :  { %s4717_s24 = smov 0   ;;  %s4719_s25 = smov 0   ;;  %s5878_s0 = inlined_call_operand.vmem [shape: f32[2,16,16,4], index: 0, kind: input, shape index: {}, may-alias: {0,1,2}]   ;;  %s5879_s1 = inlined_call_operand.vmem [shape: f32[2,16,16,4], index: 1, kind: input, shape index: {}, may-alias: {0,1,2}]   ;;  %s5880_s2 = inlined_call_operand.vmem [shape: f32[2,16,16,4], index: 2, kind: input, shape index: {}, may-alias: {0,1,2}]   ;;  %s5881_s3 = inlined_call_operand.vmem [shape: bf16[36,8], index: 3, kind: input, shape index: {}]   ;;  %s5882_s4 = inlined_call_operand.vmem [shape: f32[1,8], index: 4, kind: input, shape index: {}]   ;;  %s5883_s5 = inlined_call_operand.vmem [shape: bf16[8,72], index: 5, kind: input, shape index: {}]   ;;  %s5884_s6 = inlined_call_operand.vmem [shape: f32[8,1], index: 6, kind: input, shape index: {}]   ;;  %s5885_s7 = inlined_call_operand.vmem [shape: f32[2,2,8,128], index: 7, kind: output, shape index: {}]  }
   0x1   :  { %s4721_s26 = smov 0   ;;  %s4723_s27 = smov 0  }
   0x2   :  { %s4725_s28 = smov 0  }
   0x3 LB: > { %s26_s29 = sadd.s32 1, %s4648_s26  ;;  %s29_s30 = sadd.s32 1, %s4652_s27  ;;  %s4656_s28 = sphi %s4725_s28, %s17_s28   ;;  %s4652_s27 = sphi %s4723_s27, %s5903_s27   ;;  %s4648_s26 = sphi %s4721_s26, %s5902_s26   ;;  %s4644_s25 = sphi %s4719_s25, %s5901_s25   ;;  %s4640_s24 = sphi %s4717_s24, %s5900_s24  }
   0x4   : > { %p27_p0 = scmp.ge.s32.totalorder %s26_s29, 2  ;;  %p4027_p1 = scmp.ge.s32.totalorder %s4656_s28, 1 }
   0x5   : > { %p327_p2 = scmp.lt.s32.totalorder %s4656_s28, 5 }
   0x6   : > { %s5905_s29 = smov (%p27_p0, %s26_s29), 0  ;;  %s5907_s30 = smov (!%p27_p0, %s29_s30), %s4652_s27 }
   0x7   : > { %p328_p3 = pnand %p4027_p1, %p327_p2  ;;  %p31_p4 = scmp.ge.s32.totalorder %s5907_s30, 2 }
   0x8   : > { %vm453_vm0 = vcmask (!%p328_p3), 24576   ;;  %vm454_vm1 = vsmask.f32 (!%p328_p3), 256  ;;  %v462_v0 = vld [vmem:[#allocation2 + $0x18] sm:$0x1] (!%p328_p3)  ;;  %s4028_s8 = sshll.u32 (!%p328_p3), %s4640_s24, 2 }
   0x9   : > { %s5909_s30 = smov (%p31_p4, %s5907_s30), 0  ;;  %331 = sbr.rel (%p328_p3) target bundleno = 1105 (0x451), region = 48 }
   0xa   : > { %vm4754_vm2 = vmand (!%p328_p3), %vm453_vm0, %vm454_vm1  ;;  %v465_v2 = vld [vmem:[#allocation2 + $0x24] sm:$0x1] (!%p328_p3)  ;;  %v468_v3 = vld [vmem:[#allocation2 + $0x30] sm:$0x1] (!%p328_p3)  ;;  %vm492_vm3 = vsmask.f32 (!%p328_p3), 7938 }
   0xb   : > { %v463_v4 = vsel (!%p328_p3), %vm4754_vm2, 0, %v462_v0  ;;  %v466_v5 = vsel (!%p328_p3), %vm4754_vm2, 0, %v465_v2  ;;  %v469_v6 = vsel (!%p328_p3), %vm4754_vm2, 0, %v468_v3  ;;  %v471_v7 = vld [vmem:[#allocation2 + $0x3c] sm:$0x1] (!%p328_p3)  ;;  %s4766_s9 = sadd.s32 (!%p328_p3), 4294967295, %s4028_s8  ;;  %vm4772_vm4 = vmand (!%p328_p3), %vm453_vm0, %vm492_vm3 }
   0xc   : > { %464 = vst [vmem:[#allocation2 + $0x18] sm:$0x1] (!%p328_p3), %v463_v4  ;;  %467 = vst [vmem:[#allocation2 + $0x24] sm:$0x1] (!%p328_p3), %v466_v5  ;;  %v472_v8 = vsel (!%p328_p3), %vm4754_vm2, 0, %v471_v7  ;;  %p397_p5 = scmp.gt.s32.totalorder (!%p328_p3), %s4766_s9, 0 }
   0xd   : > { %470 = vst [vmem:[#allocation2 + $0x30] sm:$0x1] (!%p328_p3), %v469_v6  ;;  %v474_v9 = vld [vmem:[#allocation2 + $0x48] sm:$0x1] (!%p328_p3)  ;;  %v477_v10 = vld [vmem:[#allocation2 + $0x54] sm:$0x1] (!%p328_p3) }
   0xe   : > { %473 = vst [vmem:[#allocation2 + $0x3c] sm:$0x1] (!%p328_p3), %v472_v8  ;;  %v475_v12 = vsel (!%p328_p3), %vm4754_vm2, 0, %v474_v9  ;;  %v478_v13 = vsel (!%p328_p3), %vm4754_vm2, 0, %v477_v10  ;;  %v480_v14 = vld [vmem:[#allocation2 + $0x60] sm:$0x1] (!%p328_p3) }
   0xf   : > { %v483_v15 = vld [vmem:[#allocation2 + $0x6c] sm:$0x1] (!%p328_p3)  ;;  %476 = vst [vmem:[#allocation2 + $0x48] sm:$0x1] (!%p328_p3), %v475_v12  ;;  %479 = vst [vmem:[#allocation2 + $0x54] sm:$0x1] (!%p328_p3), %v478_v13 }
  0x10   : > { %v481_v16 = vsel %vm4754_vm2, 0, %v480_v14  ;;  %v484_v17 = vsel %vm4754_vm2, 0, %v483_v15  ;;  %v500_v18 = vld [vmem:[#allocation2 + $0x20] sm:$0x1]  ;;  %v503_v19 = vld [vmem:[#allocation2 + $0x2c] sm:$0x1] }
  0x11   : > { %482 = vst [vmem:[#allocation2 + $0x60] sm:$0x1] %v481_v16  ;;  %485 = vst [vmem:[#allocation2 + $0x6c] sm:$0x1] %v484_v17  ;;  %v501_v20 = vsel %vm4772_vm4, 0, %v500_v18  ;;  %v504_v21 = vsel %vm4772_vm4, 0, %v503_v19 }
  0x12   : > { %v506_v22 = vld [vmem:[#allocation2 + $0x38] sm:$0x1]  ;;  %v509_v23 = vld [vmem:[#allocation2 + $0x44] sm:$0x1]  ;;  %502 = vst [vmem:[#allocation2 + $0x20] sm:$0x1] %v501_v20 }
  0x13   : > { %505 = vst [vmem:[#allocation2 + $0x2c] sm:$0x1] %v504_v21  ;;  %v507_v24 = vsel %vm4772_vm4, 0, %v506_v22  ;;  %v510_v25 = vsel %vm4772_vm4, 0, %v509_v23  ;;  %v512_v26 = vld [vmem:[#allocation2 + $0x50] sm:$0x1] }
  0x14   : > { %v515_v27 = vld [vmem:[#allocation2 + $0x5c] sm:$0x1]  ;;  %508 = vst [vmem:[#allocation2 + $0x38] sm:$0x1] %v507_v24  ;;  %511 = vst [vmem:[#allocation2 + $0x44] sm:$0x1] %v510_v25 }
  0x15   : > { %v513_v28 = vsel %vm4772_vm4, 0, %v512_v26  ;;  %v516_v29 = vsel %vm4772_vm4, 0, %v515_v27  ;;  %v518_v30 = vld [vmem:[#allocation2 + $0x68] sm:$0x1]  ;;  %v521_v31 = vld [vmem:[#allocation2 + $0x74] sm:$0x1] }
  0x16   : > { %514 = vst [vmem:[#allocation2 + $0x50] sm:$0x1] %v513_v28  ;;  %517 = vst [vmem:[#allocation2 + $0x5c] sm:$0x1] %v516_v29  ;;  %v519_v32 = vsel %vm4772_vm4, 0, %v518_v30  ;;  %v522_v33 = vsel %vm4772_vm4, 0, %v521_v31 }
  0x17   : > { %v456_v34 = vld [vmem:[#allocation2] sm:$0x1]  ;;  %v459_v35 = vld [vmem:[#allocation2 + $0xc] sm:$0x1]  ;;  %520 = vst [vmem:[#allocation2 + $0x68] sm:$0x1] %v519_v32 }
  0x18   : > { %523 = vst [vmem:[#allocation2 + $0x74] sm:$0x1] %v522_v33  ;;  %v457_v36 = vsel %vm4754_vm2, 0, %v456_v34  ;;  %v460_v37 = vsel %vm4754_vm2, 0, %v459_v35  ;;  %v486_v38 = vld [vmem:[#allocation2 + $0x78] sm:$0x1] }
  0x19   : > { %v489_v39 = vld [vmem:[#allocation2 + $0x84] sm:$0x1]  ;;  %458 = vst [vmem:[#allocation2] sm:$0x1] %v457_v36  ;;  %461 = vst [vmem:[#allocation2 + $0xc] sm:$0x1] %v460_v37 }
  0x1a   : > { %v487_v40 = vsel %vm4754_vm2, 0, %v486_v38  ;;  %v490_v41 = vsel %vm4754_vm2, 0, %v489_v39  ;;  %v494_v42 = vld [vmem:[#allocation2 + $0x8] sm:$0x1]  ;;  %v497_v43 = vld [vmem:[#allocation2 + $0x14] sm:$0x1] }
  0x1b   : > { %488 = vst [vmem:[#allocation2 + $0x78] sm:$0x1] %v487_v40  ;;  %491 = vst [vmem:[#allocation2 + $0x84] sm:$0x1] %v490_v41  ;;  %v495_v44 = vsel %vm4772_vm4, 0, %v494_v42  ;;  %v498_v45 = vsel %vm4772_vm4, 0, %v497_v43 }
  0x1c   : > { %v524_v46 = vld [vmem:[#allocation2 + $0x80] sm:$0x1]  ;;  %v527_v47 = vld [vmem:[#allocation2 + $0x8c] sm:$0x1]  ;;  %496 = vst [vmem:[#allocation2 + $0x8] sm:$0x1] %v495_v44 }
  0x1d   : > { %499 = vst [vmem:[#allocation2 + $0x14] sm:$0x1] %v498_v45  ;;  %v525_v48 = vsel %vm4772_vm4, 0, %v524_v46  ;;  %v528_v49 = vsel %vm4772_vm4, 0, %v527_v47  ;;  %s5911_s9 = smov (!%p397_p5, %s4766_s9), 0  ;;  %p400_p6 = scmp.lt.s32.totalorder %s4644_s25, 1 }
  0x1e   : > { %526 = vst [vmem:[#allocation2 + $0x80] sm:$0x1] %v525_v48  ;;  %529 = vst [vmem:[#allocation2 + $0x8c] sm:$0x1] %v528_v49  ;;  %s4034_s10 = sshll.u32 %s4640_s24, 3  ;;  %s4030_s11 = sshll.u32 %s5911_s9, 1 }
  0x1f   : > { %p417_p7 = scmp.lt.s32.totalorder %s4034_s10, 15  ;;  %s5913_s25 = smov (!%p400_p6, %s4644_s25), 1  ;;  %vm757_vm5 = vcmask 27648   ;;  %vm594_vm6 = vsmask.f32 4368 }
  0x20   : > { %p402_p8 = scmp.lt.s32.totalorder %s4030_s11, 15  ;;  %s4279_s12 = sadd.s32 4, %s4028_s8  ;;  %v759_v3 = vld [vmem:[#allocation2 + $0x18] sm:$0xf]  ;;  %v764_v4 = vld [vmem:[#allocation2 + $0x20] sm:$0x1]  ;;  %vm4858_vm7 = vmand %vm757_vm5, %vm492_vm3 }
  0x21   : > { %s4828_s13 = sshll.u32 %s5913_s25, 5  ;;  %p427_p9 = scmp.lt.s32.totalorder %s4279_s12, 7  ;;  %vm4869_vm8 = vmor %vm454_vm1, %vm594_vm6  ;;  %v767_v16 = vld [vmem:[#allocation2 + $0x24] sm:$0xf]  ;;  %v771_v24 = vld [vmem:[#allocation2 + $0x2c] sm:$0x1] }
  0x22   : > { %s5915_s11 = smov (!%p402_p8, %s4030_s11), 15  ;;  %s5917_s10 = smov (!%p417_p7, %s4034_s10), 15  ;;  %v774_v40 = vld [vmem:[#allocation2 + $0x30] sm:$0xf]  ;;  %v778_v44 = vld [vmem:[#allocation2 + $0x38] sm:$0x1] }
  0x23   : > { %s4031_s14 = sshll.u32 %s5915_s11, 1  ;;  %p446_p10 = scmp.lt.s32.totalorder %s4640_s24, 1 }
  0x24   : > { %s406_s15 = sadd.s32 %s4828_s13, %s4031_s14  ;;  %s4035_s16 = sshll.u32 %s5917_s10, 1 }
  0x25   : > { %s4033_s17 = sshll.u32 %s406_s15, 3  ;;  %s421_s18 = sadd.s32 %s4035_s16, %s4828_s13 }
  0x26   : > { %s4836_s21 = scalar_lea.vmem %s5878_s0, %s4033_s17  ;;  %s4037_s22 = sshll.u32 %s421_s18, 3 }
  0x27   : > { %s4841_s9 = scalar_lea.vmem %s5879_s1, %s4037_s22  ;;  %s4043_s10 = sshll.u32 %s5913_s25, 1 }
  0x28   : > { %s5919_s12 = smov (!%p427_p9, %s4279_s12), 7  ;;  %v530_v50 = vld [vmem:[%s4841_s9] sm:$0xff]  ;;  %v531_v51 = vld [vmem:[%s4841_s9 + $0x8] sm:$0xff]  ;;  %v532_v52 = vld [vmem:[%s4841_s9 + $0x10] sm:$0xff]  ;;  %p4061_p12 = scmp.le.s32.totalorder %s4640_s24, 0 }
  0x29   : > { %s447_s11 = scalar_select %p446_p10, %s4640_s24, 1  ;;  %v4280_v53 = vpack.c.bf16 %v530_v50, %v530_v50  ;;  %v4281_v54 = vpack.c.bf16 %v531_v51, %v531_v51  ;;  %v4282_v55 = vpack.c.bf16 %v532_v52, %v532_v52  ;;  %v533_v56 = vld [vmem:[%s4841_s9 + $0x18] sm:$0xff]  ;;  %v534_v57 = vld [vmem:[%s4841_s9 + $0x20] sm:$0xff]  ;;  %v535_v58 = vld [vmem:[%s4841_s9 + $0x28] sm:$0xff] }
  0x2a   : > { %s4039_s14 = sshll.u32 %s5919_s12, 1  ;;  %v4283_v59 = vpack.c.bf16 %v533_v56, %v533_v56  ;;  %v4284_v60 = vpack.c.bf16 %v534_v57, %v534_v57  ;;  %v4854_v61 = vpack.c.bf16 %v535_v58, %v535_v58  ;;  %v536_v29 = vld [vmem:[%s4841_s9 + $0x30] sm:$0xff]  ;;  %v537_v30 = vld [vmem:[%s4841_s9 + $0x38] sm:$0xff]  ;;  %v538_v35 = vld [vmem:[%s4841_s9 + $0x40] sm:$0xff] }
  0x2b   : > { %p432_p11 = scmp.lt.s32.totalorder %s4039_s14, 15  ;;  %s449_s25 = sadd.s32 %s4043_s10, %s447_s11  ;;  %v597_v62 = vshrl.u32 %v4280_v53, 16  ;;  %v600_v63 = vshll.u32 %v4280_v53, 16  ;;  %v605_v0 = vshrl.u32 %v4281_v54, 16  ;;  %v608_v2 = vshll.u32 %v4281_v54, 16  ;;  %v539_v36 = vld [vmem:[%s4841_s9 + $0x48] sm:$0xff] }
  0x2c   : > { %s4044_s15 = sshll.u32 %s449_s25, 3  ;;  %v614_v5 = vshrl.u32 %v4282_v55, 16  ;;  %v617_v6 = vshll.u32 %v4282_v55, 16  ;;  %v622_v7 = vshrl.u32 %v4283_v59, 16  ;;  %v625_v8 = vshll.u32 %v4283_v59, 16  ;;  %v540_v55 = vld [vmem:[%s4841_s9 + $0x50] sm:$0xff] }
  0x2d   : > { %s5921_s14 = smov (!%p432_p11, %s4039_s14), 15  ;;  %v599_v9 = vrot.slane %v597_v62, 7  ;;  %v607_v11 = vrot.slane %v605_v0, 7  ;;  %v631_v12 = vshrl.u32 %v4284_v60, 16  ;;  %v634_v13 = vshll.u32 %v4284_v60, 16  ;;  %s4865_s17 = scalar_lea.vmem %s5885_s7, %s4044_s15  ;;  %v541_v56 = vld [vmem:[%s4841_s9 + $0x58] sm:$0xff] }
  0x2e   : > { %v616_v15 = vrot.slane %v614_v5, 7  ;;  %v624_v17 = vrot.slane %v622_v7, 7  ;;  %v639_v18 = vshrl.u32 %v4854_v61, 16  ;;  %v642_v19 = vshll.u32 %v4854_v61, 16  ;;  %s4040_s18 = sshll.u32 %s5921_s14, 1 }
  0x2f   : > { %v602_v20 = vor.u32 %v600_v63, %v599_v9  ;;  %v603_v21 = vrot.slane %v599_v9, 4  ;;  %v610_v22 = vor.u32 %v608_v2, %v607_v11  ;;  %v612_v23 = vrot.slane %v607_v11, 4  ;;  %s436_s19 = sadd.s32 %s4040_s18, %s4828_s13  ;;  %v781_v2 = vld [vmem:[#allocation2 + $0x3c] sm:$0xf] }
  0x30   : > { %v619_v25 = vor.u32 %v617_v6, %v616_v15  ;;  %v620_v26 = vrot.slane %v616_v15, 4  ;;  %v627_v27 = vor.u32 %v625_v8, %v624_v17  ;;  %v629_v28 = vrot.slane %v624_v17, 4  ;;  %s4042_s20 = sshll.u32 %s436_s19, 3 }
  0x31   : > { %v760_v31 = vsel %vm4858_vm7, %v602_v20, %v759_v3  ;;  %v611_v32 = vsel %vm4869_vm8, %v603_v21, %v610_v22  ;;  %v765_v33 = vsel %vm4754_vm2, %v612_v23, %v764_v4  ;;  %v633_v34 = vrot.slane %v631_v12, 7  ;;  %s4889_s23 = scalar_lea.vmem %s5880_s2, %s4042_s20  ;;  %v785_v3 = vld [vmem:[#allocation2 + $0x44] sm:$0x1]  ;;  %v543_v20 = vld [vmem:[%s4841_s9 + $0x68] sm:$0xff] }
  0x32   : > { %761 = vst [vmem:[#allocation2 + $0x18] sm:$0xf] %v760_v31  ;;  %763 = vst.msk [vmem:[#allocation2 + $0x1c] sm:$0xf] %vm757_vm5, %v611_v32  ;;  %v768_v37 = vsel %vm4858_vm7, %v619_v25, %v767_v16  ;;  %v628_v38 = vsel %vm4869_vm8, %v620_v26, %v627_v27  ;;  %v772_v39 = vsel %vm4754_vm2, %v629_v28, %v771_v24  ;;  %v641_v41 = vrot.slane %v639_v18, 7 }
  0x33   : > { %766 = vst [vmem:[#allocation2 + $0x20] sm:$0x1] %v765_v33  ;;  %769 = vst [vmem:[#allocation2 + $0x24] sm:$0xf] %v768_v37  ;;  %v636_v42 = vor.u32 %v634_v13, %v633_v34  ;;  %v637_v43 = vrot.slane %v633_v34, 4  ;;  %v4286_v45 = vpack.c.bf16 %v536_v29, %v536_v29  ;;  %v4287_v46 = vpack.c.bf16 %v537_v30, %v537_v30 }
  0x34   : > { %770 = vst.msk [vmem:[#allocation2 + $0x28] sm:$0xf] %vm757_vm5, %v628_v38  ;;  %773 = vst [vmem:[#allocation2 + $0x2c] sm:$0x1] %v772_v39  ;;  %v644_v47 = vor.u32 %v642_v19, %v641_v41  ;;  %v646_v48 = vrot.slane %v641_v41, 4  ;;  %v4288_v49 = vpack.c.bf16 %v538_v35, %v538_v35  ;;  %v4289_v50 = vpack.c.bf16 %v539_v36, %v539_v36  ;;  %v542_v19 = vld [vmem:[%s4841_s9 + $0x60] sm:$0xff] }
  0x35   : > { %v775_v51 = vsel %vm4858_vm7, %v636_v42, %v774_v40  ;;  %v648_v52 = vshrl.u32 %v4286_v45, 16  ;;  %v651_v53 = vshll.u32 %v4286_v45, 16  ;;  %v656_v54 = vshrl.u32 %v4287_v46, 16  ;;  %v788_v13 = vld [vmem:[#allocation2 + $0x48] sm:$0xf]  ;;  %v544_v35 = vld [vmem:[%s4841_s9 + $0x70] sm:$0xff] }
  0x36   : > { %776 = vst [vmem:[#allocation2 + $0x30] sm:$0xf] %v775_v51  ;;  %v645_v57 = vsel %vm4869_vm8, %v637_v43, %v644_v47  ;;  %v779_v58 = vsel %vm4754_vm2, %v646_v48, %v778_v44  ;;  %v659_v59 = vshll.u32 %v4287_v46, 16  ;;  %v665_v60 = vshrl.u32 %v4288_v49, 16  ;;  %v792_v24 = vld [vmem:[#allocation2 + $0x50] sm:$0x1] }
  0x37   : > { %777 = vst.msk [vmem:[#allocation2 + $0x34] sm:$0xf] %vm757_vm5, %v645_v57  ;;  %780 = vst [vmem:[#allocation2 + $0x38] sm:$0x1] %v779_v58  ;;  %v650_v61 = vrot.slane %v648_v52, 7  ;;  %v658_v62 = vrot.slane %v656_v54, 7  ;;  %v4290_v6 = vpack.c.bf16 %v540_v55, %v540_v55  ;;  %v4291_v7 = vpack.c.bf16 %v541_v56, %v541_v56 }
  0x38   : > { %v668_v63 = vshll.u32 %v4288_v49, 16  ;;  %v673_v0 = vshrl.u32 %v4289_v50, 16  ;;  %v667_v4 = vrot.slane %v665_v60, 7  ;;  %v676_v5 = vshll.u32 %v4289_v50, 16  ;;  %v795_v30 = vld [vmem:[#allocation2 + $0x54] sm:$0xf] }
  0x39   : > { %v653_v8 = vor.u32 %v651_v53, %v650_v61  ;;  %v654_v9 = vrot.slane %v650_v61, 4  ;;  %v661_v11 = vor.u32 %v659_v59, %v658_v62  ;;  %v663_v12 = vrot.slane %v658_v62, 4  ;;  %v545_v36 = vld [vmem:[%s4841_s9 + $0x78] sm:$0xff]  ;;  %v802_v54 = vld [vmem:[#allocation2 + $0x60] sm:$0xf] }
  0x3a   : > { %v670_v15 = vor.u32 %v668_v63, %v667_v4  ;;  %v671_v16 = vrot.slane %v667_v4, 4  ;;  %v675_v17 = vrot.slane %v673_v0, 7  ;;  %v682_v18 = vshrl.u32 %v4290_v6, 16  ;;  %v799_v46 = vld [vmem:[#allocation2 + $0x5c] sm:$0x1] }
  0x3b   : > { %v782_v21 = vsel %vm4858_vm7, %v653_v8, %v781_v2  ;;  %v662_v22 = vsel %vm4869_vm8, %v654_v9, %v661_v11  ;;  %v786_v23 = vsel %vm4754_vm2, %v663_v12, %v785_v3  ;;  %v685_v25 = vshll.u32 %v4290_v6, 16  ;;  %v806_v63 = vld [vmem:[#allocation2 + $0x68] sm:$0x1]  ;;  %v809_v6 = vld [vmem:[#allocation2 + $0x6c] sm:$0xf] }
  0x3c   : > { %783 = vst [vmem:[#allocation2 + $0x3c] sm:$0xf] %v782_v21  ;;  %784 = vst.msk [vmem:[#allocation2 + $0x40] sm:$0xf] %vm757_vm5, %v662_v22  ;;  %v789_v26 = vsel %vm4858_vm7, %v670_v15, %v788_v13  ;;  %v678_v27 = vor.u32 %v676_v5, %v675_v17  ;;  %v680_v28 = vrot.slane %v675_v17, 4  ;;  %v684_v29 = vrot.slane %v682_v18, 7 }
  0x3d   : > { %787 = vst [vmem:[#allocation2 + $0x44] sm:$0x1] %v786_v23  ;;  %790 = vst [vmem:[#allocation2 + $0x48] sm:$0xf] %v789_v26  ;;  %v690_v31 = vshrl.u32 %v4291_v7, 16  ;;  %v693_v32 = vshll.u32 %v4291_v7, 16  ;;  %v4292_v33 = vpack.c.bf16 %v542_v19, %v542_v19  ;;  %v4293_v34 = vpack.c.bf16 %v543_v20, %v543_v20 }
  0x3e   : > { %v679_v37 = vsel %vm4869_vm8, %v671_v16, %v678_v27  ;;  %v793_v38 = vsel %vm4754_vm2, %v680_v28, %v792_v24  ;;  %v687_v39 = vor.u32 %v685_v25, %v684_v29  ;;  %v688_v40 = vrot.slane %v684_v29, 4  ;;  %v813_v12 = vld [vmem:[#allocation2 + $0x74] sm:$0x1]  ;;  %v820_v19 = vld [vmem:[%s4836_s21] sm:$0xff] (!%p4061_p12)  ;;  %v821_v20 = vld [vmem:[%s4836_s21 + $0x8] sm:$0xff] (!%p4061_p12) }
  0x3f   : > { %791 = vst.msk [vmem:[#allocation2 + $0x4c] sm:$0xf] %vm757_vm5, %v679_v37  ;;  %794 = vst [vmem:[#allocation2 + $0x50] sm:$0x1] %v793_v38  ;;  %v692_v41 = vrot.slane %v690_v31, 7  ;;  %v699_v42 = vshrl.u32 %v4292_v33, 16  ;;  %v4294_v48 = vpack.c.bf16 %v544_v35, %v544_v35  ;;  %v4295_v49 = vpack.c.bf16 %v545_v36, %v545_v36 }
  0x40   : > { %v702_v43 = vshll.u32 %v4292_v33, 16  ;;  %v707_v44 = vshrl.u32 %v4293_v34, 16  ;;  %v796_v45 = vsel %vm4858_vm7, %v687_v39, %v795_v30  ;;  %v710_v47 = vshll.u32 %v4293_v34, 16  ;;  %v822_v23 = vld [vmem:[%s4836_s21 + $0x10] sm:$0xff] (!%p4061_p12)  ;;  %v823_v25 = vld [vmem:[%s4836_s21 + $0x18] sm:$0xff] (!%p4061_p12) }
  0x41   : > { %797 = vst [vmem:[#allocation2 + $0x54] sm:$0xf] %v796_v45  ;;  %v695_v50 = vor.u32 %v693_v32, %v692_v41  ;;  %v697_v51 = vrot.slane %v692_v41, 4  ;;  %v701_v52 = vrot.slane %v699_v42, 7  ;;  %v716_v55 = vshrl.u32 %v4294_v48, 16 }
  0x42   : > { %v709_v53 = vrot.slane %v707_v44, 7  ;;  %v719_v56 = vshll.u32 %v4294_v48, 16  ;;  %v724_v57 = vshrl.u32 %v4295_v49, 16  ;;  %v727_v58 = vshll.u32 %v4295_v49, 16  ;;  %v876_v34 = vld [vmem:[#allocation2] sm:$0xf] (!%p4061_p12) }
  0x43   : > { %v696_v59 = vsel %vm4869_vm8, %v688_v40, %v695_v50  ;;  %v800_v60 = vsel %vm4754_vm2, %v697_v51, %v799_v46  ;;  %v704_v61 = vor.u32 %v702_v43, %v701_v52  ;;  %v705_v62 = vrot.slane %v701_v52, 4  ;;  %v880_v36 = vld [vmem:[#allocation2 + $0x8] sm:$0x1] (!%p4061_p12)  ;;  %v883_v44 = vld [vmem:[#allocation2 + $0xc] sm:$0xf] (!%p4061_p12) }
  0x44   : > { %798 = vst.msk [vmem:[#allocation2 + $0x58] sm:$0xf] %vm757_vm5, %v696_v59  ;;  %801 = vst [vmem:[#allocation2 + $0x5c] sm:$0x1] %v800_v60  ;;  %v712_v0 = vor.u32 %v710_v47, %v709_v53  ;;  %v714_v2 = vrot.slane %v709_v53, 4  ;;  %v718_v3 = vrot.slane %v716_v55, 7  ;;  %v4296_v21 = vpack.c.bf16 (!%p4061_p12), %v820_v19, %v820_v19 }
  0x45   : > { %v726_v4 = vrot.slane %v724_v57, 7  ;;  %v803_v5 = vsel %vm4858_vm7, %v704_v61, %v802_v54  ;;  %819 = sbr.rel (%p4061_p12) target bundleno = 83 (0x53), region = 52  ;;  %v4297_v22 = vpack.c.bf16 (!%p4061_p12), %v821_v20, %v821_v20  ;;  %v4298_v24 = vpack.c.bf16 (!%p4061_p12), %v822_v23, %v822_v23  ;;  %v887_v51 = vld [vmem:[#allocation2 + $0x14] sm:$0x1] (!%p4061_p12) }
  0x46   : > { %804 = vst [vmem:[#allocation2 + $0x60] sm:$0xf] %v803_v5  ;;  %v713_v7 = vsel %vm4869_vm8, %v705_v62, %v712_v0  ;;  %v807_v8 = vsel %vm4754_vm2, %v714_v2, %v806_v63  ;;  %v721_v9 = vor.u32 %v719_v56, %v718_v3  ;;  %v722_v11 = vrot.slane %v718_v3, 4 }
  0x47   : > { %805 = vst.msk [vmem:[#allocation2 + $0x64] sm:$0xf] %vm757_vm5, %v713_v7  ;;  %808 = vst [vmem:[#allocation2 + $0x68] sm:$0x1] %v807_v8  ;;  %v729_v13 = vor.u32 %v727_v58, %v726_v4  ;;  %v731_v15 = vrot.slane %v726_v4, 4  ;;  %v837_v26 = vshrl.u32 (!%p4061_p12), %v4296_v21, 16  ;;  %v4299_v32 = vpack.c.bf16 (!%p4061_p12), %v823_v25, %v823_v25 }
  0x48   : > { %v810_v16 = vsel %vm4858_vm7, %v721_v9, %v809_v6  ;;  %v840_v27 = vshll.u32 (!%p4061_p12), %v4296_v21, 16  ;;  %v845_v28 = vshrl.u32 (!%p4061_p12), %v4297_v22, 16  ;;  %v848_v29 = vshll.u32 (!%p4061_p12), %v4297_v22, 16 }
  0x49   : > { %811 = vst [vmem:[#allocation2 + $0x6c] sm:$0xf] %v810_v16  ;;  %v730_v17 = vsel %vm4869_vm8, %v722_v11, %v729_v13  ;;  %v814_v18 = vsel %vm4754_vm2, %v731_v15, %v813_v12  ;;  %v854_v30 = vshrl.u32 (!%p4061_p12), %v4298_v24, 16  ;;  %v857_v31 = vshll.u32 (!%p4061_p12), %v4298_v24, 16 }
  0x4a   : > { %812 = vst.msk [vmem:[#allocation2 + $0x70] sm:$0xf] %vm757_vm5, %v730_v17  ;;  %815 = vst [vmem:[#allocation2 + $0x74] sm:$0x1] %v814_v18  ;;  %v839_v33 = vrot.slane (!%p4061_p12), %v837_v26, 7  ;;  %v847_v35 = vrot.slane (!%p4061_p12), %v845_v28, 7 }
  0x4b   : > { %v856_v37 = vrot.slane (!%p4061_p12), %v854_v30, 7  ;;  %v862_v38 = vshrl.u32 (!%p4061_p12), %v4299_v32, 16  ;;  %v865_v39 = vshll.u32 (!%p4061_p12), %v4299_v32, 16 }
  0x4c   : > { %v842_v40 = vor.u32 %v840_v27, %v839_v33  ;;  %v843_v41 = vrot.slane %v839_v33, 4  ;;  %v850_v42 = vor.u32 %v848_v29, %v847_v35  ;;  %v852_v43 = vrot.slane %v847_v35, 4 }
  0x4d   : > { %v859_v45 = vor.u32 %v857_v31, %v856_v37  ;;  %v860_v46 = vrot.slane %v856_v37, 4  ;;  %v864_v47 = vrot.slane %v862_v38, 7 }
  0x4e   : > { %v877_v48 = vsel %vm4858_vm7, %v842_v40, %v876_v34  ;;  %v851_v49 = vsel %vm4869_vm8, %v843_v41, %v850_v42  ;;  %v881_v50 = vsel %vm4754_vm2, %v852_v43, %v880_v36 }
  0x4f   : > { %878 = vst [vmem:[#allocation2] sm:$0xf] %v877_v48  ;;  %879 = vst.msk [vmem:[#allocation2 + $0x4] sm:$0xf] %vm757_vm5, %v851_v49  ;;  %v884_v52 = vsel %vm4858_vm7, %v859_v45, %v883_v44  ;;  %v867_v53 = vor.u32 %v865_v39, %v864_v47  ;;  %v869_v54 = vrot.slane %v864_v47, 4 }
  0x50   : > { %882 = vst [vmem:[#allocation2 + $0x8] sm:$0x1] %v881_v50  ;;  %885 = vst [vmem:[#allocation2 + $0xc] sm:$0xf] %v884_v52 }
  0x51   : > { %v868_v55 = vsel %vm4869_vm8, %v860_v46, %v867_v53  ;;  %v888_v56 = vsel %vm4754_vm2, %v869_v54, %v887_v51 }
  0x52   : > { %886 = vst.msk [vmem:[#allocation2 + $0x10] sm:$0xf] %vm757_vm5, %v868_v55  ;;  %889 = vst [vmem:[#allocation2 + $0x14] sm:$0x1] %v888_v56 }
  0x53 PF: > { %p4066_p13 = scmp.ne.s32.totalorder %s4640_s24, 0 }
  0x54   : > { %v4658_v60 = vmov (!%p4066_p13), 0  }
  0x55   : > { %893 = sbr.rel (%p4066_p13) target bundleno = 92 (0x5c), region = 56  ;;  %897 = vst.msk [vmem:[#allocation2 + $0x4] sm:$0xf] (!%p4066_p13), %vm757_vm5, %v4658_v60  ;;  %904 = vst.msk [vmem:[#allocation2 + $0x10] sm:$0xf] (!%p4066_p13), %vm757_vm5, %v4658_v60 }
  0x56   : > { %v894_v57 = vld [vmem:[#allocation2] sm:$0xf] (!%p4066_p13) }
  0x57   : > { %v898_v58 = vld [vmem:[#allocation2 + $0x8] sm:$0x1] (!%p4066_p13)  ;;  %v895_v59 = vsel (!%p4066_p13), %vm4858_vm7, 0, %v894_v57  ;;  %v901_v62 = vld [vmem:[#allocation2 + $0xc] sm:$0xf] (!%p4066_p13) }
  0x58   : > { %v899_v61 = vsel (!%p4066_p13), %vm4754_vm2, 0, %v898_v58  ;;  %896 = vst [vmem:[#allocation2] sm:$0xf] (!%p4066_p13), %v895_v59  ;;  %v902_v0 = vsel (!%p4066_p13), %vm4858_vm7, 0, %v901_v62 }
  0x59   : > { %v905_v63 = vld [vmem:[#allocation2 + $0x14] sm:$0x1] (!%p4066_p13)  ;;  %900 = vst [vmem:[#allocation2 + $0x8] sm:$0x1] (!%p4066_p13), %v899_v61  ;;  %903 = vst [vmem:[#allocation2 + $0xc] sm:$0xf] (!%p4066_p13), %v902_v0 }
  0x5a   : > { %v906_v2 = vsel (!%p4066_p13), %vm4754_vm2, 0, %v905_v63 }
  0x5b   : > { %907 = vst [vmem:[#allocation2 + $0x14] sm:$0x1] (!%p4066_p13), %v906_v2 }
  0x5c PF: > { %p4067_p0 = scmp.ge.s32.totalorder %s4640_s24, 1 }
  0x5d   : > { %v912_v3 = vld [vmem:[%s4889_s23] sm:$0xff] (!%p4067_p0)  ;;  %v913_v4 = vld [vmem:[%s4889_s23 + $0x8] sm:$0xff] (!%p4067_p0)  ;;  %v914_v7 = vld [vmem:[%s4889_s23 + $0x10] sm:$0xff] (!%p4067_p0) }
  0x5e   : > { %911 = sbr.rel (%p4067_p0) target bundleno = 106 (0x6a), region = 60  ;;  %v4300_v5 = vpack.c.bf16 (!%p4067_p0), %v912_v3, %v912_v3  ;;  %v4301_v6 = vpack.c.bf16 (!%p4067_p0), %v913_v4, %v913_v4  ;;  %v4302_v8 = vpack.c.bf16 (!%p4067_p0), %v914_v7, %v914_v7  ;;  %v915_v9 = vld [vmem:[%s4889_s23 + $0x18] sm:$0xff] (!%p4067_p0)  ;;  %v973_v22 = vld [vmem:[#allocation2 + $0x80] sm:$0x1] (!%p4067_p0)  ;;  %v976_v30 = vld [vmem:[#allocation2 + $0x84] sm:$0xf] (!%p4067_p0) }
  0x5f   : > { %v4303_v18 = vpack.c.bf16 (!%p4067_p0), %v915_v9, %v915_v9  ;;  %v969_v20 = vld [vmem:[#allocation2 + $0x78] sm:$0xf] (!%p4067_p0)  ;;  %v980_v37 = vld [vmem:[#allocation2 + $0x8c] sm:$0x1] (!%p4067_p0) }
  0x60   : > { %v929_v11 = vshrl.u32 (!%p4067_p0), %v4300_v5, 16  ;;  %v932_v12 = vshll.u32 (!%p4067_p0), %v4300_v5, 16  ;;  %v937_v13 = vshrl.u32 (!%p4067_p0), %v4301_v6, 16  ;;  %v940_v15 = vshll.u32 (!%p4067_p0), %v4301_v6, 16 }
  0x61   : > { %v946_v16 = vshrl.u32 (!%p4067_p0), %v4302_v8, 16  ;;  %v949_v17 = vshll.u32 (!%p4067_p0), %v4302_v8, 16  ;;  %v954_v24 = vshrl.u32 (!%p4067_p0), %v4303_v18, 16  ;;  %v957_v25 = vshll.u32 (!%p4067_p0), %v4303_v18, 16 }
  0x62   : > { %v931_v19 = vrot.slane (!%p4067_p0), %v929_v11, 7  ;;  %v939_v21 = vrot.slane (!%p4067_p0), %v937_v13, 7 }
  0x63   : > { %v948_v23 = vrot.slane (!%p4067_p0), %v946_v16, 7  ;;  %v956_v33 = vrot.slane (!%p4067_p0), %v954_v24, 7 }
  0x64   : > { %v934_v26 = vor.u32 (!%p4067_p0), %v932_v12, %v931_v19  ;;  %v935_v27 = vrot.slane (!%p4067_p0), %v931_v19, 4  ;;  %v942_v28 = vor.u32 (!%p4067_p0), %v940_v15, %v939_v21  ;;  %v944_v29 = vrot.slane (!%p4067_p0), %v939_v21, 4 }
  0x65   : > { %v951_v31 = vor.u32 %v949_v17, %v948_v23  ;;  %v952_v32 = vrot.slane %v948_v23, 4  ;;  %v959_v39 = vor.u32 %v957_v25, %v956_v33  ;;  %v961_v40 = vrot.slane %v956_v33, 4 }
  0x66   : > { %v970_v34 = vsel %vm4858_vm7, %v934_v26, %v969_v20  ;;  %v943_v35 = vsel %vm4869_vm8, %v935_v27, %v942_v28  ;;  %v974_v36 = vsel %vm4754_vm2, %v944_v29, %v973_v22 }
  0x67   : > { %971 = vst [vmem:[#allocation2 + $0x78] sm:$0xf] %v970_v34  ;;  %972 = vst.msk [vmem:[#allocation2 + $0x7c] sm:$0xf] %vm757_vm5, %v943_v35  ;;  %v977_v38 = vsel %vm4858_vm7, %v951_v31, %v976_v30  ;;  %v960_v41 = vsel %vm4869_vm8, %v952_v32, %v959_v39  ;;  %v981_v42 = vsel %vm4754_vm2, %v961_v40, %v980_v37 }
  0x68   : > { %975 = vst [vmem:[#allocation2 + $0x80] sm:$0x1] %v974_v36  ;;  %978 = vst [vmem:[#allocation2 + $0x84] sm:$0xf] %v977_v38 }
  0x69   : > { %979 = vst.msk [vmem:[#allocation2 + $0x88] sm:$0xf] %vm757_vm5, %v960_v41  ;;  %982 = vst [vmem:[#allocation2 + $0x8c] sm:$0x1] %v981_v42 }
  0x6a PF: > { %p4072_p1 = scmp.ne.s32.totalorder %s4640_s24, 1 }
  0x6b   : > { %v4659_v46 = vmov (!%p4072_p1), 0  }
  0x6c   : > { %986 = sbr.rel (%p4072_p1) target bundleno = 115 (0x73), region = 64  ;;  %991 = vst.msk [vmem:[#allocation2 + $0x7c] sm:$0xf] (!%p4072_p1), %vm757_vm5, %v4659_v46  ;;  %998 = vst.msk [vmem:[#allocation2 + $0x88] sm:$0xf] (!%p4072_p1), %vm757_vm5, %v4659_v46 }
  0x6e   : > { %v988_v43 = vld [vmem:[#allocation2 + $0x78] sm:$0xf] (!%p4072_p1) }
  0x6f   : > { %v992_v44 = vld [vmem:[#allocation2 + $0x80] sm:$0x1] (!%p4072_p1)  ;;  %v989_v45 = vsel (!%p4072_p1), %vm4858_vm7, 0, %v988_v43  ;;  %v995_v48 = vld [vmem:[#allocation2 + $0x84] sm:$0xf] (!%p4072_p1) }
  0x70   : > { %v993_v47 = vsel (!%p4072_p1), %vm4754_vm2, 0, %v992_v44  ;;  %v999_v49 = vld [vmem:[#allocation2 + $0x8c] sm:$0x1] (!%p4072_p1)  ;;  %990 = vst [vmem:[#allocation2 + $0x78] sm:$0xf] (!%p4072_p1), %v989_v45  ;;  %v996_v50 = vsel (!%p4072_p1), %vm4858_vm7, 0, %v995_v48 }
  0x71   : > { %994 = vst [vmem:[#allocation2 + $0x80] sm:$0x1] (!%p4072_p1), %v993_v47  ;;  %v1000_v51 = vsel (!%p4072_p1), %vm4754_vm2, 0, %v999_v49  ;;  %997 = vst [vmem:[#allocation2 + $0x84] sm:$0xf] (!%p4072_p1), %v996_v50 }
  0x72   : > { %1001 = vst [vmem:[#allocation2 + $0x8c] sm:$0x1] (!%p4072_p1), %v1000_v51 }
  0x73 PF: > { %v1043_v52 = vld [vmem:[#allocation2 + $0xc] sm:$0xf]  ;;  %v5011_v53 = vld [vmem:[#allocation2 + $0x10] sm:$0xf]  ;;  %v1003_v55 = vld [vmem:[#allocation2 + $0x4] sm:$0xf] }
  0x74   : > { %v5014_v54 = vcombine.low %v1043_v52, %v5011_v53  ;;  %v1032_v56 = vld [vmem:[#allocation2] sm:$0xe]  ;;  %v4454_v57 = vld [vmem:[#allocation2 + $0x8] ss:$0 sps:$4 sm:$0x11]   ;;  %s4660_s21 = smov 12  }
  0x75   : > { %v4093_v10 = vcombine.low %v1032_v56, %v1003_v55  ;;  %vm1374_vm9 = vcmask 1046528   ;;  %v1002_v1 = vld [vmem:[#allocation2] sm:$0xf]  ;;  %v1004_v58 = vld [vmem:[#allocation2 + $0xc] sm:$0xf]  ;;  %v1376_v59 = vrot.slane %v4454_v57, 1 }
  0x76   : > { %1475 = vrot.lane.b32.xlu0 %v5014_v54, %s4660_s21  ;;  %v5018_v60 = vcombine.low %v1002_v1, %v1003_v55  ;;  %v1005_v61 = vld [vmem:[#allocation2 + $0x10] sm:$0xf]  ;;  %v1212_v62 = vshll.u32 %v4454_v57, 16  ;;  %v1033_v0 = vld [vmem:[#allocation2 + $0xc] sm:$0xe]  ;;  %v1528_v4 = vshll.u32 %v5014_v54, 16 }
  0x77   : > { %v1375_v63 = vrot.slane %v4093_v10, 1  ;;  %v5020_v2 = vcombine.low %v1004_v58, %v1005_v61  ;;  %v4458_v3 = vld [vmem:[#allocation2 + $0x14] ss:$0 sps:$4 sm:$0x11]   ;;  %v4094_v5 = vcombine.low %v1033_v0, %v1005_v61  ;;  %v1045_v8 = vld [vmem:[#allocation2 + $0x18] sm:$0xf] }
  0x78   : > { %v1205_v6 = vshrl.u32 %v5018_v60, 16  ;;  %v1207_v7 = vshll.u32 %v5018_v60, 16  ;;  %v1379_v11 = vrot.slane %v4458_v3, 1  ;;  %vm1203_vm10 = vsmask.f32 7424  ;;  %s4661_s8 = smov 8  }
  0x79   : > { %v1377_v9 = vsel %vm1374_vm9, %v1375_v63, %v1376_v59  ;;  %v1214_v12 = vrot.slane %v1212_v62, 1  ;;  %v1046_v13 = vld [vmem:[#allocation2 + $0x1c] sm:$0xf]  ;;  %v1073_v15 = vld [vmem:[#allocation2 + $0xc] sm:$0xe]  ;;  %v1378_v16 = vrot.slane %v4094_v5, 1 }
  0x7a   : > { %1405 = vrot.lane.b32.xlu1 %v1377_v9, %s4661_s8  ;;  %v1209_v17 = vrot.slane %v1207_v7, 1  ;;  %v1074_v18 = vld [vmem:[#allocation2 + $0x18] sm:$0xe]  ;;  %v4104_v19 = vcombine.low %v1045_v8, %v1046_v13  ;;  %v1217_v20 = vshrl.u32 %v5020_v2, 16  ;;  %v1219_v21 = vshll.u32 %v5020_v2, 16  ;;  %s4662_s9 = smov 4  }
  0x7b   : > { %v1224_v22 = vshll.u32 %v4458_v3, 16  ;;  %v4462_v23 = vld [vmem:[#allocation2 + $0x20] ss:$0 sps:$4 sm:$0x11]   ;;  %v1380_v24 = vsel %vm1374_vm9, %v1378_v16, %v1379_v11  ;;  %v1085_v28 = vld [vmem:[#allocation2 + $0x24] sm:$0xf]  ;;  %v4124_v29 = vcombine.low %v1074_v18, %v1046_v13  ;;  %v4123_v39 = vcombine.low %v1073_v15, %v5011_v53 }
  0x7c   : > { %v1210_v25 = vor.u32 %v1209_v17, %v1205_v6  ;;  %v1540_v26 = vshll.u32 %v4104_v19, 16  ;;  %v1538_v27 = vshrl.u32 %v4104_v19, 16  ;;  %v1221_v30 = vrot.slane %v1219_v21, 1  ;;  %v4463_v33 = vld [vmem:[#allocation2 + $0x14] ss:$0 sps:$4 sm:$0x11]  }
  0x7d   : > { %v1226_v31 = vrot.slane %v1224_v22, 1  ;;  %v1545_v32 = vshll.u32 %v4462_v23, 16  ;;  %v1526_v36 = vshrl.u32 %v5014_v54, 16  ;;  %v1530_v37 = vrot.slane %v1528_v4, 1  ;;  %v5033_v38 = vld [vmem:[#allocation2 + $0x28] sm:$0xf] }
  0x7e   : > { %1407 = vrot.lane.b32.xlu1 %v1380_v24, %s4661_s8  ;;  %v1215_v34 = vsel %vm1203_vm10, %v1210_v25, %v1214_v12  ;;  %v1542_v35 = vrot.slane %v1540_v26, 1  ;;  %v1222_v40 = vor.u32 %v1221_v30, %v1217_v20  ;;  %v1533_v42 = vshll.u32 %v4463_v33, 16  ;;  %v1083_v45 = vld [vmem:[#allocation2 + $0x18] sm:$0xf]  ;;  %v1084_v46 = vld [vmem:[#allocation2 + $0x1c] sm:$0xf] }
  0x7f   : > { %1324 = vrot.lane.b32.xlu0 %v1215_v34, %s4662_s9  ;;  %v1547_v41 = vrot.slane %v1545_v32, 1  ;;  %v1531_v44 = vor.u32 %v1530_v37, %v1526_v36  ;;  %v1698_v49 = vrot.slane %v4124_v29, 1  ;;  %v4134_v50 = vcombine.low %v1085_v28, %v5033_v38  ;;  %v5040_v53 = vld [vmem:[#allocation2 + $0x2c] ss:$0 sps:$4 sm:$0x11]   ;;  %v4530_v0 = vld [vmem:[%s5881_s3] sm:$0xff]  }
  0x80   : > { %v1543_v43 = vor.u32 %v1542_v35, %v1538_v27  ;;  %v1227_v47 = vsel %vm1203_vm10, %v1222_v40, %v1226_v31  ;;  %v1535_v48 = vrot.slane %v1533_v42, 1  ;;  %v1699_v51 = vrot.slane %v4462_v23, 1  ;;  %v1006_v10 = vld [vmem:[#allocation2 + $0x18] sm:$0xf]  ;;  %v5047_v61 = vld [vmem:[#allocation2 + $0x1c] sm:$0xf]  ;;  %4346 = vmatprep.subr.bf16.mxu0 %v4530_v0 }
  0x81   : > { %v4133_v52 = vcombine.low %v1083_v45, %v1084_v46  ;;  %v1695_v55 = vrot.slane %v4123_v39, 1  ;;  %v1696_v56 = vrot.slane %v4463_v33, 1  ;;  %v1860_v57 = vshll.u32 %v4134_v50, 16  ;;  %v5045_v59 = vld [vmem:[#allocation2 + $0x20] ss:$0 sps:$4 sm:$0x11]   ;;  %4347 = vmatpush3.bf16.msra.mxu0 %v4530_v0 }
  0x82   : > { %1477 = vrot.lane.b32.xlu1 %v4104_v19, %s4660_s21  ;;  %v1548_v54 = vsel %vm1203_vm10, %v1543_v43, %v1547_v41  ;;  %v1536_v1 = vsel %vm1203_vm10, %v1531_v44, %v1535_v48  ;;  %v1113_v62 = vld [vmem:[#allocation2 + $0x18] sm:$0xe]  ;;  %v5050_v63 = vcombine.low %v1006_v10, %v5047_v61  ;;  %s4663_s14 = smov 16   ;;  %v1858_v3 = vshrl.u32 %v4134_v50, 16  ;;  %v1008_v11 = vld [vmem:[#allocation2 + $0x24] sm:$0xf] }
  0x83   : > { %1326 = vrot.lane.b32.xlu0 %v1227_v47, %s4662_s9  ;;  %v1848_v58 = vshll.u32 %v4133_v52, 16  ;;  %v1862_v4 = vrot.slane %v1860_v57, 1  ;;  %v1865_v5 = vshll.u32 %v5040_v53, 16  ;;  %v5057_v6 = vld [vmem:[#allocation2 + $0x20] ss:$0 sps:$4 sm:$0x11]   ;;  %v1700_v7 = vsel %vm1374_vm9, %v1698_v49, %v1699_v51 }
  0x84   : > { %v1846_v8 = vshrl.u32 %v4133_v52, 16  ;;  %v1231_v9 = vshll.u32 %v5050_v63, 16  ;;  %v4535_v12 = vld [vmem:[%s5881_s3 + $0x8] sm:$0xff]   ;;  %v1697_v13 = vsel %vm1374_vm9, %v1695_v55, %v1696_v56  ;;  %v1853_v16 = vshll.u32 %v5045_v59, 16  ;;  %s4664_s12 = smov 20   ;;  %s4665_s16 = smov 24  }
  0x85   : > { %v1850_v15 = vrot.slane %v1848_v58, 1  ;;  %v1009_v17 = vld [vmem:[#allocation2 + $0x28] sm:$0xf]  ;;  %4348 = vmatprep.subr.bf16.mxu0 %v4535_v12  ;;  %v4153_v19 = vcombine.low %v1113_v62, %v1084_v46  ;;  %v1863_v20 = vor.u32 %v1862_v4, %v1858_v3  ;;  %v1867_v21 = vrot.slane %v1865_v5, 1  ;;  %v1114_v29 = vld [vmem:[#allocation2 + $0x24] sm:$0xe] }
  0x86   : > { %1647 = vrot.lane.b32.xlu1 %v1548_v54, %s4663_s14  ;;  %v5067_v18 = vcombine.low %v1008_v11, %v1009_v17  ;;  %v1236_v22 = vshll.u32 %v5057_v6, 16  ;;  %v1229_v23 = vshrl.u32 %v5050_v63, 16  ;;  %v1233_v24 = vrot.slane %v1231_v9, 1  ;;  %v4473_v25 = vld [vmem:[#allocation2 + $0x2c] ss:$0 sps:$4 sm:$0x11]   ;;  %4349 = vmatpush3.bf16.msra.mxu0 %v4535_v12 }
  0x87   : > { %1645 = vrot.lane.b32.xlu0 %v1536_v1, %s4663_s14  ;;  %v1851_v27 = vor.u32 %v1850_v15, %v1846_v8  ;;  %v1855_v28 = vrot.slane %v1853_v16, 1  ;;  %v1868_v30 = vsel %vm1203_vm10, %v1863_v20, %v1867_v21  ;;  %v2015_v32 = vrot.slane %v4153_v19, 1  ;;  %v1035_v39 = vld [vmem:[#allocation2 + $0x24] sm:$0xe]  ;;  %v1049_v42 = vld [vmem:[#allocation2 + $0x30] sm:$0xf] }
  0x88   : > { %v1243_v26 = vshll.u32 %v5067_v18, 16  ;;  %v1238_v31 = vrot.slane %v1236_v22, 1  ;;  %v2016_v33 = vrot.slane %v5045_v59, 1  ;;  %v1234_v34 = vor.u32 %v1233_v24, %v1229_v23  ;;  %v1050_v43 = vld [vmem:[#allocation2 + $0x34] sm:$0xf]  ;;  %s4666_s18 = smov 28  }
  0x89   : > { %v1241_v35 = vshrl.u32 %v5067_v18, 16  ;;  %v1248_v37 = vshll.u32 %v4473_v25, 16  ;;  %v4154_v40 = vcombine.low %v1114_v29, %v5033_v38  ;;  %v1856_v41 = vsel %vm1203_vm10, %v1851_v27, %v1855_v28  ;;  %v1034_v44 = vld [vmem:[#allocation2 + $0x18] sm:$0xe]  ;;  %v1047_v45 = vld [vmem:[#allocation2 + $0x24] sm:$0xf] }
  0x8a   : > { %1727 = vrot.lane.b32.xlu1 %v1700_v7, %s4664_s12  ;;  %v1245_v36 = vrot.slane %v1243_v26, 1  ;;  %v1048_v46 = vld [vmem:[#allocation2 + $0x28] sm:$0xf]  ;;  %v2017_v47 = vsel %vm1374_vm9, %v2015_v32, %v2016_v33  ;;  %v4096_v48 = vcombine.low %v1035_v39, %v1009_v17  ;;  %v1239_v49 = vsel %vm1203_vm10, %v1234_v34, %v1238_v31  ;;  %s4667_s19 = smov 32   ;;  %v1075_v5 = vld [vmem:[#allocation2 + $0x24] sm:$0xe] }
  0x8b   : > { %1725 = vrot.lane.b32.xlu0 %v1697_v13, %s4664_s12  ;;  %v1250_v51 = vrot.slane %v1248_v37, 1  ;;  %v4106_v38 = vcombine.low %v1049_v42, %v1050_v43  ;;  %v2019_v54 = vrot.slane %v5040_v53, 1  ;;  %v4095_v55 = vcombine.low %v1034_v44, %v5047_v61  ;;  %v4480_v59 = vld [vmem:[#allocation2 + $0x38] ss:$0 sps:$4 sm:$0x11]  }
  0x8c   : > { %v4105_v56 = vcombine.low %v1047_v45, %v1048_v46  ;;  %v1384_v10 = vrot.slane %v4096_v48, 1  ;;  %v1385_v1 = vrot.slane %v4473_v25, 1  ;;  %v1382_v3 = vrot.slane %v5057_v6, 1  ;;  %v4481_v4 = vld [vmem:[#allocation2 + $0x2c] ss:$0 sps:$4 sm:$0x11]  }
  0x8d   : > { %v1564_v58 = vshll.u32 %v4106_v38, 16  ;;  %v1381_v0 = vrot.slane %v4095_v55, 1  ;;  %v1076_v61 = vld [vmem:[#allocation2 + $0x30] sm:$0xe]  ;;  %v1562_v7 = vshrl.u32 %v4106_v38, 16  ;;  %v1569_v11 = vshll.u32 %v4480_v59, 16 }
  0x8e   : > { %1797 = vrot.lane.b32.xlu1 %v4134_v50, %s4665_s16  ;;  %v1246_v50 = vor.u32 %v1245_v36, %v1241_v35  ;;  %v1552_v53 = vshll.u32 %v4105_v56, 16  ;;  %v1386_v8 = vsel %vm1374_vm9, %v1384_v10, %v1385_v1  ;;  %v1550_v12 = vshrl.u32 %v4105_v56, 16  ;;  %v1089_v13 = vld [vmem:[#allocation2 + $0x3c] sm:$0xf]  ;;  %v5096_v6 = vld [vmem:[#allocation2 + $0x40] sm:$0xf] }
  0x8f   : > { %1795 = vrot.lane.b32.xlu0 %v4133_v52, %s4665_s16  ;;  %v2018_v52 = vrot.slane %v4154_v40, 1  ;;  %v1566_v9 = vrot.slane %v1564_v58, 1  ;;  %v1383_v15 = vsel %vm1374_vm9, %v1381_v0, %v1382_v3  ;;  %v1557_v17 = vshll.u32 %v4481_v4, 16  ;;  %v1087_v19 = vld [vmem:[#allocation2 + $0x30] sm:$0xf] }
  0x90   : > { %v1251_v57 = vsel %vm1203_vm10, %v1246_v50, %v1250_v51  ;;  %v1554_v16 = vrot.slane %v1552_v53, 1  ;;  %v5098_v20 = vld [vmem:[#allocation2 + $0x34] sm:$0xf]  ;;  %v4126_v21 = vcombine.low %v1076_v61, %v1050_v43  ;;  %v4125_v22 = vcombine.low %v1075_v5, %v1048_v46  ;;  %v1010_v29 = vld [vmem:[#allocation2 + $0x30] sm:$0xf] }
  0x91   : > { %v2020_v62 = vsel %vm1374_vm9, %v2018_v52, %v2019_v54  ;;  %v1567_v23 = vor.u32 %v1566_v9, %v1562_v7  ;;  %v1571_v24 = vrot.slane %v1569_v11, 1  ;;  %v4136_v25 = vcombine.low %v1089_v13, %v5096_v6  ;;  %v5106_v31 = vld [vmem:[#allocation2 + $0x44] ss:$0 sps:$4 sm:$0x11]   ;;  %v1012_v43 = vld [vmem:[#allocation2 + $0x3c] sm:$0xf] }
  0x92   : > { %1967 = vrot.lane.b32.xlu1 %v1868_v30, %s4666_s18  ;;  %v1555_v26 = vor.u32 %v1554_v16, %v1550_v12  ;;  %v1559_v27 = vrot.slane %v1557_v17, 1  ;;  %v4135_v28 = vcombine.low %v1087_v19, %v5098_v20  ;;  %v5104_v30 = vld [vmem:[#allocation2 + $0x34] sm:$0xf]  ;;  %v1704_v32 = vrot.slane %v4126_v21, 1  ;;  %v1013_v44 = vld [vmem:[#allocation2 + $0x40] sm:$0xf] }
  0x93   : > { %1965 = vrot.lane.b32.xlu0 %v1856_v41, %s4666_s18  ;;  %v1705_v33 = vrot.slane %v4480_v59, 1  ;;  %v1572_v34 = vsel %vm1203_vm10, %v1567_v23, %v1571_v24  ;;  %v1701_v35 = vrot.slane %v4125_v22, 1  ;;  %v1884_v36 = vshll.u32 %v4136_v25, 16  ;;  %v4487_v37 = vld [vmem:[#allocation2 + $0x38] ss:$0 sps:$4 sm:$0x11]  }
  0x94   : > { %v5112_v39 = vcombine.low %v1010_v29, %v5104_v30  ;;  %v1560_v40 = vsel %vm1203_vm10, %v1555_v26, %v1559_v27  ;;  %v1702_v41 = vrot.slane %v4481_v4, 1  ;;  %v1872_v42 = vshll.u32 %v4135_v28, 16  ;;  %v4491_v0 = vld [vmem:[#allocation2 + $0x44] ss:$0 sps:$4 sm:$0x11]  }
  0x95   : > { %v1706_v45 = vsel %vm1374_vm9, %v1704_v32, %v1705_v33  ;;  %v1889_v46 = vshll.u32 %v5106_v31, 16  ;;  %v1882_v48 = vshrl.u32 %v4136_v25, 16  ;;  %v5122_v51 = vcombine.low %v1012_v43, %v1013_v44  ;;  %v1037_v9 = vld [vmem:[#allocation2 + $0x3c] sm:$0xe]  ;;  %v1053_v11 = vld [vmem:[#allocation2 + $0x48] sm:$0xf] }
  0x96   : > { %1328 = vrot.lane.b32.xlu1 %v1239_v49, %s4662_s9  ;;  %v1886_v49 = vrot.slane %v1884_v36, 1  ;;  %v1255_v50 = vshll.u32 %v5112_v39, 16  ;;  %v1870_v52 = vshrl.u32 %v4135_v28, 16  ;;  %v1874_v54 = vrot.slane %v1872_v42, 1  ;;  %v1054_v17 = vld [vmem:[#allocation2 + $0x4c] sm:$0xf] }
  0x97   : > { %2045 = vrot.lane.b32.xlu0 %v2017_v47, %s4667_s19  ;;  %v5118_v47 = vld [vmem:[#allocation2 + $0x38] ss:$0 sps:$4 sm:$0x11]   ;;  %v1877_v55 = vshll.u32 %v4487_v37, 16  ;;  %v1891_v10 = vrot.slane %v1889_v46, 1  ;;  %v1253_v59 = vshrl.u32 %v5112_v39, 16  ;;  %v4098_v24 = vcombine.low %v1037_v9, %v1013_v44 }
  0x98   : > { %v1260_v1 = vshll.u32 %v5118_v47, 16  ;;  %v1887_v58 = vor.u32 %v1886_v49, %v1882_v48  ;;  %v1267_v3 = vshll.u32 %v5122_v51, 16  ;;  %v1875_v4 = vor.u32 %v1874_v54, %v1870_v52  ;;  %v1051_v22 = vld [vmem:[#allocation2 + $0x3c] sm:$0xf]  ;;  %v1052_v23 = vld [vmem:[#allocation2 + $0x40] sm:$0xf] }
  0x99   : > { %v1879_v61 = vrot.slane %v1877_v55, 1  ;;  %v1272_v16 = vshll.u32 %v4491_v0, 16  ;;  %v2022_v21 = vrot.slane %v4487_v37, 1  ;;  %v2025_v33 = vrot.slane %v5106_v31, 1  ;;  %v5151_v55 = vld [vmem:[#allocation2 + $0x58] sm:$0xf] }
  0x9a   : > { %1330 = vrot.lane.b32.xlu1 %v1251_v57, %s4662_s9  ;;  %v1116_v57 = vld [vmem:[#allocation2 + $0x3c] sm:$0xe]  ;;  %v1262_v7 = vrot.slane %v1260_v1, 1  ;;  %v1892_v12 = vsel %vm1203_vm10, %v1887_v58, %v1891_v10  ;;  %v1390_v36 = vrot.slane %v4098_v24, 1  ;;  %v1391_v37 = vrot.slane %v4491_v0, 1 }
  0x9b   : > { %2047 = vrot.lane.b32.xlu0 %v2020_v62, %s4667_s19  ;;  %v1257_v62 = vrot.slane %v1255_v50, 1  ;;  %v4156_v5 = vcombine.low %v1116_v57, %v5096_v6  ;;  %v1880_v19 = vsel %vm1203_vm10, %v1875_v4, %v1879_v61  ;;  %v1036_v6 = vld [vmem:[#allocation2 + $0x30] sm:$0xe]  ;;  %v4498_v42 = vld [vmem:[#allocation2 + $0x50] ss:$0 sps:$4 sm:$0x11]  }
  0x9c   : > { %v4499_v43 = vld [vmem:[#allocation2 + $0x44] ss:$0 sps:$4 sm:$0x11]   ;;  %v1388_v46 = vrot.slane %v5118_v47, 1  ;;  %v1093_v50 = vld [vmem:[#allocation2 + $0x54] sm:$0xf] }
  0x9d   : > { %v1258_v13 = vor.u32 %v1257_v62, %v1253_v59  ;;  %v2024_v29 = vrot.slane %v4156_v5, 1  ;;  %v1593_v52 = vshll.u32 %v4498_v42, 16  ;;  %v1581_v54 = vshll.u32 %v4499_v43, 16  ;;  %v1077_v57 = vld [vmem:[#allocation2 + $0x3c] sm:$0xe] }
  0x9e   : > { %1411 = vrot.lane.b32.xlu1 %v1386_v8, %s4661_s8  ;;  %v1265_v8 = vshrl.u32 %v5122_v51, 16  ;;  %v1091_v1 = vld [vmem:[#allocation2 + $0x48] sm:$0xf]  ;;  %v1092_v58 = vld [vmem:[#allocation2 + $0x4c] sm:$0xf]  ;;  %v4138_v62 = vcombine.low %v1093_v50, %v5151_v55  ;;  %v4127_v0 = vcombine.low %v1077_v57, %v1052_v23  ;;  %vm2281_vm11 = vcmask 1041408  }
  0x9f   : > { %1409 = vrot.lane.b32.xlu0 %v1383_v15, %s4661_s8  ;;  %v1269_v15 = vrot.slane %v1267_v3, 1  ;;  %v1263_v26 = vsel %vm1203_vm10, %v1258_v13, %v1262_v7  ;;  %v2026_v44 = vsel %vm1374_vm9, %v2024_v29, %v2025_v33  ;;  %v1583_v4 = vrot.slane %v1581_v54, 1  ;;  %v1014_v7 = vld [vmem:[#allocation2 + $0x48] sm:$0xf] }
  0xa0   : > { %v4137_v5 = vcombine.low %v1091_v1, %v1092_v58  ;;  %v5159_v9 = vld [vmem:[#allocation2 + $0x5c] ss:$0 sps:$4 sm:$0x11]   ;;  %v1908_v13 = vshll.u32 %v4138_v62, 16  ;;  %v1117_v24 = vld [vmem:[#allocation2 + $0x48] sm:$0xe] }
  0xa1   : > { %v1270_v27 = vor.u32 %v1269_v15, %v1265_v8  ;;  %v5157_v8 = vld [vmem:[#allocation2 + $0x4c] sm:$0xf]  ;;  %v4538_v57 = vld [vmem:[%s5881_s3 + $0x10] ss:$0 sps:$4 sm:$0x33]   ;;  %vm2065_vm12 = vcmask 31744  }
  0xa2   : > { %1481 = vrot.lane.b32.xlu1 %v4106_v38, %s4660_s21  ;;  %v1703_v38 = vsel %vm1374_vm9, %v1701_v35, %v1702_v41  ;;  %v4107_v35 = vcombine.low %v1051_v22, %v1052_v23  ;;  %v1016_v22 = vld [vmem:[#allocation2 + $0x54] sm:$0xf]  ;;  %v5168_v23 = vld [vmem:[#allocation2 + $0x58] sm:$0xf]  ;;  %4392 = vmatprep.subr.msk.bf16.mxu0 %vm2281_vm11, %v4538_v57  ;;  %vm2086_vm13 = vcmask 64512   ;;  %vm2107_vm14 = vcmask 97280  }
  0xa3   : > { %1479 = vrot.lane.b32.xlu0 %v4105_v56, %s4660_s21  ;;  %v1115_v56 = vld [vmem:[#allocation2 + $0x30] sm:$0xe]  ;;  %v5178_v33 = vcombine.low %v1016_v22, %v5168_v23  ;;  %vm2128_vm15 = vcmask 130048   ;;  %vm2149_vm0 = vcmask 162816   ;;  %vm2170_vm2 = vcmask 195584  }
  0xa4   : > { %v4155_v53 = vcombine.low %v1115_v56, %v5098_v20  ;;  %v1576_v31 = vshll.u32 %v4107_v35, 16  ;;  %v1574_v10 = vshrl.u32 %v4107_v35, 16  ;;  %vm2191_vm4 = vcmask 228352  }
  0xa5   : > { %vm2212_vm5 = vcmask 261120   ;;  %vm2260_vm6 = vcmask 293888   ;;  %vm2418_vm7 = vcmask 57344  }
  0xa6   : > { %1651 = vrot.lane.b32.xlu1 %v1572_v34, %s4663_s14  ;;  %v2021_v20 = vrot.slane %v4155_v53, 1  ;;  %v4097_v34 = vcombine.low %v1036_v6, %v5104_v30  ;;  %v1078_v30 = vld [vmem:[#allocation2 + $0x48] sm:$0xe]  ;;  %v1578_v47 = vrot.slane %v1576_v31, 1  ;;  %v1595_v53 = vrot.slane %v1593_v52, 1 }
  0xa7   : > { %1649 = vrot.lane.b32.xlu0 %v1560_v40, %s4663_s14  ;;  %v4128_v59 = vcombine.low %v1078_v30, %v1054_v17  ;;  %v1896_v6 = vshll.u32 %v4137_v5, 16  ;;  %v1291_v31 = vshll.u32 %v5178_v33, 16 }
  0xa8   : > { %v2023_v32 = vsel %vm1374_vm9, %v2021_v20, %v2022_v21  ;;  %v1579_v61 = vor.u32 %v1578_v47, %v1574_v10  ;;  %v1708_v21 = vrot.slane %v4499_v43, 1 }
  0xa9   : > { %v1293_v47 = vrot.slane %v1291_v31, 1  ;;  %v1096_v31 = vld [vmem:[#allocation2 + $0x64] sm:$0xf] }
  0xaa   : > { %1731 = vrot.lane.b32.xlu1 %v1706_v45, %s4664_s12  ;;  %v1387_v45 = vrot.slane %v4097_v34, 1  ;;  %v1584_v20 = vsel %vm1203_vm10, %v1579_v61, %v1583_v4  ;;  %v1055_v4 = vld [vmem:[#allocation2 + $0x54] sm:$0xf]  ;;  %v1056_v61 = vld [vmem:[#allocation2 + $0x58] sm:$0xf] }
  0xab   : > { %1729 = vrot.lane.b32.xlu0 %v1703_v38, %s4664_s12  ;;  %v1392_v38 = vsel %vm1374_vm9, %v1390_v36, %v1391_v37  ;;  %v1898_v36 = vrot.slane %v1896_v6, 1 }
  0xac   : > { %v1389_v56 = vsel %vm1374_vm9, %v1387_v45, %v1388_v46  ;;  %v4509_v45 = vld [vmem:[#allocation2 + $0x5c] ss:$0 sps:$4 sm:$0x11]  }
  0xad   : > { %v1296_v1 = vshll.u32 %v4509_v45, 16 }
  0xae   : > { %1801 = vrot.lane.b32.xlu1 %v4136_v25, %s4665_s16  ;;  %v4108_v25 = vcombine.low %v1053_v11, %v1054_v17  ;;  %v1710_v11 = vrot.slane %v4128_v59, 1  ;;  %v4505_v17 = vld [vmem:[#allocation2 + $0x50] ss:$0 sps:$4 sm:$0x11]  }
  0xaf   : > { %1799 = vrot.lane.b32.xlu0 %v4135_v28, %s4665_s16  ;;  %v1274_v28 = vrot.slane %v1272_v16, 1  ;;  %v1707_v16 = vrot.slane %v4127_v0, 1  ;;  %v1901_v37 = vshll.u32 %v4505_v17, 16  ;;  %v2028_v52 = vrot.slane %v4505_v17, 1 }
  0xb0   : > { %v1588_v40 = vshll.u32 %v4108_v25, 16  ;;  %v1586_v48 = vshrl.u32 %v4108_v25, 16  ;;  %v2031_v17 = vrot.slane %v5159_v9, 1 }
  0xb1   : > { %v1275_v41 = vsel %vm1203_vm10, %v1270_v27, %v1274_v28  ;;  %v1906_v27 = vshrl.u32 %v4138_v62, 16  ;;  %v1910_v28 = vrot.slane %v1908_v13, 1  ;;  %v1709_v34 = vsel %vm1374_vm9, %v1707_v16, %v1708_v21 }
  0xb2   : > { %1971 = vrot.lane.b32.xlu1 %v1892_v12, %s4666_s18  ;;  %v1590_v49 = vrot.slane %v1588_v40, 1  ;;  %v1711_v12 = vrot.slane %v4498_v42, 1  ;;  %v4157_v40 = vcombine.low %v1117_v24, %v1092_v58  ;;  %v1039_v58 = vld [vmem:[#allocation2 + $0x54] sm:$0xe]  ;;  %v1298_v13 = vrot.slane %v1296_v1, 1 }
  0xb3   : > { %1969 = vrot.lane.b32.xlu0 %v1880_v19, %s4666_s18  ;;  %v5165_v19 = vcombine.low %v1014_v7, %v5157_v8  ;;  %v1911_v43 = vor.u32 %v1910_v28, %v1906_v27  ;;  %v4109_v21 = vcombine.low %v1055_v4, %v1056_v61 }
  0xb4   : > { %v1591_v3 = vor.u32 %v1590_v49, %v1586_v48  ;;  %v1712_v29 = vsel %vm1374_vm9, %v1710_v11, %v1711_v12  ;;  %v1903_v48 = vrot.slane %v1901_v37, 1  ;;  %v1118_v49 = vld [vmem:[#allocation2 + $0x54] sm:$0xe]  ;;  %v2283_v11 = vsel %vm2281_vm11, %v4538_v57, 0  ;;  %v1018_v57 = vld [vmem:[#allocation2 + $0x60] sm:$0xf]  ;;  %vm5410_vm11 = vmand %vm2418_vm7, %vm454_vm1 }
  0xb5   : > { %v4158_v59 = vcombine.low %v1118_v49, %v5151_v55  ;;  %4351 = vmatpush3.bf16.msra.mxu0 %v2283_v11  ;;  %v5227_v11 = vld [vmem:[#allocation2 + $0x70] sm:$0xf]  ;;  %vm5423_vm1 = vmand %vm2418_vm7, %vm492_vm3 }
  0xb6   : > { %1332 = vrot.lane.b32.xlu1 %v1263_v26, %s4662_s9  ;;  %v1596_v15 = vsel %vm1203_vm10, %v1591_v3, %v1595_v53  ;;  %v5171_v26 = vld [vmem:[#allocation2 + $0x50] ss:$0 sps:$4 sm:$0x11]   ;;  %v1058_v3 = vld [vmem:[#allocation2 + $0x64] sm:$0xf] }
  0xb7   : > { %2049 = vrot.lane.b32.xlu0 %v2023_v32, %s4667_s19  ;;  %v1279_v32 = vshll.u32 %v5165_v19, 16  ;;  %v1284_v42 = vshll.u32 %v5171_v26, 16  ;;  %v1038_v53 = vld [vmem:[#allocation2 + $0x48] sm:$0xe]  ;;  %v2030_v16 = vrot.slane %v4158_v59, 1 }
  0xb9   : > { %v1281_v46 = vrot.slane %v1279_v32, 1  ;;  %v1286_v50 = vrot.slane %v1284_v42, 1  ;;  %v2032_v27 = vsel %vm1374_vm9, %v2030_v16, %v2031_v17  ;;  %v1600_v32 = vshll.u32 %v4109_v21, 16  ;;  %v1119_v17 = vld [vmem:[#allocation2 + $0x60] sm:$0xe] }
  0xba   : > { %1334 = vrot.lane.b32.xlu1 %v1275_v41, %s4662_s9 }
  0xbb   : > { %2051 = vrot.lane.b32.xlu0 %v2026_v44, %s4667_s19  ;;  %v1277_v44 = vshrl.u32 %v5165_v19, 16 }
  0xbd   : > { %v1282_v10 = vor.u32 %v1281_v46, %v1277_v44  ;;  %v1598_v44 = vshrl.u32 %v4109_v21, 16  ;;  %v1095_v46 = vld [vmem:[#allocation2 + $0x60] sm:$0xf] }
  0xbe   : > { %1415 = vrot.lane.b32.xlu1 %v1392_v38, %s4661_s8  ;;  %v2027_v38 = vrot.slane %v4157_v40, 1 }
  0xbf   : > { %1413 = vrot.lane.b32.xlu0 %v1389_v56, %s4661_s8  ;;  %v1289_v56 = vshrl.u32 %v5178_v33, 16  ;;  %v1287_v12 = vsel %vm1203_vm10, %v1282_v10, %v1286_v50  ;;  %v5216_v10 = vld [vmem:[#allocation2 + $0x64] sm:$0xf] }
  0xc0   : > { %v2029_v7 = vsel %vm1374_vm9, %v2027_v38, %v2028_v52 }
  0xc1   : > { %v1294_v55 = vor.u32 %v1293_v47, %v1289_v56  ;;  %v4139_v56 = vcombine.low %v1095_v46, %v1096_v31 }
  0xc2   : > { %1485 = vrot.lane.b32.xlu1 %v4108_v25, %s4660_s21  ;;  %v1913_v25 = vshll.u32 %v5159_v9, 16  ;;  %v4517_v9 = vld [vmem:[#allocation2 + $0x5c] ss:$0 sps:$4 sm:$0x11]  }
  0xc3   : > { %1483 = vrot.lane.b32.xlu0 %v4107_v35, %s4660_s21  ;;  %v1894_v35 = vshrl.u32 %v4137_v5, 16  ;;  %v1299_v6 = vsel %vm1203_vm10, %v1294_v55, %v1298_v13 }
  0xc4   : > { %v1915_v41 = vrot.slane %v1913_v25, 1  ;;  %v4516_v25 = vld [vmem:[#allocation2 + $0x68] ss:$0 sps:$4 sm:$0x11]  }
  0xc5   : > { %v1899_v30 = vor.u32 %v1898_v36, %v1894_v35  ;;  %v1617_v40 = vshll.u32 %v4516_v25, 16 }
  0xc6   : > { %1655 = vrot.lane.b32.xlu1 %v1596_v15, %s4663_s14  ;;  %v1916_v54 = vsel %vm1203_vm10, %v1911_v43, %v1915_v41  ;;  %v5210_v41 = vld [vmem:[#allocation2 + $0x70] sm:$0xf]  ;;  %v1079_v43 = vld [vmem:[#allocation2 + $0x54] sm:$0xe] }
  0xc7   : > { %1653 = vrot.lane.b32.xlu0 %v1584_v20, %s4663_s14  ;;  %v1904_v0 = vsel %vm1203_vm10, %v1899_v30, %v1903_v48  ;;  %v4099_v20 = vcombine.low %v1038_v53, %v5157_v8  ;;  %v1080_v8 = vld [vmem:[#allocation2 + $0x60] sm:$0xe]  ;;  %v4129_v49 = vcombine.low %v1079_v43, %v1056_v61  ;;  %v1619_v38 = vrot.slane %v1617_v40, 1 }
  0xc8   : > { %v4130_v30 = vcombine.low %v1080_v8, %v1058_v3  ;;  %v5224_v53 = vcombine.low %v1018_v57, %v5216_v10  ;;  %v1714_v61 = vrot.slane %v4517_v9, 1  ;;  %v5257_v57 = vld [vmem:[#allocation2 + $0x7c] sm:$0xf] }
  0xc9   : > { %v1393_v28 = vrot.slane %v4099_v20, 1 }
  0xca   : > { %1735 = vrot.lane.b32.xlu1 %v1712_v29, %s4664_s12  ;;  %v1394_v29 = vrot.slane %v5171_v26, 1  ;;  %v1602_v26 = vrot.slane %v1600_v32, 1  ;;  %v1716_v47 = vrot.slane %v4130_v30, 1  ;;  %v1303_v20 = vshll.u32 %v5224_v53, 16 }
  0xcb   : > { %1733 = vrot.lane.b32.xlu0 %v1709_v34, %s4664_s12  ;;  %v1097_v34 = vld [vmem:[#allocation2 + $0x6c] sm:$0xf] }
  0xcc   : > { %v1395_v42 = vsel %vm1374_vm9, %v1393_v28, %v1394_v29  ;;  %v4140_v48 = vcombine.low %v1097_v34, %v5210_v41  ;;  %v1603_v52 = vor.u32 %v1602_v26, %v1598_v44  ;;  %v1305_v8 = vrot.slane %v1303_v20, 1  ;;  %v4527_v34 = vld [vmem:[#allocation2 + $0x74] ss:$0 sps:$4 sm:$0x11]  }
  0xce   : > { %1805 = vrot.lane.b32.xlu1 %v4138_v62, %s4665_s16  ;;  %v1057_v62 = vld [vmem:[#allocation2 + $0x60] sm:$0xf]  ;;  %v1932_v1 = vshll.u32 %v4140_v48, 16 }
  0xcf   : > { %1803 = vrot.lane.b32.xlu0 %v4137_v5, %s4665_s16  ;;  %v4100_v5 = vcombine.low %v1039_v58, %v5168_v23  ;;  %v4110_v15 = vcombine.low %v1057_v62, %v1058_v3  ;;  %v1397_v23 = vrot.slane %v4509_v45, 1  ;;  %v1605_v45 = vshll.u32 %v4517_v9, 16  ;;  %v5219_v58 = vld [vmem:[#allocation2 + $0x74] ss:$0 sps:$4 sm:$0x11]  }
  0xd0   : > { %v1713_v62 = vrot.slane %v4129_v49, 1  ;;  %v4523_v3 = vld [vmem:[#allocation2 + $0x68] ss:$0 sps:$4 sm:$0x11]   ;;  %v1934_v55 = vrot.slane %v1932_v1, 1  ;;  %v1937_v13 = vshll.u32 %v5219_v58, 16 }
  0xd1   : > { %v1396_v22 = vrot.slane %v4100_v5, 1  ;;  %v1612_v24 = vshll.u32 %v4110_v15, 16  ;;  %v1610_v36 = vshrl.u32 %v4110_v15, 16  ;;  %v1020_v5 = vld [vmem:[#allocation2 + $0x6c] sm:$0xf]  ;;  %v1301_v9 = vshrl.u32 %v5224_v53, 16 }
  0xd2   : > { %1975 = vrot.lane.b32.xlu1 %v1916_v54, %s4666_s18  ;;  %v1607_v54 = vrot.slane %v1605_v45, 1  ;;  %v1939_v28 = vrot.slane %v1937_v13, 1  ;;  %v2034_v45 = vrot.slane %v4523_v3, 1  ;;  %v1320_v49 = vshll.u32 %v4527_v34, 16  ;;  %v1040_v1 = vld [vmem:[#allocation2 + $0x60] sm:$0xe] }
  0xd3   : > { %1973 = vrot.lane.b32.xlu0 %v1904_v0, %s4666_s18  ;;  %v1398_v35 = vsel %vm1374_vm9, %v1396_v22, %v1397_v23  ;;  %v1614_v37 = vrot.slane %v1612_v24, 1  ;;  %v1717_v0 = vrot.slane %v4516_v25, 1  ;;  %v1918_v22 = vshrl.u32 %v4139_v56, 16 }
  0xd4   : > { %v1608_v4 = vsel %vm1203_vm10, %v1603_v52, %v1607_v54  ;;  %v1925_v24 = vshll.u32 %v4523_v3, 16  ;;  %v4159_v25 = vcombine.low %v1119_v17, %v1096_v31  ;;  %v1306_v46 = vor.u32 %v1305_v8, %v1301_v9  ;;  %v1082_v9 = vld [vmem:[#allocation2 + $0x78] sm:$0xe]  ;;  %v1081_v8 = vld [vmem:[#allocation2 + $0x6c] sm:$0xe] }
  0xd5   : > { %v1615_v50 = vor.u32 %v1614_v37, %v1610_v36  ;;  %v1718_v16 = vsel %vm1374_vm9, %v1716_v47, %v1717_v0  ;;  %v5259_v0 = vld [vmem:[#allocation2 + $0x70] sm:$0xf]  ;;  %v1403_v17 = vrot.slane %v4527_v34, 1 }
  0xd6   : > { %1336 = vrot.lane.b32.xlu1 %v1287_v12, %s4662_s9  ;;  %v1930_v12 = vshrl.u32 %v4140_v48, 16  ;;  %v1927_v40 = vrot.slane %v1925_v24, 1  ;;  %v2033_v26 = vrot.slane %v4159_v25, 1 }
  0xd7   : > { %2053 = vrot.lane.b32.xlu0 %v2029_v7, %s4667_s19  ;;  %v1620_v59 = vsel %vm1203_vm10, %v1615_v50, %v1619_v38  ;;  %v1920_v7 = vshll.u32 %v4139_v56, 16  ;;  %v1041_v50 = vld [vmem:[#allocation2 + $0x6c] sm:$0xe] }
  0xd9   : > { %v1922_v23 = vrot.slane %v1920_v7, 1 }
  0xda   : > { %1338 = vrot.lane.b32.xlu1 %v1299_v6, %s4662_s9  ;;  %v1715_v6 = vsel %vm1374_vm9, %v1713_v62, %v1714_v61  ;;  %v4102_v62 = vcombine.low %v1041_v50, %v5227_v11  ;;  %v4131_v50 = vcombine.low %v1081_v8, %v5259_v0 }
  0xdb   : > { %2055 = vrot.lane.b32.xlu0 %v2032_v27, %s4667_s19  ;;  %v1935_v27 = vor.u32 %v1934_v55, %v1930_v12  ;;  %v1923_v37 = vor.u32 %v1922_v23, %v1918_v22  ;;  %v2037_v12 = vrot.slane %v5219_v58, 1  ;;  %v4101_v55 = vcombine.low %v1040_v1, %v5216_v10  ;;  %v5275_v22 = vld [vmem:[#allocation2 + $0x80] ss:$0 sps:$4 sm:$0x11]  }
  0xdd   : > { %v1940_v43 = vsel %vm1203_vm10, %v1935_v27, %v1939_v28  ;;  %v1928_v54 = vsel %vm1203_vm10, %v1923_v37, %v1927_v40  ;;  %v1399_v24 = vrot.slane %v4101_v55, 1  ;;  %v5281_v27 = vld [vmem:[#allocation2 + $0x74] ss:$0 sps:$4 sm:$0x11]   ;;  %v1641_v37 = vshll.u32 %v5275_v22, 16 }
  0xde   : > { %1419 = vrot.lane.b32.xlu1 %v1398_v35, %s4661_s8  ;;  %v5317_v55 = vld [vmem:[#allocation2 + $0x8c] ss:$0 sps:$4 sm:$0x11]  }
  0xdf   : > { %1417 = vrot.lane.b32.xlu0 %v1395_v42, %s4661_s8  ;;  %v1120_v42 = vld [vmem:[#allocation2 + $0x6c] sm:$0xe] }
  0xe0   : > { %v4160_v38 = vcombine.low %v1120_v42, %v5210_v41 }
  0xe2   : > { %1489 = vrot.lane.b32.xlu1 %v4110_v15, %s4660_s21  ;;  %v5231_v15 = vld [vmem:[#allocation2 + $0x68] ss:$0 sps:$4 sm:$0x11]  }
  0xe3   : > { %1487 = vrot.lane.b32.xlu0 %v4109_v21, %s4660_s21  ;;  %v5237_v21 = vcombine.low %v1020_v5, %v5227_v11  ;;  %v1308_v29 = vshll.u32 %v5231_v15, 16  ;;  %v2036_v5 = vrot.slane %v4160_v38, 1  ;;  %v1402_v11 = vrot.slane %v4102_v62, 1 }
  0xe4   : > { %v1400_v10 = vrot.slane %v5231_v15, 1 }
  0xe5   : > { %v1315_v35 = vshll.u32 %v5237_v21, 16  ;;  %v1310_v44 = vrot.slane %v1308_v29, 1  ;;  %v1313_v31 = vshrl.u32 %v5237_v21, 16  ;;  %v2038_v58 = vsel %vm1374_vm9, %v2036_v5, %v2037_v12 }
  0xe6   : > { %1659 = vrot.lane.b32.xlu1 %v1620_v59, %s4663_s14  ;;  %v1059_v59 = vld [vmem:[#allocation2 + $0x6c] sm:$0xf]  ;;  %v1404_v29 = vsel %vm1374_vm9, %v1402_v11, %v1403_v17  ;;  %v1401_v15 = vsel %vm1374_vm9, %v1399_v24, %v1400_v10  ;;  %v1720_v5 = vrot.slane %v5281_v27, 1  ;;  %v4544_v17 = vld [vmem:[#allocation2 + $0x80] ss:$0 sps:$4 sm:$0x11]  }
  0xe7   : > { %1657 = vrot.lane.b32.xlu0 %v1608_v4, %s4663_s14  ;;  %v1317_v30 = vrot.slane %v1315_v35, 1  ;;  %v1311_v41 = vsel %vm1203_vm10, %v1306_v46, %v1310_v44  ;;  %v1322_v4 = vrot.slane %v1320_v49, 1  ;;  %v4111_v13 = vcombine.low %v1059_v59, %v5259_v0  ;;  %v5294_v49 = vld [vmem:[#allocation2 + $0x7c] sm:$0xf] }
  0xe8   : > { %v5243_v32 = vpop.permute.xlu0 %1475  ;;  %v1629_v44 = vshll.u32 %v5281_v27, 16 }
  0xe9   : > { %v1318_v3 = vor.u32 %v1317_v30, %v1313_v31  ;;  %v1624_v25 = vshll.u32 %v4111_v13, 16  ;;  %v1622_v40 = vshrl.u32 %v4111_v13, 16  ;;  %v4132_v31 = vcombine.low %v1082_v9, %v5257_v57  ;;  %v1099_v30 = vld [vmem:[#allocation2 + $0x78] sm:$0xf] }
  0xea   : > { %1739 = vrot.lane.b32.xlu1 %v1718_v16, %s4664_s12  ;;  %v5305_v62 = vcombine.low %v1099_v30, %v5294_v49 }
  0xeb   : > { %1737 = vrot.lane.b32.xlu0 %v1715_v6, %s4664_s12  ;;  %v1323_v20 = vsel %vm1203_vm10, %v1318_v3, %v1322_v4  ;;  %v1722_v3 = vrot.slane %v4132_v31, 1  ;;  %v1719_v4 = vrot.slane %v4131_v50, 1 }
  0xec   : > { %v5247_v36 = vpop.permute.xlu1 %1405  ;;  %v1944_v11 = vshll.u32 %v5305_v62, 16  ;;  %v1942_v9 = vshrl.u32 %v5305_v62, 16 }
  0xee   : > { %1809 = vrot.lane.b32.xlu1 %v4140_v48, %s4665_s16  ;;  %v1061_v48 = vld [vmem:[#allocation2 + $0x78] sm:$0xf]  ;;  %v1946_v8 = vrot.slane %v1944_v11, 1 }
  0xef   : > { %1807 = vrot.lane.b32.xlu0 %v4139_v56, %s4665_s16  ;;  %v2035_v56 = vsel %vm1374_vm9, %v2033_v26, %v2034_v45  ;;  %v4112_v61 = vcombine.low %v1061_v48, %v5257_v57  ;;  %v1101_v26 = vld [vmem:[#allocation2 + $0x84] sm:$0xf]  ;;  %v5291_v45 = vld [vmem:[#allocation2 + $0x88] sm:$0xf]  ;;  %v1643_v48 = vrot.slane %v1641_v37, 1 }
  0xf0   : > { %v5254_v52 = vpop.permute.xlu1 %1407  ;;  %v5302_v1 = vcombine.low %v1101_v26, %v5291_v45  ;;  %v1947_v50 = vor.u32 %v1946_v8, %v1942_v9 }
  0xf1   : > { %v1325_v47 = vpop.permute.xlu0 %1324  ;;  %v1636_v6 = vshll.u32 %v4112_v61, 16  ;;  %v1634_v34 = vshrl.u32 %v4112_v61, 16 }
  0xf2   : > { %1979 = vrot.lane.b32.xlu1 %v1940_v43, %s4666_s18  ;;  %v1626_v43 = vrot.slane %v1624_v25, 1  ;;  %v2067_v38 = vsel %vm2065_vm12, %v5018_v60, %v1325_v47  ;;  %v1723_v60 = vrot.slane %v5275_v22, 1  ;;  %v1961_v25 = vshll.u32 %v5317_v55, 16 }
  0xf3   : > { %1977 = vrot.lane.b32.xlu0 %v1928_v54, %s4666_s18  ;;  %v1638_v35 = vrot.slane %v1636_v6, 1  ;;  %v2088_v47 = vsel %vm2086_vm13, %v2067_v38, %v5247_v36 }
  0xf4   : > { %v5267_v7 = vpop.permute.xlu1 %1477  ;;  %v1627_v57 = vor.u32 %v1626_v43, %v1622_v40  ;;  %v1724_v6 = vsel %vm1374_vm9, %v1722_v3, %v1723_v60  ;;  %v1121_v40 = vld [vmem:[#allocation2 + $0x78] sm:$0xe] }
  0xf5   : > { %v1327_v16 = vpop.permute.xlu0 %1326  ;;  %v1639_v54 = vor.u32 %v1638_v35, %v1634_v34  ;;  %v1949_v34 = vshll.u32 %v4544_v17, 16 }
  0xf6   : > { %1340 = vrot.lane.b32.xlu1 %v1311_v41, %s4662_s9  ;;  %v2069_v41 = vsel %vm2065_vm12, %v5020_v2, %v1327_v16  ;;  %v1956_v2 = vshll.u32 %v5302_v1, 16 }
  0xf7   : > { %2057 = vrot.lane.b32.xlu0 %v2035_v56, %s4667_s19  ;;  %v1631_v56 = vrot.slane %v1629_v44, 1  ;;  %v1644_v12 = vsel %vm1203_vm10, %v1639_v54, %v1643_v48  ;;  %v2090_v16 = vsel %vm2086_vm13, %v2069_v41, %v5254_v52  ;;  %v1721_v52 = vsel %vm1374_vm9, %v1719_v4, %v1720_v5 }
  0xf8   : > { %v5277_v23 = vpop.permute.xlu1 %1647  ;;  %v2111_v24 = vsel %vm2107_vm14, %v2090_v16, %v5267_v7  ;;  %v1951_v38 = vrot.slane %v1949_v34, 1 }
  0xf9   : > { %v1646_v28 = vpop.permute.xlu0 %1645  ;;  %v2132_v7 = vsel %vm2128_vm15, %v2111_v24, %v5277_v23  ;;  %v4161_v23 = vcombine.low %v1121_v40, %v5294_v49  ;;  %v2043_v49 = vrot.slane %v5317_v55, 1 }
  0xfa   : > { %1342 = vrot.lane.b32.xlu1 %v1323_v20, %s4662_s9  ;;  %v2109_v20 = vsel %vm2107_vm14, %v2088_v47, %v5243_v32  ;;  %v1958_v32 = vrot.slane %v1956_v2, 1 }
  0xfb   : > { %2059 = vrot.lane.b32.xlu0 %v2038_v58, %s4667_s19  ;;  %v2130_v22 = vsel %vm2128_vm15, %v2109_v20, %v1646_v28  ;;  %v1954_v58 = vshrl.u32 %v5302_v1, 16  ;;  %v2039_v41 = vrot.slane %v4161_v23, 1 }
  0xfc   : > { %v5287_v42 = vpop.permute.xlu1 %1727 }
  0xfd   : > { %v1726_v46 = vpop.permute.xlu0 %1725  ;;  %v2153_v43 = vsel %vm2149_vm0, %v2132_v7, %v5287_v42  ;;  %v1959_v26 = vor.u32 %v1958_v32, %v1954_v58 }
  0xfe   : > { %1423 = vrot.lane.b32.xlu1 %v1404_v29, %s4661_s8  ;;  %v2151_v10 = vsel %vm2149_vm0, %v2130_v22, %v1726_v46  ;;  %v1122_v29 = vld [vmem:[#allocation2 + $0x84] sm:$0xe]  ;;  %v1963_v46 = vrot.slane %v1961_v25, 1 }
  0xff   : > { %1421 = vrot.lane.b32.xlu0 %v1401_v15, %s4661_s8  ;;  %v4162_v44 = vcombine.low %v1122_v29, %v5291_v45 }
 0x100   : > { %v1798_v59 = vpop.permute.xlu1 %1797  ;;  %v1964_v45 = vsel %vm1203_vm10, %v1959_v26, %v1963_v46 }
 0x101   : > { %v1796_v0 = vpop.permute.xlu0 %1795  ;;  %v2174_v31 = vsel %vm2170_vm2, %v2153_v43, %v1798_v59  ;;  %v2042_v59 = vrot.slane %v4162_v44, 1 }
 0x102   : > { %1493 = vrot.lane.b32.xlu1 %v4112_v61, %s4660_s21  ;;  %v1632_v61 = vsel %vm1203_vm10, %v1627_v57, %v1631_v56  ;;  %v2172_v27 = vsel %vm2170_vm2, %v2151_v10, %v1796_v0  ;;  %v1952_v56 = vsel %vm1203_vm10, %v1947_v50, %v1951_v38  ;;  %v2040_v0 = vrot.slane %v4544_v17, 1 }
 0x103   : > { %1491 = vrot.lane.b32.xlu0 %v4111_v13, %s4660_s21 }
 0x104   : > { %v1968_v36 = vpop.permute.xlu1 %1967  ;;  %v2041_v60 = vsel %vm1374_vm9, %v2039_v41, %v2040_v0 }
 0x105   : > { %v1966_v13 = vpop.permute.xlu0 %1965  ;;  %v2195_v54 = vsel %vm2191_vm4, %v2174_v31, %v1968_v36 }
 0x106   : > { %1663 = vrot.lane.b32.xlu1 %v1644_v12, %s4663_s14  ;;  %v2193_v35 = vsel %vm2191_vm4, %v2172_v27, %v1966_v13 }
 0x107   : > { %1661 = vrot.lane.b32.xlu0 %v1632_v61, %s4663_s14 }
 0x108   : > { %v1329_v28 = vpop.permute.xlu1 %1328 }
 0x109   : > { %v2046_v37 = vpop.permute.xlu0 %2045  ;;  %v2071_v36 = vsel %vm2065_vm12, %v5050_v63, %v1329_v28 }
 0x10a   : > { %1743 = vrot.lane.b32.xlu1 %v1724_v6, %s4664_s12  ;;  %v2214_v15 = vsel %vm2212_vm5, %v2193_v35, %v2046_v37 }
 0x10b   : > { %1741 = vrot.lane.b32.xlu0 %v1721_v52, %s4664_s12  ;;  %4352 = vmatprep.mubr.msk.bf16.mxu0 %vm2260_vm6, %v2214_v15 }
 0x10c   : > { %v1331_v30 = vpop.permute.xlu1 %1330 }
 0x10d   : > { %v2048_v48 = vpop.permute.xlu0 %2047  ;;  %v2073_v6 = vsel %vm2065_vm12, %v5067_v18, %v1331_v30 }
 0x10e   : > { %v2216_v42 = vsel %vm2212_vm5, %v2195_v54, %v2048_v48  ;;  %1813 = vrot.lane.b32.xlu1 %v5302_v1, %s4665_s16  ;;  %v2044_v1 = vsel %vm1374_vm9, %v2042_v59, %v2043_v49 }
 0x10f   : > { %1811 = vrot.lane.b32.xlu0 %v5305_v62, %s4665_s16  ;;  %4353 = vmatmul.mubr.msk.bf16.vlgmr.msra.gmra.mrb[0].mxu0 %vm2260_vm6, %v2216_v42 }
 0x110   : > { %v1412_v57 = vpop.permute.xlu1 %1411 }
 0x111   : > { %v1410_v3 = vpop.permute.xlu0 %1409  ;;  %v2094_v52 = vsel %vm2086_vm13, %v2073_v6, %v1412_v57 }
 0x112   : > { %1983 = vrot.lane.b32.xlu1 %v1964_v45, %s4666_s18  ;;  %v2092_v61 = vsel %vm2086_vm13, %v2071_v36, %v1410_v3 }
 0x113   : > { %1981 = vrot.lane.b32.xlu0 %v1952_v56, %s4666_s18 }
 0x114   : > { %v1482_v62 = vpop.permute.xlu1 %1481 }
 0x115   : > { %v1480_v47 = vpop.permute.xlu0 %1479  ;;  %v2115_v63 = vsel %vm2107_vm14, %v2094_v52, %v1482_v62 }
 0x116   : > { %2063 = vrot.lane.b32.xlu1 %v2044_v1, %s4667_s19  ;;  %v2113_v17 = vsel %vm2107_vm14, %v2092_v61, %v1480_v47 }
 0x117   : > { %2061 = vrot.lane.b32.xlu0 %v2041_v60, %s4667_s19 }
 0x118   : > { %v1652_v4 = vpop.permute.xlu1 %1651 }
 0x119   : > { %v1650_v5 = vpop.permute.xlu0 %1649  ;;  %v2136_v25 = vsel %vm2128_vm15, %v2115_v63, %v1652_v4  ;;  %v2423_v63 = vld [vmem:[#allocation3 + $0xc] sm:$0x1] }
 0x11a   : > { %v2134_v13 = vsel %vm2128_vm15, %v2113_v17, %v1650_v5 }
 0x11c   : > { %v1732_v12 = vpop.permute.xlu1 %1731 }
 0x11d   : > { %v1730_v2 = vpop.permute.xlu0 %1729  ;;  %v2157_v28 = vsel %vm2149_vm0, %v2136_v25, %v1732_v12  ;;  %v2420_v25 = vld [vmem:[#allocation3] sm:$0x1] }
 0x11e   : > { %v2155_v22 = vsel %vm2149_vm0, %v2134_v13, %v1730_v2 }
 0x120   : > { %v1802_v55 = vpop.permute.xlu1 %1801 }
 0x121   : > { %v1800_v16 = vpop.permute.xlu0 %1799  ;;  %v2178_v18 = vsel %vm2170_vm2, %v2157_v28, %v1802_v55  ;;  %v2421_v28 = vsel %vm5410_vm11, 0, %v2420_v25 }
 0x122   : > { %v2176_v58 = vsel %vm2170_vm2, %v2155_v22, %v1800_v16  ;;  %2422 = vst [vmem:[#allocation3] sm:$0x1] %v2421_v28  ;;  %v2466_v28 = vld [vmem:[#allocation3 + $0x44] sm:$0x1] }
 0x124   : > { %v1972_v11 = vpop.permute.xlu1 %1971 }
 0x125   : > { %v1970_v20 = vpop.permute.xlu0 %1969  ;;  %v2199_v9 = vsel %vm2191_vm4, %v2178_v18, %v1972_v11 }
 0x126   : > { %v2197_v10 = vsel %vm2191_vm4, %v2176_v58, %v1970_v20 }
 0x128   : > { %v1333_v24 = vpop.permute.xlu1 %1332 }
 0x129   : > { %v2050_v32 = vpop.permute.xlu0 %2049  ;;  %v2075_v30 = vsel %vm2065_vm12, %v5112_v39, %v1333_v24 }
 0x12a   : > { %v2218_v27 = vsel %vm2212_vm5, %v2197_v10, %v2050_v32  ;;  %v2424_v32 = vsel %vm5410_vm11, 0, %v2423_v63 }
 0x12b   : > { %4356 = vmatprep.mubr.msk.bf16.mxu0 %vm2260_vm6, %v2218_v27  ;;  %2425 = vst [vmem:[#allocation3 + $0xc] sm:$0x1] %v2424_v32  ;;  %v2435_v32 = vld [vmem:[#allocation3 + $0x3c] sm:$0x1] }
 0x12c   : > { %v1335_v29 = vpop.permute.xlu1 %1334  ;;  %v2436_v25 = vsel %vm5410_vm11, 0, %v2435_v32 }
 0x12d   : > { %v2052_v8 = vpop.permute.xlu0 %2051  ;;  %v2077_v42 = vsel %vm2065_vm12, %v5122_v51, %v1335_v29  ;;  %v2454_v29 = vld [vmem:[#allocation3 + $0x14] sm:$0x1]  ;;  %2437 = vst [vmem:[#allocation3 + $0x3c] sm:$0x1] %v2436_v25 }
 0x12e   : > { %v2220_v34 = vsel %vm2212_vm5, %v2199_v9, %v2052_v8 }
 0x12f   : > { %4357 = vmatmul.mubr.msk.bf16.gmra.mrb[4].mxu0 %vm2260_vm6, %v2220_v34 }
 0x130   : > { %v1416_v35 = vpop.permute.xlu1 %1415 }
 0x131   : > { %v1414_v37 = vpop.permute.xlu0 %1413  ;;  %v2098_v59 = vsel %vm2086_vm13, %v2077_v42, %v1416_v35  ;;  %v2451_v35 = vld [vmem:[#allocation3 + $0x8] sm:$0x1] }
 0x132   : > { %v2096_v23 = vsel %vm2086_vm13, %v2075_v30, %v1414_v37  ;;  %v2751_v18 = vld [vmem:[#allocation3 + $0xc] sm:$0xf] }
 0x134   : > { %v1486_v40 = vpop.permute.xlu1 %1485 }
 0x135   : > { %v1484_v7 = vpop.permute.xlu0 %1483  ;;  %v2119_v39 = vsel %vm2107_vm14, %v2098_v59, %v1486_v40 }
 0x136   : > { %v2117_v38 = vsel %vm2107_vm14, %v2096_v23, %v1484_v7 }
 0x138   : > { %v1656_v15 = vpop.permute.xlu1 %1655 }
 0x139   : > { %v1654_v43 = vpop.permute.xlu0 %1653  ;;  %v2140_v0 = vsel %vm2128_vm15, %v2119_v39, %v1656_v15  ;;  %v2452_v15 = vsel %vm5423_vm1, 0, %v2451_v35  ;;  %v2438_v35 = vld [vmem:[#allocation3 + $0x48] sm:$0x1] }
 0x13a   : > { %v2138_v48 = vsel %vm2128_vm15, %v2117_v38, %v1654_v43  ;;  %2453 = vst [vmem:[#allocation3 + $0x8] sm:$0x1] %v2452_v15  ;;  %v2469_v15 = vld [vmem:[#allocation3 + $0x50] sm:$0x1] }
 0x13c   : > { %v1736_v44 = vpop.permute.xlu1 %1735 }
 0x13d   : > { %v1734_v26 = vpop.permute.xlu0 %1733  ;;  %v2161_v1 = vsel %vm2149_vm0, %v2140_v0, %v1736_v44 }
 0x13e   : > { %v2159_v45 = vsel %vm2149_vm0, %v2138_v48, %v1734_v26 }
 0x140   : > { %v1806_v46 = vpop.permute.xlu1 %1805 }
 0x141   : > { %v1804_v31 = vpop.permute.xlu0 %1803  ;;  %v2182_v51 = vsel %vm2170_vm2, %v2161_v1, %v1806_v46  ;;  %v2748_v25 = vld [vmem:[#allocation3 + $0x8] sm:$0x1] }
 0x142   : > { %v2180_v49 = vsel %vm2170_vm2, %v2159_v45, %v1804_v31 }
 0x144   : > { %v1976_v50 = vpop.permute.xlu1 %1975 }
 0x145   : > { %v1974_v54 = vpop.permute.xlu0 %1973  ;;  %v2203_v60 = vsel %vm2191_vm4, %v2182_v51, %v1976_v50 }
 0x146   : > { %v2201_v56 = vsel %vm2191_vm4, %v2180_v49, %v1974_v54 }
 0x148   : > { %v1337_v57 = vpop.permute.xlu1 %1336 }
 0x149   : > { %v2054_v41 = vpop.permute.xlu0 %2053  ;;  %v2079_v13 = vsel %vm2065_vm12, %v5165_v19, %v1337_v57 }
 0x14a   : > { %v2222_v3 = vsel %vm2212_vm5, %v2201_v56, %v2054_v41 }
 0x14b   : > { %4360 = vmatprep.mubr.msk.bf16.mxu0 %vm2260_vm6, %v2222_v3 }
 0x14c   : > { %v1339_v62 = vpop.permute.xlu1 %1338 }
 0x14d   : > { %v2056_v47 = vpop.permute.xlu0 %2055  ;;  %v2081_v19 = vsel %vm2065_vm12, %v5178_v33, %v1339_v62  ;;  %v2455_v33 = vsel %vm5423_vm1, 0, %v2454_v29  ;;  %v2467_v29 = vsel %vm5423_vm1, 0, %v2466_v28 }
 0x14e   : > { %v2224_v4 = vsel %vm2212_vm5, %v2203_v60, %v2056_v47  ;;  %2456 = vst [vmem:[#allocation3 + $0x14] sm:$0x1] %v2455_v33  ;;  %2468 = vst [vmem:[#allocation3 + $0x44] sm:$0x1] %v2467_v29 }
 0x14f   : > { %4361 = vmatmul.mubr.msk.bf16.gmra.mrb[8].mxu0 %vm2260_vm6, %v2224_v4 }
 0x150   : > { %v1420_v5 = vpop.permute.xlu1 %1419 }
 0x151   : > { %v1418_v12 = vpop.permute.xlu0 %1417  ;;  %v2102_v9 = vsel %vm2086_vm13, %v2081_v19, %v1420_v5  ;;  %v2429_v5 = vld [vmem:[#allocation3 + $0x24] sm:$0x1]  ;;  %v2432_v19 = vld [vmem:[#allocation3 + $0x30] sm:$0x1] }
 0x152   : > { %v2100_v6 = vsel %vm2086_vm13, %v2079_v13, %v1418_v12 }
 0x154   : > { %v1490_v2 = vpop.permute.xlu1 %1489 }
 0x155   : > { %v1488_v55 = vpop.permute.xlu0 %1487  ;;  %v2123_v37 = vsel %vm2107_vm14, %v2102_v9, %v1490_v2  ;;  %v2426_v2 = vld [vmem:[#allocation3 + $0x18] sm:$0x1] }
 0x156   : > { %v2121_v52 = vsel %vm2107_vm14, %v2100_v6, %v1488_v55  ;;  %v2457_v6 = vld [vmem:[#allocation3 + $0x20] sm:$0x1]  ;;  %v2463_v9 = vld [vmem:[#allocation3 + $0x38] sm:$0x1] }
 0x157   : > { %v2458_v63 = vsel %vm5423_vm1, 0, %v2457_v6  ;;  %v2755_v6 = vld [vmem:[#allocation3 + $0x14] sm:$0x1] }
 0x158   : > { %v1660_v16 = vpop.permute.xlu1 %1659  ;;  %2459 = vst [vmem:[#allocation3 + $0x20] sm:$0x1] %v2458_v63 }
 0x159   : > { %v1658_v36 = vpop.permute.xlu0 %1657  ;;  %v2144_v43 = vsel %vm2128_vm15, %v2123_v37, %v1660_v16  ;;  %v2439_v37 = vsel %vm5410_vm11, 0, %v2438_v35 }
 0x15a   : > { %v2142_v10 = vsel %vm2128_vm15, %v2121_v52, %v1658_v36  ;;  %v2427_v36 = vsel %vm5410_vm11, 0, %v2426_v2  ;;  %2440 = vst [vmem:[#allocation3 + $0x48] sm:$0x1] %v2439_v37 }
 0x15b   : > { %2428 = vst [vmem:[#allocation3 + $0x18] sm:$0x1] %v2427_v36 }
 0x15c   : > { %v1740_v61 = vpop.permute.xlu1 %1739 }
 0x15d   : > { %v1738_v11 = vpop.permute.xlu0 %1737  ;;  %v2165_v26 = vsel %vm2149_vm0, %v2144_v43, %v1740_v61  ;;  %v2460_v61 = vld [vmem:[#allocation3 + $0x2c] sm:$0x1]  ;;  %v2470_v43 = vsel %vm5423_vm1, 0, %v2469_v15 }
 0x15e   : > { %v2163_v27 = vsel %vm2149_vm0, %v2142_v10, %v1738_v11  ;;  %v2461_v13 = vsel %vm5423_vm1, 0, %v2460_v61  ;;  %2471 = vst [vmem:[#allocation3 + $0x50] sm:$0x1] %v2470_v43 }
 0x15f   : > { %2462 = vst [vmem:[#allocation3 + $0x2c] sm:$0x1] %v2461_v13 }
 0x160   : > { %v1810_v17 = vpop.permute.xlu1 %1809 }
 0x161   : > { %v1808_v20 = vpop.permute.xlu0 %1807  ;;  %v2186_v46 = vsel %vm2170_vm2, %v2165_v26, %v1810_v17 }
 0x162   : > { %v2184_v8 = vsel %vm2170_vm2, %v2163_v27, %v1808_v20  ;;  %v2433_v27 = vsel %vm5410_vm11, 0, %v2432_v19 }
 0x163   : > { %2434 = vst [vmem:[#allocation3 + $0x30] sm:$0x1] %v2433_v27 }
 0x164   : > { %v1980_v22 = vpop.permute.xlu1 %1979 }
 0x165   : > { %v1978_v58 = vpop.permute.xlu0 %1977  ;;  %v2207_v30 = vsel %vm2191_vm4, %v2186_v46, %v1980_v22  ;;  %v2447_v46 = vld [vmem:[#allocation3 + $0x6c] sm:$0x1] }
 0x166   : > { %v2205_v40 = vsel %vm2191_vm4, %v2184_v8, %v1978_v58  ;;  %v2464_v8 = vsel %vm5423_vm1, 0, %v2463_v9 }
 0x167   : > { %2465 = vst [vmem:[#allocation3 + $0x38] sm:$0x1] %v2464_v8 }
 0x168   : > { %v1341_v34 = vpop.permute.xlu1 %1340 }
 0x169   : > { %v2058_v7 = vpop.permute.xlu0 %2057  ;;  %v2083_v0 = vsel %vm2065_vm12, %v5224_v53, %v1341_v34  ;;  %v2430_v53 = vsel %vm5410_vm11, 0, %v2429_v5  ;;  %v2441_v34 = vld [vmem:[#allocation3 + $0x54] sm:$0x1] }
 0x16a   : > { %v2226_v44 = vsel %vm2212_vm5, %v2205_v40, %v2058_v7  ;;  %2431 = vst [vmem:[#allocation3 + $0x24] sm:$0x1] %v2430_v53  ;;  %v2442_v33 = vsel %vm5410_vm11, 0, %v2441_v34  ;;  %v2472_v40 = vld [vmem:[#allocation3 + $0x5c] sm:$0x1] }
 0x16b   : > { %4364 = vmatprep.mubr.msk.bf16.mxu0 %vm2260_vm6, %v2226_v44  ;;  %2443 = vst [vmem:[#allocation3 + $0x54] sm:$0x1] %v2442_v33  ;;  %v2473_v7 = vsel %vm5423_vm1, 0, %v2472_v40  ;;  %v5490_v44 = vld [vmem:[%s5882_s4] ss:$0 sm:$0xff] }
 0x16c   : > { %v1343_v31 = vpop.permute.xlu1 %1342  ;;  %2474 = vst [vmem:[#allocation3 + $0x5c] sm:$0x1] %v2473_v7 }
 0x16d   : > { %v2060_v23 = vpop.permute.xlu0 %2059  ;;  %v2085_v41 = vsel %vm2065_vm12, %v5237_v21, %v1343_v31  ;;  %vm2741_vm12 = vcmask 60416  }
 0x16e   : > { %v2228_v50 = vsel %vm2212_vm5, %v2207_v30, %v2060_v23  ;;  %v2448_v23 = vsel %vm5410_vm11, 0, %v2447_v46 }
 0x16f   : > { %4365 = vmatmul.mubr.msk.bf16.gmra.mrb[12].mxu0 %vm2260_vm6, %v2228_v50  ;;  %v2444_v50 = vld [vmem:[#allocation3 + $0x60] sm:$0x1]  ;;  %2449 = vst [vmem:[#allocation3 + $0x6c] sm:$0x1] %v2448_v23 }
 0x170   : > { %v1424_v38 = vpop.permute.xlu1 %1423 }
 0x171   : > { %v1422_v54 = vpop.permute.xlu0 %1421  ;;  %v2106_v3 = vsel %vm2086_vm13, %v2085_v41, %v1424_v38 }
 0x172   : > { %v2104_v1 = vsel %vm2086_vm13, %v2083_v0, %v1422_v54 }
 0x174   : > { %v1494_v48 = vpop.permute.xlu1 %1493 }
 0x175   : > { %v1492_v42 = vpop.permute.xlu0 %1491  ;;  %v2127_v51 = vsel %vm2107_vm14, %v2106_v3, %v1494_v48  ;;  %v2445_v48 = vsel %vm5410_vm11, 0, %v2444_v50 }
 0x176   : > { %v2125_v60 = vsel %vm2107_vm14, %v2104_v1, %v1492_v42  ;;  %v2478_v42 = vld [vmem:[#allocation3 + $0x74] sm:$0x1]  ;;  %2446 = vst [vmem:[#allocation3 + $0x60] sm:$0x1] %v2445_v48  ;;  %vm5506_vm14 = vmand %vm2741_vm12, %vm492_vm3 }
 0x178   : > { %v1664_v45 = vpop.permute.xlu1 %1663 }
 0x179   : > { %v1662_v59 = vpop.permute.xlu0 %1661  ;;  %v2148_v47 = vsel %vm2128_vm15, %v2127_v51, %v1664_v45 }
 0x17a   : > { %v2146_v12 = vsel %vm2128_vm15, %v2125_v60, %v1662_v59 }
 0x17c   : > { %v1744_v49 = vpop.permute.xlu1 %1743 }
 0x17d   : > { %v1742_v57 = vpop.permute.xlu0 %1741  ;;  %v2169_v21 = vsel %vm2149_vm0, %v2148_v47, %v1744_v49 }
 0x17e   : > { %v2167_v55 = vsel %vm2149_vm0, %v2146_v12, %v1742_v57  ;;  %v2479_v57 = vsel %vm5423_vm1, 0, %v2478_v42 }
 0x17f   : > { %2480 = vst [vmem:[#allocation3 + $0x74] sm:$0x1] %v2479_v57 }
 0x180   : > { %v1814_v39 = vpop.permute.xlu1 %1813 }
 0x181   : > { %v1812_v56 = vpop.permute.xlu0 %1811  ;;  %v2190_v16 = vsel %vm2170_vm2, %v2169_v21, %v1814_v39  ;;  %v2475_v39 = vld [vmem:[#allocation3 + $0x68] sm:$0x1] }
 0x182   : > { %v2188_v11 = vsel %vm2170_vm2, %v2167_v55, %v1812_v56  ;;  %v2476_v0 = vsel %vm5423_vm1, 0, %v2475_v39 }
 0x183   : > { %2477 = vst [vmem:[#allocation3 + $0x68] sm:$0x1] %v2476_v0 }
 0x184   : > { %v1984_v62 = vpop.permute.xlu1 %1983 }
 0x185   : > { %v1982_v4 = vpop.permute.xlu0 %1981  ;;  %v2211_v17 = vsel %vm2191_vm4, %v2190_v16, %v1984_v62 }
 0x186   : > { %v2209_v22 = vsel %vm2191_vm4, %v2188_v11, %v1982_v4  ;;  %v2743_v11 = vld [vmem:[#allocation3] sm:$0xf] }
 0x188   : > { %v2064_v20 = vpop.permute.xlu1 %2063 }
 0x189   : > { %v2232_v52 = vsel %vm2212_vm5, %v2211_v17, %v2064_v20  ;;  %v2062_v58 = vpop.permute.xlu0 %2061 }
 0x18a   : > { %v2230_v10 = vsel %vm2212_vm5, %v2209_v22, %v2062_v58 }
 0x18b   : > { %4368 = vmatprep.mubr.msk.bf16.mxu0 %vm2260_vm6, %v2230_v10 }
 0x18c   : > { %4369 = vmatmul.mubr.msk.bf16.gmra.mrb[16].mxu0 %vm2260_vm6, %v2232_v52 }
 0x1e2   : > { %v4354_v26 = vpop.f32.mrb[0].mxu0 }
 0x1e3   : > { %v2328_v31 = vadd.f32 %v4354_v26, %v5490_v44  ;;  %v2319_v30 = vpop.f32.mrb[1].mxu0 }
 0x1e4   : > { %v2320_v38 = vadd.f32 %v5490_v44, %v2319_v30  ;;  %v4355_v54 = vpop.f32.mrb[2].mxu0 }
 0x1e5   : > { %v2400_v45 = vmax.f32 %v2328_v31, 0.0  ;;  %v2331_v59 = vadd.f32 %v4355_v54, %v5490_v44  ;;  %v2322_v49 = vpop.f32.mrb[3].mxu0 }
 0x1e6   : > { %v2398_v56 = vmax.f32 %v2320_v38, 0.0  ;;  %v2323_v41 = vadd.f32 %v5490_v44, %v2322_v49 }
 0x1e7   : > { %v4306_v3 = vpack.c.bf16 %v2400_v45, %v2400_v45  ;;  %v2401_v1 = vmax.f32 %v2331_v59, 0.0 }
 0x1e8   : > { %v4304_v51 = vpack.c.bf16 %v2398_v56, %v2398_v56  ;;  %v2399_v62 = vmax.f32 %v2323_v41, 0.0  ;;  %v2765_v56 = vld [vmem:[#allocation3 + $0x24] sm:$0xf] }
 0x1e9   : > { %v2559_v60 = vshrl.u32 %v4306_v3, 16  ;;  %v4307_v47 = vpack.c.bf16 %v2401_v1, %v2401_v1  ;;  %v2562_v21 = vshll.u32 %v4306_v3, 16 }
 0x1ea   : > { %v2542_v4 = vshrl.u32 %v4304_v51, 16  ;;  %v4305_v5 = vpack.c.bf16 %v2399_v62, %v2399_v62  ;;  %v2545_v16 = vshll.u32 %v4304_v51, 16  ;;  %v2758_v51 = vld [vmem:[#allocation3 + $0x18] sm:$0xf] }
 0x1eb   : > { %v2561_v12 = vrot.slane %v2559_v60, 7  ;;  %v2567_v53 = vshrl.u32 %v4307_v47, 16  ;;  %v2570_v20 = vshll.u32 %v4307_v47, 16 }
 0x1ec   : > { %v2544_v55 = vrot.slane %v2542_v4, 7  ;;  %v2550_v36 = vshrl.u32 %v4305_v5, 16  ;;  %v2553_v52 = vshll.u32 %v4305_v5, 16  ;;  %v2769_v4 = vld [vmem:[#allocation3 + $0x2c] sm:$0x1] }
 0x1ed   : > { %v2564_v61 = vor.u32 %v2562_v21, %v2561_v12  ;;  %v2569_v17 = vrot.slane %v2567_v53, 7  ;;  %v2565_v58 = vrot.slane %v2561_v12, 4 }
 0x1ee   : > { %v2547_v13 = vor.u32 %v2545_v16, %v2544_v55  ;;  %v2552_v22 = vrot.slane %v2550_v36, 7  ;;  %v2548_v19 = vrot.slane %v2544_v55, 4  ;;  %v2762_v16 = vld [vmem:[#allocation3 + $0x20] sm:$0x1] }
 0x1ef   : > { %v2752_v63 = vsel %vm5506_vm14, %v2564_v61, %v2751_v18  ;;  %v2572_v10 = vor.u32 %v2570_v20, %v2569_v17  ;;  %v2574_v32 = vrot.slane %v2569_v17, 4 }
 0x1f0   : > { %2753 = vst [vmem:[#allocation3 + $0xc] sm:$0xf] %v2752_v63  ;;  %v2744_v27 = vsel %vm5506_vm14, %v2547_v13, %v2743_v11  ;;  %v2555_v28 = vor.u32 %v2553_v52, %v2552_v22  ;;  %v2557_v29 = vrot.slane %v2552_v22, 4 }
 0x1f1   : > { %2745 = vst [vmem:[#allocation3] sm:$0xf] %v2744_v27  ;;  %v2573_v9 = vsel %vm4869_vm8, %v2565_v58, %v2572_v10  ;;  %v2756_v8 = vsel %vm5410_vm11, %v2574_v32, %v2755_v6 }
 0x1f2   : > { %2754 = vst.msk [vmem:[#allocation3 + $0x10] sm:$0xf] %vm2741_vm12, %v2573_v9  ;;  %2757 = vst [vmem:[#allocation3 + $0x14] sm:$0x1] %v2756_v8  ;;  %v2556_v34 = vsel %vm4869_vm8, %v2548_v19, %v2555_v28  ;;  %v2749_v33 = vsel %vm5410_vm11, %v2557_v29, %v2748_v25 }
 0x1f3   : > { %2747 = vst.msk [vmem:[#allocation3 + $0x4] sm:$0xf] %vm2741_vm12, %v2556_v34  ;;  %2750 = vst [vmem:[#allocation3 + $0x8] sm:$0x1] %v2749_v33 }
 0x202   : > { %v4358_v35 = vpop.f32.mrb[4].mxu0 }
 0x203   : > { %v2344_v37 = vadd.f32 %v4358_v35, %v5490_v44  ;;  %v2335_v40 = vpop.f32.mrb[5].mxu0 }
 0x204   : > { %v2336_v7 = vadd.f32 %v5490_v44, %v2335_v40  ;;  %v4359_v15 = vpop.f32.mrb[6].mxu0 }
 0x205   : > { %v2404_v43 = vmax.f32 %v2344_v37, 0.0  ;;  %v2347_v26 = vadd.f32 %v4359_v15, %v5490_v44  ;;  %v2338_v46 = vpop.f32.mrb[7].mxu0 }
 0x206   : > { %v2402_v31 = vmax.f32 %v2336_v7, 0.0  ;;  %v2339_v30 = vadd.f32 %v5490_v44, %v2338_v46  ;;  %v2779_v46 = vld [vmem:[#allocation3 + $0x3c] sm:$0xf] }
 0x207   : > { %v4310_v23 = vpack.c.bf16 %v2404_v43, %v2404_v43  ;;  %v2405_v50 = vmax.f32 %v2347_v26, 0.0 }
 0x208   : > { %v4308_v38 = vpack.c.bf16 %v2402_v31, %v2402_v31  ;;  %v2403_v54 = vmax.f32 %v2339_v30, 0.0 }
 0x209   : > { %v2593_v48 = vshrl.u32 %v4310_v23, 16  ;;  %v4311_v42 = vpack.c.bf16 %v2405_v50, %v2405_v50  ;;  %v2596_v57 = vshll.u32 %v4310_v23, 16 }
 0x20a   : > { %v2576_v45 = vshrl.u32 %v4308_v38, 16  ;;  %v4309_v59 = vpack.c.bf16 %v2403_v54, %v2403_v54  ;;  %v2579_v0 = vshll.u32 %v4308_v38, 16  ;;  %v2772_v38 = vld [vmem:[#allocation3 + $0x30] sm:$0xf] }
 0x20b   : > { %v2595_v49 = vrot.slane %v2593_v48, 7  ;;  %v2601_v39 = vshrl.u32 %v4311_v42, 16  ;;  %v2604_v60 = vshll.u32 %v4311_v42, 16 }
 0x20c   : > { %v2578_v41 = vrot.slane %v2576_v45, 7  ;;  %v2584_v3 = vshrl.u32 %v4309_v59, 16  ;;  %v2587_v12 = vshll.u32 %v4309_v59, 16  ;;  %v2783_v45 = vld [vmem:[#allocation3 + $0x44] sm:$0x1] }
 0x20d   : > { %v2598_v1 = vor.u32 %v2596_v57, %v2595_v49  ;;  %v2603_v62 = vrot.slane %v2601_v39, 7  ;;  %v2599_v21 = vrot.slane %v2595_v49, 4 }
 0x20e   : > { %v2581_v47 = vor.u32 %v2579_v0, %v2578_v41  ;;  %v2586_v5 = vrot.slane %v2584_v3, 7  ;;  %v2582_v36 = vrot.slane %v2578_v41, 4  ;;  %v2776_v0 = vld [vmem:[#allocation3 + $0x38] sm:$0x1] }
 0x20f   : > { %v2766_v53 = vsel %vm5506_vm14, %v2598_v1, %v2765_v56  ;;  %v2606_v18 = vor.u32 %v2604_v60, %v2603_v62  ;;  %v2608_v55 = vrot.slane %v2603_v62, 4 }
 0x210   : > { %2767 = vst [vmem:[#allocation3 + $0x24] sm:$0xf] %v2766_v53  ;;  %v2759_v61 = vsel %vm5506_vm14, %v2581_v47, %v2758_v51  ;;  %v2589_v11 = vor.u32 %v2587_v12, %v2586_v5  ;;  %v2591_v17 = vrot.slane %v2586_v5, 4 }
 0x211   : > { %2760 = vst [vmem:[#allocation3 + $0x18] sm:$0xf] %v2759_v61  ;;  %v2607_v20 = vsel %vm4869_vm8, %v2599_v21, %v2606_v18  ;;  %v2770_v13 = vsel %vm5410_vm11, %v2608_v55, %v2769_v4 }
 0x212   : > { %2768 = vst.msk [vmem:[#allocation3 + $0x28] sm:$0xf] %vm2741_vm12, %v2607_v20  ;;  %2771 = vst [vmem:[#allocation3 + $0x2c] sm:$0x1] %v2770_v13  ;;  %v2590_v6 = vsel %vm4869_vm8, %v2582_v36, %v2589_v11  ;;  %v2763_v22 = vsel %vm5410_vm11, %v2591_v17, %v2762_v16 }
 0x213   : > { %2761 = vst.msk [vmem:[#allocation3 + $0x1c] sm:$0xf] %vm2741_vm12, %v2590_v6  ;;  %2764 = vst [vmem:[#allocation3 + $0x20] sm:$0x1] %v2763_v22 }
 0x222   : > { %v4362_v52 = vpop.f32.mrb[8].mxu0 }
 0x223   : > { %v2360_v58 = vadd.f32 %v4362_v52, %v5490_v44  ;;  %v2351_v63 = vpop.f32.mrb[9].mxu0 }
 0x224   : > { %v2352_v10 = vadd.f32 %v5490_v44, %v2351_v63  ;;  %v4363_v32 = vpop.f32.mrb[10].mxu0 }
 0x225   : > { %v2408_v25 = vmax.f32 %v2360_v58, 0.0  ;;  %v2363_v19 = vadd.f32 %v4363_v32, %v5490_v44  ;;  %v2354_v27 = vpop.f32.mrb[11].mxu0 }
 0x226   : > { %v2406_v28 = vmax.f32 %v2352_v10, 0.0  ;;  %v2355_v29 = vadd.f32 %v5490_v44, %v2354_v27  ;;  %v2793_v27 = vld [vmem:[#allocation3 + $0x54] sm:$0xf] }
 0x227   : > { %v4314_v9 = vpack.c.bf16 %v2408_v25, %v2408_v25  ;;  %v2409_v8 = vmax.f32 %v2363_v19, 0.0 }
 0x228   : > { %v4312_v34 = vpack.c.bf16 %v2406_v28, %v2406_v28  ;;  %v2407_v33 = vmax.f32 %v2355_v29, 0.0 }
 0x229   : > { %v2627_v35 = vshrl.u32 %v4314_v9, 16  ;;  %v4315_v37 = vpack.c.bf16 %v2409_v8, %v2409_v8  ;;  %v2630_v43 = vshll.u32 %v4314_v9, 16 }
 0x22a   : > { %v2610_v40 = vshrl.u32 %v4312_v34, 16  ;;  %v4313_v7 = vpack.c.bf16 %v2407_v33, %v2407_v33  ;;  %v2613_v30 = vshll.u32 %v4312_v34, 16  ;;  %v2786_v34 = vld [vmem:[#allocation3 + $0x48] sm:$0xf] }
 0x22b   : > { %v2629_v15 = vrot.slane %v2627_v35, 7  ;;  %v2635_v26 = vshrl.u32 %v4315_v37, 16  ;;  %v2638_v48 = vshll.u32 %v4315_v37, 16 }
 0x22c   : > { %v2612_v31 = vrot.slane %v2610_v40, 7  ;;  %v2618_v23 = vshrl.u32 %v4313_v7, 16  ;;  %v2621_v49 = vshll.u32 %v4313_v7, 16  ;;  %v2797_v40 = vld [vmem:[#allocation3 + $0x5c] sm:$0x1] }
 0x22d   : > { %v2632_v50 = vor.u32 %v2630_v43, %v2629_v15  ;;  %v2637_v54 = vrot.slane %v2635_v26, 7  ;;  %v2633_v57 = vrot.slane %v2629_v15, 4 }
 0x22e   : > { %v2615_v42 = vor.u32 %v2613_v30, %v2612_v31  ;;  %v2620_v59 = vrot.slane %v2618_v23, 7  ;;  %v2616_v3 = vrot.slane %v2612_v31, 4  ;;  %v2790_v30 = vld [vmem:[#allocation3 + $0x50] sm:$0x1] }
 0x22f   : > { %v2780_v39 = vsel %vm5506_vm14, %v2632_v50, %v2779_v46  ;;  %v2640_v56 = vor.u32 %v2638_v48, %v2637_v54  ;;  %v2642_v41 = vrot.slane %v2637_v54, 4 }
 0x230   : > { %2781 = vst [vmem:[#allocation3 + $0x3c] sm:$0xf] %v2780_v39  ;;  %v2773_v1 = vsel %vm5506_vm14, %v2615_v42, %v2772_v38  ;;  %v2623_v51 = vor.u32 %v2621_v49, %v2620_v59  ;;  %v2625_v62 = vrot.slane %v2620_v59, 4 }
 0x231   : > { %2774 = vst [vmem:[#allocation3 + $0x30] sm:$0xf] %v2773_v1  ;;  %v2641_v60 = vsel %vm4869_vm8, %v2633_v57, %v2640_v56  ;;  %v2784_v47 = vsel %vm5410_vm11, %v2642_v41, %v2783_v45 }
 0x232   : > { %2782 = vst.msk [vmem:[#allocation3 + $0x40] sm:$0xf] %vm2741_vm12, %v2641_v60  ;;  %2785 = vst [vmem:[#allocation3 + $0x44] sm:$0x1] %v2784_v47  ;;  %v2624_v4 = vsel %vm4869_vm8, %v2616_v3, %v2623_v51  ;;  %v2777_v5 = vsel %vm5410_vm11, %v2625_v62, %v2776_v0 }
 0x233   : > { %2775 = vst.msk [vmem:[#allocation3 + $0x34] sm:$0xf] %vm2741_vm12, %v2624_v4  ;;  %2778 = vst [vmem:[#allocation3 + $0x38] sm:$0x1] %v2777_v5 }
 0x242   : > { %v4366_v12 = vpop.f32.mrb[12].mxu0 }
 0x243   : > { %v2376_v21 = vadd.f32 %v4366_v12, %v5490_v44  ;;  %v2367_v53 = vpop.f32.mrb[13].mxu0 }
 0x244   : > { %v2368_v18 = vadd.f32 %v5490_v44, %v2367_v53  ;;  %v4367_v55 = vpop.f32.mrb[14].mxu0 }
 0x245   : > { %v2412_v16 = vmax.f32 %v2376_v21, 0.0  ;;  %v2379_v36 = vadd.f32 %v4367_v55, %v5490_v44  ;;  %v2370_v61 = vpop.f32.mrb[15].mxu0 }
 0x246   : > { %v2410_v11 = vmax.f32 %v2368_v18, 0.0  ;;  %v2371_v17 = vadd.f32 %v5490_v44, %v2370_v61  ;;  %v2807_v61 = vld [vmem:[#allocation3 + $0x6c] sm:$0xf] }
 0x247   : > { %v4318_v20 = vpack.c.bf16 %v2412_v16, %v2412_v16  ;;  %v2413_v13 = vmax.f32 %v2379_v36, 0.0 }
 0x248   : > { %v4316_v6 = vpack.c.bf16 %v2410_v11, %v2410_v11  ;;  %v2411_v22 = vmax.f32 %v2371_v17, 0.0 }
 0x249   : > { %v2661_v52 = vshrl.u32 %v4318_v20, 16  ;;  %v4319_v58 = vpack.c.bf16 %v2413_v13, %v2413_v13  ;;  %v2664_v25 = vshll.u32 %v4318_v20, 16 }
 0x24a   : > { %v2644_v63 = vshrl.u32 %v4316_v6, 16  ;;  %v4317_v10 = vpack.c.bf16 %v2411_v22, %v2411_v22  ;;  %v2647_v29 = vshll.u32 %v4316_v6, 16  ;;  %v2800_v6 = vld [vmem:[#allocation3 + $0x60] sm:$0xf] }
 0x24b   : > { %v2663_v32 = vrot.slane %v2661_v52, 7  ;;  %v2669_v19 = vshrl.u32 %v4319_v58, 16  ;;  %v2672_v35 = vshll.u32 %v4319_v58, 16  ;;  %v2811_v58 = vld [vmem:[#allocation3 + $0x74] sm:$0x1] }
 0x24c   : > { %v2646_v28 = vrot.slane %v2644_v63, 7  ;;  %v2652_v9 = vshrl.u32 %v4317_v10, 16  ;;  %v2655_v15 = vshll.u32 %v4317_v10, 16 }
 0x24d   : > { %v2666_v8 = vor.u32 %v2664_v25, %v2663_v32  ;;  %v2671_v33 = vrot.slane %v2669_v19, 7  ;;  %v2667_v43 = vrot.slane %v2663_v32, 4 }
 0x24e   : > { %v2649_v37 = vor.u32 %v2647_v29, %v2646_v28  ;;  %v2654_v7 = vrot.slane %v2652_v9, 7  ;;  %v2650_v23 = vrot.slane %v2646_v28, 4  ;;  %v2804_v28 = vld [vmem:[#allocation3 + $0x68] sm:$0x1] }
 0x24f   : > { %v2794_v26 = vsel %vm5506_vm14, %v2666_v8, %v2793_v27  ;;  %v2674_v46 = vor.u32 %v2672_v35, %v2671_v33  ;;  %v2676_v31 = vrot.slane %v2671_v33, 4 }
 0x250   : > { %2795 = vst [vmem:[#allocation3 + $0x54] sm:$0xf] %v2794_v26  ;;  %v2787_v50 = vsel %vm5506_vm14, %v2649_v37, %v2786_v34  ;;  %v2657_v38 = vor.u32 %v2655_v15, %v2654_v7  ;;  %v2659_v54 = vrot.slane %v2654_v7, 4  ;;  %v2817_v7 = vld [vmem:[#allocation3] sm:$0xf] (!%p4066_p13)  ;;  %v4668_v26 = vmov (!%p4066_p13), 0  }
 0x251   : > { %2788 = vst [vmem:[#allocation3 + $0x48] sm:$0xf] %v2787_v50  ;;  %v2675_v48 = vsel %vm4869_vm8, %v2667_v43, %v2674_v46  ;;  %v2798_v42 = vsel %vm5410_vm11, %v2676_v31, %v2797_v40  ;;  %v2821_v15 = vld [vmem:[#allocation3 + $0x8] sm:$0x1] (!%p4066_p13)  ;;  %v2818_v43 = vsel (!%p4066_p13), %vm5506_vm14, 0, %v2817_v7 }
 0x252   : > { %2796 = vst.msk [vmem:[#allocation3 + $0x58] sm:$0xf] %vm2741_vm12, %v2675_v48  ;;  %2799 = vst [vmem:[#allocation3 + $0x5c] sm:$0x1] %v2798_v42  ;;  %v2658_v45 = vsel %vm4869_vm8, %v2650_v23, %v2657_v38  ;;  %v2791_v59 = vsel %vm5410_vm11, %v2659_v54, %v2790_v30  ;;  %v2822_v14 = vsel (!%p4066_p13), %vm5410_vm11, 0, %v2821_v15 }
 0x253   : > { %2789 = vst.msk [vmem:[#allocation3 + $0x4c] sm:$0xf] %vm2741_vm12, %v2658_v45  ;;  %2792 = vst [vmem:[#allocation3 + $0x50] sm:$0x1] %v2791_v59 }
 0x254   : > { %2820 = vst.msk [vmem:[#allocation3 + $0x4] sm:$0xf] (!%p4066_p13), %vm2741_vm12, %v4668_v26  ;;  %2819 = vst [vmem:[#allocation3] sm:$0xf] (!%p4066_p13), %v2818_v43 }
 0x255   : > { %2823 = vst [vmem:[#allocation3 + $0x8] sm:$0x1] (!%p4066_p13), %v2822_v14 }
 0x25f   : > { %v4370_v49 = vpop.f32.mrb[16].mxu0 }
 0x260   : > { %v2392_v57 = vadd.f32 %v4370_v49, %v5490_v44  ;;  %v2383_v39 = vpop.f32.mrb[17].mxu0 }
 0x261   : > { %v2384_v56 = vadd.f32 %v5490_v44, %v2383_v39  ;;  %v4371_v41 = vpop.f32.mrb[18].mxu0 }
 0x262   : > { %v2416_v0 = vmax.f32 %v2392_v57, 0.0  ;;  %v2395_v3 = vadd.f32 %v4371_v41, %v5490_v44  ;;  %v2386_v1 = vpop.f32.mrb[19].mxu0 }
 0x263   : > { %v2414_v51 = vmax.f32 %v2384_v56, 0.0  ;;  %v2387_v62 = vadd.f32 %v5490_v44, %v2386_v1 }
 0x264   : > { %v4322_v60 = vpack.c.bf16 %v2416_v0, %v2416_v0  ;;  %v2417_v47 = vmax.f32 %v2395_v3, 0.0 }
 0x265   : > { %v4320_v4 = vpack.c.bf16 %v2414_v51, %v2414_v51  ;;  %v2415_v5 = vmax.f32 %v2387_v62, 0.0 }
 0x266   : > { %v2695_v12 = vshrl.u32 %v4322_v60, 16  ;;  %v4323_v21 = vpack.c.bf16 %v2417_v47, %v2417_v47  ;;  %v2698_v16 = vshll.u32 %v4322_v60, 16 }
 0x267   : > { %v2678_v53 = vshrl.u32 %v4320_v4, 16  ;;  %v4321_v18 = vpack.c.bf16 %v2415_v5, %v2415_v5  ;;  %v2681_v17 = vshll.u32 %v4320_v4, 16 }
 0x268   : > { %v2697_v55 = vrot.slane %v2695_v12, 7  ;;  %v2703_v36 = vshrl.u32 %v4323_v21, 16  ;;  %v2706_v52 = vshll.u32 %v4323_v21, 16 }
 0x269   : > { %v2680_v11 = vrot.slane %v2678_v53, 7  ;;  %v2686_v20 = vshrl.u32 %v4321_v18, 16  ;;  %v2689_v10 = vshll.u32 %v4321_v18, 16 }
 0x26a   : > { %v2700_v13 = vor.u32 %v2698_v16, %v2697_v55  ;;  %v2705_v22 = vrot.slane %v2703_v36, 7  ;;  %v2701_v32 = vrot.slane %v2697_v55, 4  ;;  %2816 = sbr.rel (%p4066_p13) target bundleno = 625 (0x271), region = 68 }
 0x26b   : > { %v2683_v44 = vor.u32 %v2681_v17, %v2680_v11  ;;  %v2688_v63 = vrot.slane %v2686_v20, 7  ;;  %v2684_v29 = vrot.slane %v2680_v11, 4 }
 0x26c   : > { %v2808_v25 = vsel %vm5506_vm14, %v2700_v13, %v2807_v61  ;;  %v2708_v19 = vor.u32 %v2706_v52, %v2705_v22  ;;  %v2710_v27 = vrot.slane %v2705_v22, 4 }
 0x26d   : > { %2809 = vst [vmem:[#allocation3 + $0x6c] sm:$0xf] %v2808_v25  ;;  %v2801_v9 = vsel %vm5506_vm14, %v2683_v44, %v2800_v6  ;;  %v2691_v8 = vor.u32 %v2689_v10, %v2688_v63  ;;  %v2693_v34 = vrot.slane %v2688_v63, 4 }
 0x26e   : > { %2802 = vst [vmem:[#allocation3 + $0x60] sm:$0xf] %v2801_v9  ;;  %v2709_v33 = vsel %vm4869_vm8, %v2701_v32, %v2708_v19  ;;  %v2812_v35 = vsel %vm5410_vm11, %v2710_v27, %v2811_v58 }
 0x26f   : > { %2810 = vst.msk [vmem:[#allocation3 + $0x70] sm:$0xf] %vm2741_vm12, %v2709_v33  ;;  %2813 = vst [vmem:[#allocation3 + $0x74] sm:$0x1] %v2812_v35  ;;  %v2692_v37 = vsel %vm4869_vm8, %v2684_v29, %v2691_v8  ;;  %v2805_v40 = vsel %vm5410_vm11, %v2693_v34, %v2804_v28 }
 0x270   : > { %2803 = vst.msk [vmem:[#allocation3 + $0x64] sm:$0xf] %vm2741_vm12, %v2692_v37  ;;  %2806 = vst [vmem:[#allocation3 + $0x68] sm:$0x1] %v2805_v40 }
 0x271 PF: > { %2826 = sbr.rel (%p4072_p1) target bundleno = 633 (0x279), region = 72  ;;  %v4669_v23 = vmov (!%p4072_p1), 0  }
 0x272   : > { %2831 = vst.msk [vmem:[#allocation3 + $0x70] sm:$0xf] (!%p4072_p1), %vm2741_vm12, %v4669_v23 }
 0x274   : > { %v2828_v46 = vld [vmem:[#allocation3 + $0x6c] sm:$0xf] (!%p4072_p1) }
 0x275   : > { %v2829_v30 = vsel (!%p4072_p1), %vm5506_vm14, 0, %v2828_v46 }
 0x276   : > { %v2832_v31 = vld [vmem:[#allocation3 + $0x74] sm:$0x1] (!%p4072_p1)  ;;  %2830 = vst [vmem:[#allocation3 + $0x6c] sm:$0xf] (!%p4072_p1), %v2829_v30 }
 0x277   : > { %v2833_v50 = vsel (!%p4072_p1), %vm5410_vm11, 0, %v2832_v31 }
 0x278   : > { %2834 = vst [vmem:[#allocation3 + $0x74] sm:$0x1] %v2833_v50 }
 0x279 PF: > { %v2836_v38 = vld [vmem:[#allocation3 + $0x4] sm:$0xf]  ;;  %v2859_v54 = vld [vmem:[#allocation3] sm:$0xe]  ;;  %v2868_v49 = vld [vmem:[#allocation3 + $0xc] sm:$0xf] }
 0x27a   : > { %v4546_v48 = vld [vmem:[#allocation3 + $0x8] ss:$0 sps:$4 sm:$0x11]   ;;  %v4215_v42 = vcombine.low %v2859_v54, %v2836_v38  ;;  %v2835_v45 = vld [vmem:[#allocation3] sm:$0xf]  ;;  %s4670_s24 = smov 48  }
 0x27b   : > { %v5610_v59 = vcombine.low %v2835_v45, %v2836_v38  ;;  %v2869_v57 = vld [vmem:[#allocation3 + $0x10] sm:$0xf]  ;;  %v3134_v39 = vrot.slane %v4546_v48, 1  ;;  %v2892_v41 = vld [vmem:[#allocation3 + $0xc] sm:$0xe]  ;;  %v3005_v12 = vshll.u32 %v4546_v48, 16 }
 0x27c   : > { %v3133_v2 = vrot.slane %v4215_v42, 1  ;;  %v4223_v56 = vcombine.low %v2868_v49, %v2869_v57  ;;  %v2901_v0 = vld [vmem:[#allocation3 + $0x18] sm:$0xf]  ;;  %v4550_v3 = vld [vmem:[#allocation3 + $0x14] ss:$0 sps:$4 sm:$0x11]   ;;  %v4239_v24 = vcombine.low %v2892_v41, %v2869_v57 }
 0x27d   : > { %v2902_v1 = vld [vmem:[#allocation3 + $0x1c] sm:$0xf]  ;;  %v2998_v60 = vshrl.u32 %v5610_v59, 16  ;;  %v3000_v47 = vshll.u32 %v5610_v59, 16  ;;  %v3390_v5 = vrot.slane %v4550_v3, 1  ;;  %v3261_v16 = vshll.u32 %v4550_v3, 16 }
 0x27e   : > { %v3135_v51 = vsel %vm1374_vm9, %v3133_v2, %v3134_v39  ;;  %3213 = vrot.lane.b32.xlu1 %v4223_v56, %s4665_s16  ;;  %v4247_v62 = vcombine.low %v2901_v0, %v2902_v1  ;;  %v3389_v4 = vrot.slane %v4239_v24, 1  ;;  %v3254_v21 = vshrl.u32 %v4223_v56, 16  ;;  %v2925_v53 = vld [vmem:[#allocation3 + $0x18] sm:$0xe]  ;;  %v2837_v6 = vld [vmem:[#allocation3 + $0xc] sm:$0xf] }
 0x27f   : > { %3157 = vrot.lane.b32.xlu0 %v3135_v51, %s4663_s14  ;;  %v3002_v18 = vrot.slane %v3000_v47, 1  ;;  %v3256_v55 = vshll.u32 %v4223_v56, 16  ;;  %v4553_v36 = vld [vmem:[#allocation3 + $0x20] ss:$0 sps:$4 sm:$0x11]   ;;  %v4263_v61 = vcombine.low %v2925_v53, %v2902_v1  ;;  %v3007_v17 = vrot.slane %v3005_v12, 1 }
 0x280   : > { %v3391_v11 = vsel %vm1374_vm9, %v3389_v4, %v3390_v5  ;;  %v3510_v20 = vshrl.u32 %v4247_v62, 16  ;;  %v3512_v13 = vshll.u32 %v4247_v62, 16  ;;  %v3263_v44 = vrot.slane %v3261_v16, 1  ;;  %v2838_v63 = vld [vmem:[#allocation3 + $0x10] sm:$0xf]  ;;  %s4671_s21 = smov 40  }
 0x281   : > { %v3003_v22 = vor.u32 %v3002_v18, %v2998_v60  ;;  %v3258_v52 = vrot.slane %v3256_v55, 1  ;;  %v3517_v58 = vshll.u32 %v4553_v36, 16  ;;  %v3645_v32 = vrot.slane %v4263_v61, 1  ;;  %v4556_v9 = vld [vmem:[#allocation3 + $0x14] ss:$0 sps:$4 sm:$0x11]  }
 0x282   : > { %3469 = vrot.lane.b32.xlu1 %v4247_v62, %s4670_s24  ;;  %v3514_v10 = vrot.slane %v3512_v13, 1  ;;  %v3646_v25 = vrot.slane %v4553_v36, 1  ;;  %v5620_v19 = vcombine.low %v2837_v6, %v2838_v63  ;;  %v2860_v8 = vld [vmem:[#allocation3 + $0xc] sm:$0xe]  ;;  %v2870_v37 = vld [vmem:[#allocation3 + $0x18] sm:$0xf] }
 0x283   : > { %3413 = vrot.lane.b32.xlu0 %v3391_v11, %s4671_s21  ;;  %v3008_v27 = vsel %vm1203_vm10, %v3003_v22, %v3007_v17  ;;  %v3259_v28 = vor.u32 %v3258_v52, %v3254_v21  ;;  %v3519_v29 = vrot.slane %v3517_v58, 1  ;;  %v2871_v40 = vld [vmem:[#allocation3 + $0x1c] sm:$0xf]  ;;  %v3017_v15 = vshll.u32 %v4556_v9, 16  ;;  %v2893_v14 = vld [vmem:[#allocation3 + $0x18] sm:$0xe] }
 0x284   : > { %v3515_v34 = vor.u32 %v3514_v10, %v3510_v20  ;;  %v3010_v33 = vshrl.u32 %v5620_v19, 16  ;;  %v3012_v35 = vshll.u32 %v5620_v19, 16  ;;  %v4216_v43 = vcombine.low %v2860_v8, %v2838_v63  ;;  %v4559_v23 = vld [vmem:[#allocation3 + $0x20] ss:$0 sps:$4 sm:$0x11]   ;;  %s4672_s9 = smov 56  }
 0x285   : > { %v3264_v7 = vsel %vm1203_vm10, %v3259_v28, %v3263_v44  ;;  %v3137_v26 = vrot.slane %v4556_v9, 1  ;;  %v3647_v46 = vsel %vm1374_vm9, %v3645_v32, %v3646_v25  ;;  %v4224_v30 = vcombine.low %v2870_v37, %v2871_v40  ;;  %v2903_v50 = vld [vmem:[#allocation3 + $0x24] sm:$0xf]  ;;  %v2904_v45 = vld [vmem:[#allocation3 + $0x28] sm:$0xf]  ;;  %s4673_s10 = smov 64  }
 0x286   : > { %3349 = vrot.lane.b32.xlu1 %v3264_v7, %s4667_s19  ;;  %v3014_v31 = vrot.slane %v3012_v35, 1  ;;  %v3520_v38 = vsel %vm1203_vm10, %v3515_v34, %v3519_v29  ;;  %v3019_v54 = vrot.slane %v3017_v15, 1  ;;  %v3136_v48 = vrot.slane %v4216_v43, 1  ;;  %v4562_v41 = vld [vmem:[#allocation3 + $0x2c] ss:$0 sps:$4 sm:$0x11]  }
 0x287   : > { %3093 = vrot.lane.b32.xlu0 %v3008_v27, %s4661_s8  ;;  %v4240_v42 = vcombine.low %v2893_v14, %v2871_v40  ;;  %v3266_v57 = vshrl.u32 %v4224_v30, 16  ;;  %v3268_v2 = vshll.u32 %v4224_v30, 16  ;;  %v3273_v39 = vshll.u32 %v4559_v23, 16  ;;  %v2839_v0 = vld [vmem:[#allocation3 + $0x18] sm:$0xf] }
 0x288   : > { %v3015_v49 = vor.u32 %v3014_v31, %v3010_v33  ;;  %v4248_v56 = vcombine.low %v2903_v50, %v2904_v45  ;;  %v2926_v24 = vld [vmem:[#allocation3 + $0x24] sm:$0xe]  ;;  %v2840_v1 = vld [vmem:[#allocation3 + $0x1c] sm:$0xf]  ;;  %v3138_v62 = vsel %vm1374_vm9, %v3136_v48, %v3137_v26  ;;  %v3393_v12 = vrot.slane %v4559_v23, 1 }
 0x289   : > { %v3270_v3 = vrot.slane %v3268_v2, 1  ;;  %v3275_v60 = vrot.slane %v3273_v39, 1  ;;  %v3392_v5 = vrot.slane %v4240_v42, 1  ;;  %v5634_v21 = vcombine.low %v2839_v0, %v2840_v1  ;;  %v2861_v18 = vld [vmem:[#allocation3 + $0x18] sm:$0xe] }
 0x28a   : > { %3669 = vrot.lane.b32.xlu1 %v3647_v46, %s4673_s10  ;;  %v3020_v51 = vsel %vm1203_vm10, %v3015_v49, %v3019_v54  ;;  %v3524_v47 = vshll.u32 %v4248_v56, 16  ;;  %v4264_v53 = vcombine.low %v2926_v24, %v2904_v45  ;;  %v2872_v55 = vld [vmem:[#allocation3 + $0x24] sm:$0xf]  ;;  %v5636_v16 = vld [vmem:[#allocation3 + $0x28] sm:$0xf]  ;;  %v3529_v36 = vshll.u32 %v4562_v41, 16 }
 0x28b   : > { %3605 = vrot.lane.b32.xlu0 %v3520_v38, %s4672_s9  ;;  %v3271_v4 = vor.u32 %v3270_v3, %v3266_v57  ;;  %v4565_v61 = vld [vmem:[#allocation3 + $0x20] ss:$0 sps:$4 sm:$0x11]   ;;  %v3522_v17 = vshrl.u32 %v4248_v56, 16  ;;  %v3024_v13 = vshll.u32 %v5634_v21, 16  ;;  %v4225_v6 = vcombine.low %v2872_v55, %v5636_v16 }
 0x28c   : > { %v3526_v20 = vrot.slane %v3524_v47, 1  ;;  %v3648_v22 = vrot.slane %v4264_v53, 1  ;;  %v3649_v52 = vrot.slane %v4562_v41, 1  ;;  %v4217_v44 = vcombine.low %v2861_v18, %v2840_v1  ;;  %v4568_v32 = vld [vmem:[#allocation3 + $0x2c] ss:$0 sps:$4 sm:$0x11]  }
 0x28d   : > { %v3276_v11 = vsel %vm1203_vm10, %v3271_v4, %v3275_v60  ;;  %v3531_v58 = vrot.slane %v3529_v36, 1  ;;  %v3022_v63 = vshrl.u32 %v5634_v21, 16  ;;  %v3029_v10 = vshll.u32 %v4565_v61, 16  ;;  %v2905_v9 = vld [vmem:[#allocation3 + $0x30] sm:$0xf] }
 0x28e   : > { %3159 = vrot.lane.b32.xlu1 %v3138_v62, %s4663_s14  ;;  %v3394_v25 = vsel %vm1374_vm9, %v3392_v5, %v3393_v12  ;;  %v3527_v27 = vor.u32 %v3526_v20, %v3522_v17  ;;  %v3026_v28 = vrot.slane %v3024_v13, 1  ;;  %v3280_v29 = vshll.u32 %v4225_v6, 16  ;;  %v2906_v8 = vld [vmem:[#allocation3 + $0x34] sm:$0xf]  ;;  %v2841_v46 = vld [vmem:[#allocation3 + $0x24] sm:$0xf] }
 0x28f   : > { %3095 = vrot.lane.b32.xlu0 %v3020_v51, %s4661_s8  ;;  %v3650_v34 = vsel %vm1374_vm9, %v3648_v22, %v3649_v52  ;;  %v3139_v33 = vrot.slane %v4217_v44, 1  ;;  %v3031_v35 = vrot.slane %v3029_v10, 1  ;;  %v3140_v37 = vrot.slane %v4565_v61, 1  ;;  %v2842_v31 = vld [vmem:[#allocation3 + $0x28] sm:$0xf] }
 0x290   : > { %v3285_v40 = vshll.u32 %v4568_v32, 16  ;;  %v4249_v7 = vcombine.low %v2905_v9, %v2906_v8  ;;  %v3532_v15 = vsel %vm1203_vm10, %v3527_v27, %v3531_v58  ;;  %v3027_v43 = vor.u32 %v3026_v28, %v3022_v63  ;;  %v4571_v23 = vld [vmem:[#allocation3 + $0x38] ss:$0 sps:$4 sm:$0x11]   ;;  %v2927_v54 = vld [vmem:[#allocation3 + $0x30] sm:$0xe] }
 0x291   : > { %v3278_v26 = vshrl.u32 %v4225_v6, 16  ;;  %v3282_v14 = vrot.slane %v3280_v29, 1  ;;  %v3141_v50 = vsel %vm1374_vm9, %v3139_v33, %v3140_v37  ;;  %v5654_v48 = vcombine.low %v2841_v46, %v2842_v31  ;;  %v2874_v2 = vld [vmem:[#allocation3 + $0x30] sm:$0xf]  ;;  %v2875_v39 = vld [vmem:[#allocation3 + $0x34] sm:$0xf] }
 0x292   : > { %3351 = vrot.lane.b32.xlu1 %v3276_v11, %s4667_s19  ;;  %v3536_v38 = vshll.u32 %v4249_v7, 16  ;;  %v3032_v42 = vsel %vm1203_vm10, %v3027_v43, %v3031_v35  ;;  %v3287_v49 = vrot.slane %v3285_v40, 1  ;;  %v4265_v41 = vcombine.low %v2927_v54, %v2906_v8  ;;  %v4574_v0 = vld [vmem:[#allocation3 + $0x2c] ss:$0 sps:$4 sm:$0x11]  }
 0x293   : > { %3215 = vrot.lane.b32.xlu0 %v4224_v30, %s4665_s16  ;;  %v2894_v30 = vld [vmem:[#allocation3 + $0x24] sm:$0xe]  ;;  %v3283_v45 = vor.u32 %v3282_v14, %v3278_v26  ;;  %v3534_v3 = vshrl.u32 %v4249_v7, 16  ;;  %v3036_v1 = vshll.u32 %v5654_v48, 16  ;;  %v3396_v60 = vrot.slane %v4568_v32, 1 }
 0x294   : > { %v4241_v57 = vcombine.low %v2894_v30, %v5636_v16  ;;  %v3538_v24 = vrot.slane %v3536_v38, 1  ;;  %v2862_v47 = vld [vmem:[#allocation3 + $0x24] sm:$0xe]  ;;  %v4226_v4 = vcombine.low %v2874_v2, %v2875_v39  ;;  %v3651_v12 = vrot.slane %v4265_v41, 1  ;;  %v2907_v13 = vld [vmem:[#allocation3 + $0x3c] sm:$0xf] }
 0x295   : > { %v3288_v51 = vsel %vm1203_vm10, %v3283_v45, %v3287_v49  ;;  %v3652_v53 = vrot.slane %v4571_v23, 1  ;;  %v3041_v18 = vshll.u32 %v4574_v0, 16  ;;  %v3034_v16 = vshrl.u32 %v5654_v48, 16  ;;  %v4577_v17 = vld [vmem:[#allocation3 + $0x38] ss:$0 sps:$4 sm:$0x11]  }
 0x296   : > { %3471 = vrot.lane.b32.xlu1 %v4248_v56, %s4670_s24  ;;  %v3541_v56 = vshll.u32 %v4571_v23, 16  ;;  %v3395_v62 = vrot.slane %v4241_v57, 1  ;;  %v3539_v55 = vor.u32 %v3538_v24, %v3534_v3  ;;  %v3038_v36 = vrot.slane %v3036_v1, 1  ;;  %v2908_v22 = vld [vmem:[#allocation3 + $0x40] sm:$0xf] }
 0x297   : > { %3415 = vrot.lane.b32.xlu0 %v3394_v25, %s4671_s21  ;;  %v4218_v61 = vcombine.low %v2862_v47, %v2842_v31  ;;  %v3292_v20 = vshll.u32 %v4226_v4, 16  ;;  %v3653_v52 = vsel %vm1374_vm9, %v3651_v12, %v3652_v53  ;;  %v3143_v44 = vrot.slane %v4574_v0, 1  ;;  %v2895_v32 = vld [vmem:[#allocation3 + $0x30] sm:$0xe]  ;;  %v2844_v8 = vld [vmem:[#allocation3 + $0x34] sm:$0xf] }
 0x298   : > { %v3543_v5 = vrot.slane %v3541_v56, 1  ;;  %v3397_v11 = vsel %vm1374_vm9, %v3395_v62, %v3396_v60  ;;  %v3039_v58 = vor.u32 %v3038_v36, %v3034_v16  ;;  %v3043_v63 = vrot.slane %v3041_v18, 1  ;;  %v2843_v9 = vld [vmem:[#allocation3 + $0x30] sm:$0xf]  ;;  %v2928_v40 = vld [vmem:[#allocation3 + $0x3c] sm:$0xe] }
 0x299   : > { %v3142_v10 = vrot.slane %v4218_v61, 1  ;;  %v3290_v25 = vshrl.u32 %v4226_v4, 16  ;;  %v3294_v27 = vrot.slane %v3292_v20, 1  ;;  %v3297_v28 = vshll.u32 %v4577_v17, 16  ;;  %v2876_v46 = vld [vmem:[#allocation3 + $0x3c] sm:$0xf] }
 0x29a   : > { %3671 = vrot.lane.b32.xlu1 %v3650_v34, %s4673_s10  ;;  %v4250_v29 = vcombine.low %v2907_v13, %v2908_v22  ;;  %v4242_v34 = vcombine.low %v2895_v32, %v2875_v39  ;;  %v4580_v33 = vld [vmem:[#allocation3 + $0x44] ss:$0 sps:$4 sm:$0x11]   ;;  %v3044_v35 = vsel %vm1203_vm10, %v3039_v58, %v3043_v63  ;;  %v5674_v26 = vcombine.low %v2843_v9, %v2844_v8  ;;  %v5677_v31 = vld [vmem:[#allocation3 + $0x40] sm:$0xf] }
 0x29b   : > { %3607 = vrot.lane.b32.xlu0 %v3532_v15, %s4672_s9  ;;  %v3144_v37 = vsel %vm1374_vm9, %v3142_v10, %v3143_v44  ;;  %v3299_v15 = vrot.slane %v3297_v28, 1  ;;  %v4674_v14 = vmov 0.0   ;;  %v3399_v23 = vrot.slane %v4577_v17, 1  ;;  %v2863_v2 = vld [vmem:[#allocation3 + $0x30] sm:$0xe] }
 0x29c   : > { %v3548_v43 = vshll.u32 %v4250_v29, 16  ;;  %4372 = vmatprep.subr.bf16.mxu1 %v4674_v14  ;;  %v3398_v30 = vrot.slane %v4242_v34, 1  ;;  %v4266_v38 = vcombine.low %v2928_v40, %v2908_v22  ;;  %v3546_v54 = vshrl.u32 %v4250_v29, 16  ;;  %v2909_v12 = vld [vmem:[#allocation3 + $0x48] sm:$0xf] }
 0x29d   : > { %v3048_v57 = vshll.u32 %v5674_v26, 16  ;;  %v4227_v39 = vcombine.low %v2876_v46, %v5677_v31  ;;  %v3655_v41 = vrot.slane %v4580_v33, 1  ;;  %v3046_v3 = vshrl.u32 %v5674_v26, 16  ;;  %v2910_v53 = vld [vmem:[#allocation3 + $0x4c] sm:$0xf] }
 0x29e   : > { %3161 = vrot.lane.b32.xlu1 %v3141_v50, %s4663_s14  ;;  %v3553_v50 = vshll.u32 %v4580_v33, 16  ;;  %v3550_v49 = vrot.slane %v3548_v43, 1  ;;  %v3654_v56 = vrot.slane %v4266_v38, 1  ;;  %v4219_v1 = vcombine.low %v2863_v2, %v2844_v8  ;;  %v2896_v22 = vld [vmem:[#allocation3 + $0x3c] sm:$0xe] }
 0x29f   : > { %3097 = vrot.lane.b32.xlu0 %v3032_v42, %s4661_s8  ;;  %v4583_v42 = vld [vmem:[#allocation3 + $0x38] ss:$0 sps:$4 sm:$0x11]   ;;  %v3400_v62 = vsel %vm1374_vm9, %v3398_v30, %v3399_v23  ;;  %v3050_v47 = vrot.slane %v3048_v57, 1  ;;  %v4251_v61 = vcombine.low %v2909_v12, %v2910_v53  ;;  %v3302_v20 = vshrl.u32 %v4227_v39, 16 }
 0x2a0   : > { %v3555_v0 = vrot.slane %v3553_v50, 1  ;;  %v3053_v24 = vshll.u32 %v4583_v42, 16  ;;  %v3551_v60 = vor.u32 %v3550_v49, %v3546_v54  ;;  %v3656_v18 = vsel %vm1374_vm9, %v3654_v56, %v3655_v41  ;;  %v2846_v44 = vld [vmem:[#allocation3 + $0x40] sm:$0xf]  ;;  %v2929_v32 = vld [vmem:[#allocation3 + $0x48] sm:$0xe] }
 0x2a1   : > { %v3145_v16 = vrot.slane %v4219_v1, 1  ;;  %v3051_v17 = vor.u32 %v3050_v47, %v3046_v3  ;;  %v4243_v63 = vcombine.low %v2896_v22, %v5677_v31  ;;  %v3560_v10 = vshll.u32 %v4251_v61, 16  ;;  %v2878_v9 = vld [vmem:[#allocation3 + $0x48] sm:$0xf]  ;;  %v2879_v8 = vld [vmem:[#allocation3 + $0x4c] sm:$0xf] }
 0x2a2   : > { %3353 = vrot.lane.b32.xlu1 %v3288_v51, %s4667_s19  ;;  %v4586_v51 = vld [vmem:[#allocation3 + $0x44] ss:$0 sps:$4 sm:$0x11]   ;;  %v3558_v33 = vshrl.u32 %v4251_v61, 16  ;;  %v2864_v40 = vld [vmem:[#allocation3 + $0x3c] sm:$0xe]  ;;  %v4228_v30 = vcombine.low %v2878_v9, %v2879_v8 }
 0x2a3   : > { %3217 = vrot.lane.b32.xlu0 %v4225_v6, %s4665_s16  ;;  %v3544_v6 = vsel %vm1203_vm10, %v3539_v55, %v3543_v5  ;;  %v3304_v5 = vshll.u32 %v4227_v39, 16  ;;  %v3146_v55 = vrot.slane %v4583_v42, 1  ;;  %v3309_v36 = vshll.u32 %v4586_v51, 16  ;;  %v4595_v49 = vld [vmem:[#allocation3 + $0x50] ss:$0 sps:$4 sm:$0x11]  }
 0x2a4   : > { %v3402_v34 = vrot.slane %v4586_v51, 1  ;;  %v3401_v46 = vrot.slane %v4243_v63, 1  ;;  %v4220_v38 = vcombine.low %v2864_v40, %v2846_v44  ;;  %v3316_v41 = vshll.u32 %v4228_v30, 16  ;;  %v2912_v3 = vld [vmem:[#allocation3 + $0x58] sm:$0xf] }
 0x2a5   : > { %v3306_v13 = vrot.slane %v3304_v5, 1  ;;  %v3147_v58 = vsel %vm1374_vm9, %v3145_v16, %v3146_v55  ;;  %v3311_v28 = vrot.slane %v3309_v36, 1  ;;  %v2897_v47 = vld [vmem:[#allocation3 + $0x48] sm:$0xe]  ;;  %v3314_v12 = vshrl.u32 %v4228_v30, 16 }
 0x2a6   : > { %3473 = vrot.lane.b32.xlu1 %v4249_v7, %s4670_s24  ;;  %v3295_v7 = vor.u32 %v3294_v27, %v3290_v25  ;;  %v3403_v57 = vsel %vm1374_vm9, %v3401_v46, %v3402_v34  ;;  %v3148_v1 = vrot.slane %v4220_v38, 1  ;;  %v2847_v55 = vld [vmem:[#allocation3 + $0x48] sm:$0xf]  ;;  %v4244_v16 = vcombine.low %v2897_v47, %v2879_v8  ;;  %v4604_v46 = vld [vmem:[#allocation3 + $0x5c] ss:$0 sps:$4 sm:$0x11]  }
 0x2a7   : > { %3417 = vrot.lane.b32.xlu0 %v3397_v11, %s4671_s21  ;;  %v3556_v11 = vsel %vm1203_vm10, %v3551_v60, %v3555_v0  ;;  %v3307_v27 = vor.u32 %v3306_v13, %v3302_v20  ;;  %v2911_v0 = vld [vmem:[#allocation3 + $0x54] sm:$0xf]  ;;  %v3321_v60 = vshll.u32 %v4595_v49, 16  ;;  %v2865_v34 = vld [vmem:[#allocation3 + $0x48] sm:$0xe]  ;;  %vm4675_vm3 = vmmov 0  }
 0x2a8   : > { %v3300_v45 = vsel %vm1203_vm10, %v3295_v7, %v3299_v15  ;;  %v3562_v7 = vrot.slane %v3560_v10, 1  ;;  %v4592_v15 = vld [vmem:[#allocation3 + $0x44] ss:$0 sps:$4 sm:$0x11]   ;;  %v3405_v10 = vrot.slane %v4595_v49, 1  ;;  %4388 = vmatprep.mubr.msk.bf16.mxu1 %vm4675_vm3, %v4674_v14  ;;  %vm3749_vm8 = vcmask 326656  }
 0x2a9   : > { %v3312_v43 = vsel %vm1203_vm10, %v3307_v27, %v3311_v28  ;;  %v4601_v27 = vld [vmem:[#allocation3 + $0x50] ss:$0 sps:$4 sm:$0x11]   ;;  %v4607_v47 = vld [vmem:[#allocation3 + $0x68] ss:$0 sps:$4 sm:$0x11]  }
 0x2aa   : > { %3673 = vrot.lane.b32.xlu1 %v3653_v52, %s4673_s10  ;;  %v2845_v52 = vld [vmem:[#allocation3 + $0x3c] sm:$0xf]  ;;  %v3563_v54 = vor.u32 %v3562_v7, %v3558_v33  ;;  %v3152_v49 = vrot.slane %v4601_v27, 1  ;;  %vm3766_vm0 = vcmask 392192   ;;  %vm3824_vm4 = vcmask 588800  }
 0x2ab   : > { %3609 = vrot.lane.b32.xlu0 %v3544_v6, %s4672_s9  ;;  %v4589_v6 = vld [vmem:[#allocation3 + $0x50] ss:$0 sps:$4 sm:$0x11]  }
 0x2ac   : > { %v3658_v50 = vrot.slane %v4589_v6, 1 }
 0x2ae   : > { %3163 = vrot.lane.b32.xlu1 %v3144_v37, %s4663_s14  ;;  %v4267_v37 = vcombine.low %v2929_v32, %v2910_v53  ;;  %v3318_v53 = vrot.slane %v3316_v41, 1 }
 0x2af   : > { %3099 = vrot.lane.b32.xlu0 %v3044_v35, %s4661_s8  ;;  %v3565_v35 = vshll.u32 %v4589_v6, 16  ;;  %v5717_v6 = vld [vmem:[#allocation3 + $0x58] sm:$0xf] }
 0x2b0   : > { %v3657_v23 = vrot.slane %v4267_v37, 1  ;;  %v3319_v13 = vor.u32 %v3318_v53, %v3314_v12  ;;  %v2931_v12 = vld [vmem:[#allocation3 + $0x60] sm:$0xe] }
 0x2b1   : > { %v3567_v42 = vrot.slane %v3565_v35, 1 }
 0x2b2   : > { %3355 = vrot.lane.b32.xlu1 %v3300_v45, %s4667_s19  ;;  %v3065_v45 = vshll.u32 %v4592_v15, 16 }
 0x2b3   : > { %3219 = vrot.lane.b32.xlu0 %v4226_v4, %s4665_s16  ;;  %v3055_v4 = vrot.slane %v3053_v24, 1  ;;  %v3659_v24 = vsel %vm1374_vm9, %v3657_v23, %v3658_v50 }
 0x2b4   : > { %v3067_v51 = vrot.slane %v3065_v45, 1 }
 0x2b5   : > { %v3056_v25 = vsel %vm1203_vm10, %v3051_v17, %v3055_v4  ;;  %v2848_v4 = vld [vmem:[#allocation3 + $0x4c] sm:$0xf]  ;;  %v2930_v17 = vld [vmem:[#allocation3 + $0x54] sm:$0xe] }
 0x2b6   : > { %3475 = vrot.lane.b32.xlu1 %v4250_v29, %s4670_s24  ;;  %v5697_v29 = vcombine.low %v2845_v52, %v2846_v44  ;;  %v5715_v52 = vcombine.low %v2847_v55, %v2848_v4  ;;  %v2880_v44 = vld [vmem:[#allocation3 + $0x54] sm:$0xf]  ;;  %v4268_v63 = vcombine.low %v2930_v17, %v2912_v3 }
 0x2b7   : > { %3419 = vrot.lane.b32.xlu0 %v3400_v62, %s4671_s21  ;;  %v3149_v62 = vrot.slane %v4592_v15, 1  ;;  %v4229_v33 = vcombine.low %v2880_v44, %v5717_v6  ;;  %v3077_v15 = vshll.u32 %v4601_v27, 16  ;;  %v2866_v17 = vld [vmem:[#allocation3 + $0x54] sm:$0xe] }
 0x2b8   : > { %v3060_v31 = vshll.u32 %v5697_v29, 16  ;;  %v3058_v2 = vshrl.u32 %v5697_v29, 16  ;;  %v3072_v8 = vshll.u32 %v5715_v52, 16  ;;  %v3660_v35 = vrot.slane %v4268_v63, 1 }
 0x2b9   : > { %v3150_v36 = vsel %vm1374_vm9, %v3148_v1, %v3149_v62  ;;  %v3070_v7 = vshrl.u32 %v5715_v52, 16  ;;  %v3328_v38 = vshll.u32 %v4229_v33, 16  ;;  %v2898_v1 = vld [vmem:[#allocation3 + $0x54] sm:$0xe] }
 0x2ba   : > { %3675 = vrot.lane.b32.xlu1 %v3656_v18, %s4673_s10  ;;  %v3062_v56 = vrot.slane %v3060_v31, 1  ;;  %v4252_v18 = vcombine.low %v2911_v0, %v2912_v3  ;;  %v3074_v50 = vrot.slane %v3072_v8, 1  ;;  %v3326_v3 = vshrl.u32 %v4229_v33, 16  ;;  %v4610_v44 = vld [vmem:[#allocation3 + $0x5c] ss:$0 sps:$4 sm:$0x11]  }
 0x2bb   : > { %3611 = vrot.lane.b32.xlu0 %v3556_v11, %s4672_s9  ;;  %v4598_v11 = vld [vmem:[#allocation3 + $0x5c] ss:$0 sps:$4 sm:$0x11]   ;;  %v3089_v8 = vshll.u32 %v4610_v44, 16 }
 0x2bc   : > { %v3063_v5 = vor.u32 %v3062_v56, %v3058_v2  ;;  %v3572_v22 = vshll.u32 %v4252_v18, 16  ;;  %v3570_v32 = vshrl.u32 %v4252_v18, 16  ;;  %v3661_v37 = vrot.slane %v4598_v11, 1 }
 0x2bd   : > { %v3333_v2 = vshll.u32 %v4604_v46, 16  ;;  %v3075_v0 = vor.u32 %v3074_v50, %v3070_v7  ;;  %v3155_v50 = vrot.slane %v4610_v44, 1 }
 0x2be   : > { %3165 = vrot.lane.b32.xlu1 %v3147_v58, %s4663_s14  ;;  %v3068_v20 = vsel %vm1203_vm10, %v3063_v5, %v3067_v51  ;;  %v3404_v58 = vrot.slane %v4244_v16, 1  ;;  %v3574_v9 = vrot.slane %v3572_v22, 1  ;;  %v3662_v45 = vsel %vm1374_vm9, %v3660_v35, %v3661_v37  ;;  %v2850_v51 = vld [vmem:[#allocation3 + $0x58] sm:$0xf]  ;;  %v2882_v16 = vld [vmem:[#allocation3 + $0x60] sm:$0xf] }
 0x2bf   : > { %3101 = vrot.lane.b32.xlu0 %v3056_v25, %s4661_s8  ;;  %v3577_v25 = vshll.u32 %v4598_v11, 16  ;;  %v3335_v55 = vrot.slane %v3333_v2, 1  ;;  %v3589_v22 = vshll.u32 %v4607_v47, 16  ;;  %v4222_v27 = vcombine.low %v2866_v17, %v2850_v51 }
 0x2c0   : > { %v3406_v31 = vsel %vm1374_vm9, %v3404_v58, %v3405_v10  ;;  %v3575_v23 = vor.u32 %v3574_v9, %v3570_v32 }
 0x2c1   : > { %v3579_v40 = vrot.slane %v3577_v25, 1  ;;  %v3664_v25 = vrot.slane %v4607_v47, 1  ;;  %v3591_v9 = vrot.slane %v3589_v22, 1 }
 0x2c2   : > { %3357 = vrot.lane.b32.xlu1 %v3312_v43, %s4667_s19  ;;  %v4221_v43 = vcombine.low %v2865_v34, %v2848_v4  ;;  %v4613_v34 = vld [vmem:[#allocation3 + $0x68] ss:$0 sps:$4 sm:$0x11]  }
 0x2c3   : > { %3221 = vrot.lane.b32.xlu0 %v4227_v39, %s4665_s16  ;;  %v3568_v39 = vsel %vm1203_vm10, %v3563_v54, %v3567_v42  ;;  %v2913_v54 = vld [vmem:[#allocation3 + $0x60] sm:$0xf]  ;;  %v2914_v42 = vld [vmem:[#allocation3 + $0x64] sm:$0xf]  ;;  %v3580_v41 = vsel %vm1203_vm10, %v3575_v23, %v3579_v40  ;;  %v3091_v23 = vrot.slane %v3089_v8, 1 }
 0x2c4   : > { %v4253_v56 = vcombine.low %v2913_v54, %v2914_v42  ;;  %v4269_v11 = vcombine.low %v2931_v12, %v2914_v42 }
 0x2c6   : > { %3477 = vrot.lane.b32.xlu1 %v4251_v61, %s4670_s24  ;;  %v3323_v61 = vrot.slane %v3321_v60, 1  ;;  %v4245_v60 = vcombine.low %v2898_v1, %v5717_v6  ;;  %v3584_v5 = vshll.u32 %v4253_v56, 16  ;;  %v3663_v32 = vrot.slane %v4269_v11, 1  ;;  %v2932_v1 = vld [vmem:[#allocation3 + $0x6c] sm:$0xe] }
 0x2c7   : > { %3421 = vrot.lane.b32.xlu0 %v3403_v57, %s4671_s21  ;;  %v3151_v57 = vrot.slane %v4221_v43, 1  ;;  %v2916_v43 = vld [vmem:[#allocation3 + $0x70] sm:$0xf] }
 0x2c8   : > { %v3324_v28 = vsel %vm1203_vm10, %v3319_v13, %v3323_v61  ;;  %v3408_v61 = vrot.slane %v4604_v46, 1  ;;  %v3586_v13 = vrot.slane %v3584_v5, 1  ;;  %v3407_v58 = vrot.slane %v4245_v60, 1 }
 0x2c9   : > { %v3153_v62 = vsel %vm1374_vm9, %v3151_v57, %v3152_v49  ;;  %v3665_v46 = vsel %vm1374_vm9, %v3663_v32, %v3664_v25  ;;  %v2899_v49 = vld [vmem:[#allocation3 + $0x60] sm:$0xe]  ;;  %v3818_v25 = vld [vmem:[%s5884_s6] sm:$0xff] }
 0x2ca   : > { %3677 = vrot.lane.b32.xlu1 %v3659_v24, %s4673_s10  ;;  %v3330_v24 = vrot.slane %v3328_v38, 1  ;;  %v3409_v35 = vsel %vm1374_vm9, %v3407_v58, %v3408_v61  ;;  %v3345_v38 = vshll.u32 %v4613_v34, 16  ;;  %v4676_v58 = vmov 0  }
 0x2cb   : > { %3613 = vrot.lane.b32.xlu0 %v3568_v39, %s4672_s9  ;;  %v2849_v39 = vld [vmem:[#allocation3 + $0x54] sm:$0xf] }
 0x2cc   : > { %v5737_v4 = vcombine.low %v2849_v39, %v2850_v51  ;;  %v3411_v51 = vrot.slane %v4613_v34, 1  ;;  %4545 = vset.pattern.permute.xlu0 %v4676_v58 }
 0x2ce   : > { %3167 = vrot.lane.b32.xlu1 %v3150_v36, %s4663_s14  ;;  %v2883_v36 = vld [vmem:[#allocation3 + $0x64] sm:$0xf]  ;;  %v3084_v63 = vshll.u32 %v5737_v4, 16  ;;  %v3082_v37 = vshrl.u32 %v5737_v4, 16 }
 0x2cf   : > { %3103 = vrot.lane.b32.xlu0 %v3068_v20, %s4661_s8  ;;  %v3582_v20 = vshrl.u32 %v4253_v56, 16  ;;  %v4230_v10 = vcombine.low %v2882_v16, %v2883_v36  ;;  %v4246_v2 = vcombine.low %v2899_v49, %v2883_v36 }
 0x2d0   : > { %v3086_v40 = vrot.slane %v3084_v63, 1 }
 0x2d1   : > { %v3340_v7 = vshll.u32 %v4230_v10, 16  ;;  %v3338_v42 = vshrl.u32 %v4230_v10, 16  ;;  %v3410_v39 = vrot.slane %v4246_v2, 1 }
 0x2d2   : > { %3359 = vrot.lane.b32.xlu1 %v3324_v28, %s4667_s19  ;;  %v3587_v28 = vor.u32 %v3586_v13, %v3582_v20  ;;  %v3087_v54 = vor.u32 %v3086_v40, %v3082_v37 }
 0x2d3   : > { %3223 = vrot.lane.b32.xlu0 %v4228_v30, %s4665_s16  ;;  %v3079_v30 = vrot.slane %v3077_v15, 1  ;;  %v2915_v15 = vld [vmem:[#allocation3 + $0x6c] sm:$0xf] }
 0x2d5   : > { %v3080_v53 = vsel %vm1203_vm10, %v3075_v0, %v3079_v30  ;;  %v4254_v30 = vcombine.low %v2915_v15, %v2916_v43 }
 0x2d6   : > { %3479 = vrot.lane.b32.xlu1 %v4252_v18, %s4670_s24  ;;  %v3331_v18 = vor.u32 %v3330_v24, %v3326_v3  ;;  %v3347_v3 = vrot.slane %v3345_v38, 1 }
 0x2d7   : > { %3423 = vrot.lane.b32.xlu0 %v3406_v31, %s4671_s21  ;;  %v3154_v31 = vrot.slane %v4222_v27, 1  ;;  %v3596_v24 = vshll.u32 %v4254_v30, 16  ;;  %v3594_v5 = vshrl.u32 %v4254_v30, 16 }
 0x2d8   : > { %v3336_v6 = vsel %vm1203_vm10, %v3331_v18, %v3335_v55  ;;  %v3412_v55 = vsel %vm1374_vm9, %v3410_v39, %v3411_v51 }
 0x2d9   : > { %v3156_v57 = vsel %vm1374_vm9, %v3154_v31, %v3155_v50  ;;  %v3598_v12 = vrot.slane %v3596_v24, 1 }
 0x2da   : > { %3679 = vrot.lane.b32.xlu1 %v3662_v45, %s4673_s10  ;;  %v3342_v45 = vrot.slane %v3340_v7, 1 }
 0x2db   : > { %3615 = vrot.lane.b32.xlu0 %v3580_v41, %s4672_s9  ;;  %v4616_v41 = vld [vmem:[#allocation3 + $0x74] ss:$0 sps:$4 sm:$0x11]   ;;  %v3599_v36 = vor.u32 %v3598_v12, %v3594_v5 }
 0x2dc   : > { %v3343_v0 = vor.u32 %v3342_v45, %v3338_v42  ;;  %v3667_v17 = vrot.slane %v4616_v41, 1 }
 0x2de   : > { %3169 = vrot.lane.b32.xlu1 %v3153_v62, %s4663_s14  ;;  %v3601_v62 = vshll.u32 %v4616_v41, 16  ;;  %v3348_v47 = vsel %vm1203_vm10, %v3343_v0, %v3347_v3 }
 0x2df   : > { %3105 = vrot.lane.b32.xlu0 %v3080_v53, %s4661_s8  ;;  %v4270_v53 = vcombine.low %v2932_v1, %v2916_v43 }
 0x2e0   : > { %v3603_v61 = vrot.slane %v3601_v62, 1 }
 0x2e1   : > { %v3666_v11 = vrot.slane %v4270_v53, 1 }
 0x2e2   : > { %3361 = vrot.lane.b32.xlu1 %v3336_v6, %s4667_s19  ;;  %v3604_v13 = vsel %vm1203_vm10, %v3599_v36, %v3603_v61 }
 0x2e3   : > { %3225 = vrot.lane.b32.xlu0 %v4229_v33, %s4665_s16  ;;  %v3592_v33 = vsel %vm1203_vm10, %v3587_v28, %v3591_v9  ;;  %v3668_v22 = vsel %vm1374_vm9, %v3666_v11, %v3667_v17  ;;  %vm3783_vm9 = vcmask 457728  }
 0x2e6   : > { %3481 = vrot.lane.b32.xlu1 %v4253_v56, %s4670_s24  ;;  %v3092_v56 = vsel %vm1203_vm10, %v3087_v54, %v3091_v23  ;;  %vm3800_vm10 = vcmask 523264  }
 0x2e7   : > { %3425 = vrot.lane.b32.xlu0 %v3409_v35, %s4671_s21 }
 0x2ea   : > { %3681 = vrot.lane.b32.xlu1 %v3665_v46, %s4673_s10 }
 0x2eb   : > { %3617 = vrot.lane.b32.xlu0 %v3592_v33, %s4672_s9 }
 0x2ee   : > { %3171 = vrot.lane.b32.xlu1 %v3156_v57, %s4663_s14 }
 0x2ef   : > { %3107 = vrot.lane.b32.xlu0 %v3092_v56, %s4661_s8 }
 0x2f0   : > { %v3214_v60 = vpop.permute.xlu1 %3213 }
 0x2f1   : > { %v3158_v18 = vpop.permute.xlu0 %3157 }
 0x2f2   : > { %3363 = vrot.lane.b32.xlu1 %v3348_v47, %s4667_s19 }
 0x2f3   : > { %3227 = vrot.lane.b32.xlu0 %v4230_v10, %s4665_s16 }
 0x2f4   : > { %v3470_v16 = vpop.permute.xlu1 %3469 }
 0x2f5   : > { %v3414_v20 = vpop.permute.xlu0 %3413 }
 0x2f6   : > { %3483 = vrot.lane.b32.xlu1 %v4254_v30, %s4670_s24 }
 0x2f7   : > { %3427 = vrot.lane.b32.xlu0 %v3412_v55, %s4671_s21 }
 0x2f8   : > { %v3350_v6 = vpop.permute.xlu1 %3349 }
 0x2f9   : > { %v3094_v44 = vpop.permute.xlu0 %3093 }
 0x2fa   : > { %v3686_v63 = vsel %vm2086_vm13, %v5610_v59, %v3094_v44  ;;  %3683 = vrot.lane.b32.xlu1 %v3668_v22, %s4673_s10 }
 0x2fb   : > { %v3702_v10 = vsel %vm2128_vm15, %v3686_v63, %v3158_v18  ;;  %3619 = vrot.lane.b32.xlu0 %v3604_v13, %s4672_s9 }
 0x2fc   : > { %v3718_v32 = vsel %vm2170_vm2, %v3702_v10, %v3214_v60  ;;  %v3670_v9 = vpop.permute.xlu1 %3669 }
 0x2fd   : > { %v3734_v27 = vsel %vm2212_vm5, %v3718_v32, %v3350_v6  ;;  %v3606_v28 = vpop.permute.xlu0 %3605 }
 0x2fe   : > { %v3751_v59 = vsel %vm3749_vm8, %v3734_v27, %v3414_v20 }
 0x2ff   : > { %v3768_v8 = vsel %vm3766_vm0, %v3751_v59, %v3470_v16  ;;  %3821 = vperm.xlu0 %4545, %v3818_v25  }
 0x300   : > { %v3785_v34 = vsel %vm3783_vm9, %v3768_v8, %v3606_v28  ;;  %v3160_v37 = vpop.permute.xlu1 %3159 }
 0x301   : > { %v3096_v35 = vpop.permute.xlu0 %3095  ;;  %v3802_v40 = vsel %vm3800_vm10, %v3785_v34, %v3670_v9 }
 0x302   : > { %v3688_v7 = vsel %vm2086_vm13, %v5620_v19, %v3096_v35  ;;  %v3828_v15 = vsel %vm3824_vm4, %v3802_v40, 0 }
 0x303   : > { %4373 = vmatpush3.bf16.xpose.msra.mxu1 %v3828_v15  ;;  %v3704_v43 = vsel %vm2128_vm15, %v3688_v7, %v3160_v37 }
 0x304   : > { %4374 = vmatprep.subr.bf16.mxu1 %v4674_v14  ;;  %v3352_v31 = vpop.permute.xlu1 %3351 }
 0x305   : > { %v3216_v46 = vpop.permute.xlu0 %3215 }
 0x306   : > { %v3720_v33 = vsel %vm2170_vm2, %v3704_v43, %v3216_v46 }
 0x307   : > { %v3736_v23 = vsel %vm2212_vm5, %v3720_v33, %v3352_v31 }
 0x308   : > { %v3472_v38 = vpop.permute.xlu1 %3471 }
 0x309   : > { %v3416_v50 = vpop.permute.xlu0 %3415 }
 0x30a   : > { %v3753_v54 = vsel %vm3749_vm8, %v3736_v23, %v3416_v50 }
 0x30b   : > { %v3770_v42 = vsel %vm3766_vm0, %v3753_v54, %v3472_v38 }
 0x30c   : > { %v3672_v45 = vpop.permute.xlu1 %3671 }
 0x30d   : > { %v3608_v19 = vpop.permute.xlu0 %3607 }
 0x30e   : > { %v3787_v49 = vsel %vm3783_vm9, %v3770_v42, %v3608_v19 }
 0x30f   : > { %v3804_v30 = vsel %vm3800_vm10, %v3787_v49, %v3672_v45 }
 0x310   : > { %v3830_v57 = vsel %vm3824_vm4, %v3804_v30, 0  ;;  %v3162_v41 = vpop.permute.xlu1 %3161 }
 0x311   : > { %4375 = vmatpush3.bf16.xpose.msra.mxu1 %v3830_v57  ;;  %v3098_v2 = vpop.permute.xlu0 %3097 }
 0x312   : > { %v3690_v56 = vsel %vm2086_vm13, %v5634_v21, %v3098_v2  ;;  %4376 = vmatprep.subr.bf16.mxu1 %v4674_v14 }
 0x313   : > { %v3706_v0 = vsel %vm2128_vm15, %v3690_v56, %v3162_v41 }
 0x314   : > { %v3354_v24 = vpop.permute.xlu1 %3353 }
 0x315   : > { %v3218_v3 = vpop.permute.xlu0 %3217 }
 0x316   : > { %v3722_v1 = vsel %vm2170_vm2, %v3706_v0, %v3218_v3 }
 0x317   : > { %v3738_v39 = vsel %vm2212_vm5, %v3722_v1, %v3354_v24 }
 0x318   : > { %v3474_v62 = vpop.permute.xlu1 %3473 }
 0x319   : > { %v3418_v51 = vpop.permute.xlu0 %3417 }
 0x31a   : > { %v3755_v60 = vsel %vm3749_vm8, %v3738_v39, %v3418_v51 }
 0x31b   : > { %v3772_v47 = vsel %vm3766_vm0, %v3755_v60, %v3474_v62 }
 0x31c   : > { %v3674_v12 = vpop.permute.xlu1 %3673 }
 0x31d   : > { %v3610_v5 = vpop.permute.xlu0 %3609 }
 0x31e   : > { %v3789_v21 = vsel %vm3783_vm9, %v3772_v47, %v3610_v5 }
 0x31f   : > { %v3806_v53 = vsel %vm3800_vm10, %v3789_v21, %v3674_v12 }
 0x320   : > { %v3832_v18 = vsel %vm3824_vm4, %v3806_v53, 0  ;;  %v3164_v16 = vpop.permute.xlu1 %3163 }
 0x321   : > { %4377 = vmatpush3.bf16.xpose.msra.mxu1 %v3832_v18  ;;  %v3100_v55 = vpop.permute.xlu0 %3099 }
 0x322   : > { %v3692_v36 = vsel %vm2086_vm13, %v5654_v48, %v3100_v55  ;;  %4378 = vmatprep.subr.bf16.mxu1 %v4674_v14 }
 0x323   : > { %v3708_v61 = vsel %vm2128_vm15, %v3692_v36, %v3164_v16 }
 0x324   : > { %v3356_v17 = vpop.permute.xlu1 %3355 }
 0x325   : > { %v3220_v11 = vpop.permute.xlu0 %3219 }
 0x326   : > { %v3724_v20 = vsel %vm2170_vm2, %v3708_v61, %v3220_v11 }
 0x327   : > { %v3740_v13 = vsel %vm2212_vm5, %v3724_v20, %v3356_v17 }
 0x328   : > { %v3476_v44 = vpop.permute.xlu1 %3475 }
 0x329   : > { %v3420_v22 = vpop.permute.xlu0 %3419 }
 0x32a   : > { %v3757_v6 = vsel %vm3749_vm8, %v3740_v13, %v3420_v22 }
 0x32b   : > { %v3774_v58 = vsel %vm3766_vm0, %v3757_v6, %v3476_v44 }
 0x32c   : > { %v3676_v10 = vpop.permute.xlu1 %3675 }
 0x32d   : > { %v3612_v63 = vpop.permute.xlu0 %3611 }
 0x32e   : > { %v3791_v48 = vsel %vm3783_vm9, %v3774_v58, %v3612_v63 }
 0x32f   : > { %v3808_v32 = vsel %vm3800_vm10, %v3791_v48, %v3676_v10 }
 0x330   : > { %v3834_v25 = vsel %vm3824_vm4, %v3808_v32, 0  ;;  %v3166_v28 = vpop.permute.xlu1 %3165 }
 0x331   : > { %4379 = vmatpush3.bf16.xpose.msra.mxu1 %v3834_v25  ;;  %v3102_v27 = vpop.permute.xlu0 %3101 }
 0x332   : > { %v3694_v9 = vsel %vm2086_vm13, %v5674_v26, %v3102_v27  ;;  %4380 = vmatprep.subr.bf16.mxu1 %v4674_v14 }
 0x333   : > { %v3710_v59 = vsel %vm2128_vm15, %v3694_v9, %v3166_v28 }
 0x334   : > { %v3358_v34 = vpop.permute.xlu1 %3357 }
 0x335   : > { %v3222_v8 = vpop.permute.xlu0 %3221 }
 0x336   : > { %v3726_v35 = vsel %vm2170_vm2, %v3710_v59, %v3222_v8  ;;  %v3817_v8 = vld [vmem:[%s5883_s5] sm:$0xf] }
 0x337   : > { %v3742_v37 = vsel %vm2212_vm5, %v3726_v35, %v3358_v34 }
 0x338   : > { %v3478_v7 = vpop.permute.xlu1 %3477 }
 0x339   : > { %v3422_v40 = vpop.permute.xlu0 %3421 }
 0x33a   : > { %v3759_v15 = vsel %vm3749_vm8, %v3742_v37, %v3422_v40 }
 0x33b   : > { %v3776_v43 = vsel %vm3766_vm0, %v3759_v15, %v3478_v7 }
 0x33c   : > { %v3678_v31 = vpop.permute.xlu1 %3677 }
 0x33d   : > { %v3614_v46 = vpop.permute.xlu0 %3613 }
 0x33e   : > { %v3793_v26 = vsel %vm3783_vm9, %v3776_v43, %v3614_v46 }
 0x33f   : > { %v3810_v33 = vsel %vm3800_vm10, %v3793_v26, %v3678_v31 }
 0x340   : > { %v3836_v23 = vsel %vm3824_vm4, %v3810_v33, 0  ;;  %v3168_v38 = vpop.permute.xlu1 %3167 }
 0x341   : > { %4381 = vmatpush3.bf16.xpose.msra.mxu1 %v3836_v23  ;;  %v3104_v50 = vpop.permute.xlu0 %3103 }
 0x342   : > { %v3696_v54 = vsel %vm2086_vm13, %v5697_v29, %v3104_v50  ;;  %4382 = vmatprep.subr.bf16.mxu1 %v4674_v14 }
 0x343   : > { %v3712_v42 = vsel %vm2128_vm15, %v3696_v54, %v3168_v38 }
 0x344   : > { %v3360_v45 = vpop.permute.xlu1 %3359 }
 0x345   : > { %v3224_v19 = vpop.permute.xlu0 %3223 }
 0x346   : > { %v3728_v49 = vsel %vm2170_vm2, %v3712_v42, %v3224_v19 }
 0x347   : > { %v3744_v30 = vsel %vm2212_vm5, %v3728_v49, %v3360_v45 }
 0x348   : > { %v3480_v2 = vpop.permute.xlu1 %3479 }
 0x349   : > { %v3424_v57 = vpop.permute.xlu0 %3423 }
 0x34a   : > { %v3761_v41 = vsel %vm3749_vm8, %v3744_v30, %v3424_v57 }
 0x34b   : > { %v3778_v56 = vsel %vm3766_vm0, %v3761_v41, %v3480_v2 }
 0x34c   : > { %v3680_v3 = vpop.permute.xlu1 %3679 }
 0x34d   : > { %v3616_v0 = vpop.permute.xlu0 %3615 }
 0x34e   : > { %v3795_v29 = vsel %vm3783_vm9, %v3778_v56, %v3616_v0 }
 0x34f   : > { %v3812_v24 = vsel %vm3800_vm10, %v3795_v29, %v3680_v3 }
 0x350   : > { %v3838_v1 = vsel %vm3824_vm4, %v3812_v24, 0  ;;  %v3170_v51 = vpop.permute.xlu1 %3169 }
 0x351   : > { %4383 = vmatpush3.bf16.xpose.msra.mxu1 %v3838_v1  ;;  %v3106_v39 = vpop.permute.xlu0 %3105 }
 0x352   : > { %v3698_v62 = vsel %vm2086_vm13, %v5715_v52, %v3106_v39  ;;  %4384 = vmatprep.subr.bf16.mxu1 %v4674_v14 }
 0x353   : > { %v3714_v60 = vsel %vm2128_vm15, %v3698_v62, %v3170_v51 }
 0x354   : > { %v3362_v5 = vpop.permute.xlu1 %3361 }
 0x355   : > { %v3226_v47 = vpop.permute.xlu0 %3225 }
 0x356   : > { %v3730_v12 = vsel %vm2170_vm2, %v3714_v60, %v3226_v47 }
 0x357   : > { %v3746_v21 = vsel %vm2212_vm5, %v3730_v12, %v3362_v5 }
 0x358   : > { %v3482_v18 = vpop.permute.xlu1 %3481 }
 0x359   : > { %v3426_v53 = vpop.permute.xlu0 %3425 }
 0x35a   : > { %v3763_v55 = vsel %vm3749_vm8, %v3746_v21, %v3426_v53 }
 0x35b   : > { %v3780_v16 = vsel %vm3766_vm0, %v3763_v55, %v3482_v18 }
 0x35c   : > { %v3682_v61 = vpop.permute.xlu1 %3681 }
 0x35d   : > { %v3618_v36 = vpop.permute.xlu0 %3617 }
 0x35e   : > { %v3797_v52 = vsel %vm3783_vm9, %v3780_v16, %v3618_v36 }
 0x35f   : > { %v3814_v11 = vsel %vm3800_vm10, %v3797_v52, %v3682_v61 }
 0x360   : > { %v3840_v17 = vsel %vm3824_vm4, %v3814_v11, 0  ;;  %v3172_v13 = vpop.permute.xlu1 %3171 }
 0x361   : > { %4385 = vmatpush3.bf16.xpose.msra.mxu1 %v3840_v17  ;;  %v3108_v20 = vpop.permute.xlu0 %3107 }
 0x362   : > { %v3700_v22 = vsel %vm2086_vm13, %v5737_v4, %v3108_v20  ;;  %4386 = vmatprep.subr.bf16.mxu1 %v4674_v14 }
 0x363   : > { %v3716_v44 = vsel %vm2128_vm15, %v3700_v22, %v3172_v13 }
 0x364   : > { %v3364_v58 = vpop.permute.xlu1 %3363 }
 0x365   : > { %v3228_v6 = vpop.permute.xlu0 %3227 }
 0x366   : > { %v3732_v63 = vsel %vm2170_vm2, %v3716_v44, %v3228_v6 }
 0x367   : > { %v3748_v10 = vsel %vm2212_vm5, %v3732_v63, %v3364_v58 }
 0x368   : > { %v3484_v32 = vpop.permute.xlu1 %3483 }
 0x369   : > { %v3428_v48 = vpop.permute.xlu0 %3427 }
 0x36a   : > { %v3765_v25 = vsel %vm3749_vm8, %v3748_v10, %v3428_v48 }
 0x36b   : > { %v3782_v27 = vsel %vm3766_vm0, %v3765_v25, %v3484_v32 }
 0x36c   : > { %v3684_v9 = vpop.permute.xlu1 %3683 }
 0x36d   : > { %v3620_v28 = vpop.permute.xlu0 %3619 }
 0x36e   : > { %v3799_v4 = vsel %vm3783_vm9, %v3782_v27, %v3620_v28 }
 0x36f   : > { %v3816_v14 = vsel %vm3800_vm10, %v3799_v4, %v3684_v9 }
 0x370   : > { %v3842_v59 = vsel %vm3824_vm4, %v3816_v14, 0 }
 0x371   : > { %4387 = vmatpush3.bf16.xpose.msra.mxu1 %v3842_v59 }
 0x378   : > { %4389 = vmatmul.mubr.msk.bf16.vlgmr.msra.gmra.mrb[0].mxu1 %vm3824_vm4, %v3817_v8 }
 0x37e   : > { %v3822_v34 = vpop.permute.xlu0 %3821 }
 0x44b   : > { %v3878_v35 = vpop.f32.mrb[0].mxu1 }
 0x44c   : > { %v3879_v37 = vadd.f32 %v3878_v35, %v3822_v34  ;;  %v4390_v40 = vpop.f32.mrb[1].mxu1 }
 0x44d   : > { %v3881_v7 = vpop.f32.mrb[2].mxu1 }
 0x44e   : > { %v3884_v15 = vmax.f32 %v3879_v37, 0.0  ;;  %v4391_v43 = vpop.f32.mrb[3].mxu1 }
 0x450   : > { %3885 = vst [vmem:[%s4865_s17] sm:$0xff] %v3884_v15 }
 0x451 PF: > { %s17_s28 = sadd.s32 1, %s4656_s28   ;;  %s5900_s24 = smov %s4648_s26 }
 0x452   : > { %p14_p2 = scmp.ge.s32.totalorder %s17_s28, 6   ;;  %s5901_s25 = smov %s4652_s27 }
 0x453   : > { %s5902_s26 = smov %s5905_s29  ;;  %s5903_s27 = smov %s5909_s30 }
 0x454   :  { %16 = sbr.rel (!%p14_p2) target bundleno = 3 (0x3), region = 115 }

</bundles_post_ra>
